<compile_context>
chip_gen: v5e
topology: v5e:2x2
jax: 0.10.0
libtpu: 0.0.40
codegen_flags: <defaults>
</compile_context>

<pallas_src>
import functools

import jax
import jax.numpy as jnp
from jax.experimental import pallas as pl
from jax.experimental.pallas import tpu as pltpu


# ----------------------------------------------------------------------------
# Budget / chunk helpers.
# ----------------------------------------------------------------------------
def _vmem_budget_bytes():
    """~75% of physical VMEM of the attached chip (v5e/v6e 128MiB, v7x 64MiB)."""
    try:
        cap = pltpu.get_tpu_info().vmem_capacity_bytes
    except Exception:  # pragma: no cover - conservative fallback
        cap = 64 * 2 ** 20
    return max(32 * 2 ** 20, min(int(cap * 3 // 4), 112 * 2 ** 20))


def _largest_divisor(n, cap):
    cap = max(1, min(n, cap))
    for d in range(cap, 0, -1):
        if n % d == 0:
            return d
    return 1


def _chunk(n, cap):
    """Divisor of n close to cap; avoid degenerating to 1-element grid steps."""
    d = _largest_divisor(n, cap)
    if d < min(8, n) and n <= 4 * cap:
        return n
    return d


def _cparams(dims, vmem):
    return pltpu.CompilerParams(dimension_semantics=dims, vmem_limit_bytes=vmem)


# ----------------------------------------------------------------------------
# Generic dense kernel:  out = x @ W + b   (bf16 MXU inputs, f32 accumulate).
# Cast happens in-kernel (no wrapper-side astype round trip).
# ----------------------------------------------------------------------------
def dense_kernel(x_ref, w_ref, b_ref, o_ref):
    x = x_ref[...].astype(jnp.bfloat16)
    o_ref[...] = (
        jnp.dot(x, w_ref[...], preferred_element_type=jnp.float32) + b_ref[...]
    ).astype(o_ref.dtype)


def dense(x, w, b, *, out_dtype=jnp.float32, tm=512, vmem=None):
    M, K = x.shape
    N = w.shape[1]
    tm = min(tm, M)
    return pl.pallas_call(
        dense_kernel,
        out_shape=jax.ShapeDtypeStruct((M, N), out_dtype),
        grid_spec=pltpu.PrefetchScalarGridSpec(
            num_scalar_prefetch=0,
            grid=(pl.cdiv(M, tm),),
            in_specs=[
                pl.BlockSpec((tm, K), lambda i: (i, 0)),
                pl.BlockSpec((K, N), lambda i: (0, 0)),
                pl.BlockSpec((1, N), lambda i: (0, 0)),
            ],
            out_specs=pl.BlockSpec((tm, N), lambda i: (i, 0)),
        ),
        compiler_params=_cparams(("parallel",), vmem),
    )(x, w, b)


# ----------------------------------------------------------------------------
# Bidirectional GRU recurrence, BOTH directions fused in one kernel body.
# Grid = (time-chunk,).  Input projections Xg = x @ Wih + bih are precomputed
# (dense kernel), so each step does one fused h @ Whh_[r|z|n] matmul + gate
# math per direction.  Backward direction gets reversed chunks via index_map
# and scans each chunk in reverse in-kernel.  Hidden state lives in VMEM.
# ----------------------------------------------------------------------------
def bigru_scan_kernel(xgf_ref, xgb_ref, whh_ref, bhh_ref, of_ref, ob_ref,
                      hf_scr, hb_scr, *, tc, unroll):
    c = pl.program_id(0)

    @pl.when(c == 0)
    def _():
        hf_scr[...] = jnp.zeros_like(hf_scr)
        hb_scr[...] = jnp.zeros_like(hb_scr)

    whh_f = whh_ref[0]
    whh_b = whh_ref[1]
    bhh_f = bhh_ref[0]
    bhh_b = bhh_ref[1]
    H = hf_scr.shape[-1]

    def gru_step(xg, h, whh, bhh):
        hg = jnp.dot(h.astype(jnp.bfloat16), whh,
                     preferred_element_type=jnp.float32) + bhh
        r = jax.nn.sigmoid(xg[:, :H] + hg[:, :H])
        z = jax.nn.sigmoid(xg[:, H:2 * H] + hg[:, H:2 * H])
        n = jnp.tanh(xg[:, 2 * H:] + r * hg[:, 2 * H:])
        return (1.0 - z) * n + z * h

    def body(k, carry):
        tb = tc - 1 - k
        # two independent chains -> ILP across MXU / VPU / EUP slots
        hf = gru_step(xgf_ref[k].astype(jnp.float32), hf_scr[...], whh_f, bhh_f)
        hb = gru_step(xgb_ref[tb].astype(jnp.float32), hb_scr[...], whh_b, bhh_b)
        hf_scr[...] = hf
        hb_scr[...] = hb
        of_ref[k] = hf.astype(of_ref.dtype)
        ob_ref[tb] = hb.astype(ob_ref.dtype)
        return carry

    jax.lax.fori_loop(0, tc, body, 0, unroll=unroll)


def bigru_layer(xg_f, xg_b, whh, bhh, *, tc, vmem):
    """xg_f/xg_b: (T, B, 3H) bf16.  Returns (out_fwd, out_bwd), each (T, B, H) bf16."""
    T, B, G = xg_f.shape
    H = whh.shape[1]
    C = T // tc
    unroll = tc if tc <= 8 else (4 if tc % 4 == 0 else (2 if tc % 2 == 0 else 1))
    full3 = lambda c: (0, 0, 0)

    return pl.pallas_call(
        functools.partial(bigru_scan_kernel, tc=tc, unroll=unroll),
        out_shape=(jax.ShapeDtypeStruct((T, B, H), jnp.bfloat16),
                   jax.ShapeDtypeStruct((T, B, H), jnp.bfloat16)),
        grid_spec=pltpu.PrefetchScalarGridSpec(
            num_scalar_prefetch=0,
            grid=(C,),
            in_specs=[
                pl.BlockSpec((tc, B, G), lambda c: (c, 0, 0)),          # fwd chunks
                pl.BlockSpec((tc, B, G), lambda c: (C - 1 - c, 0, 0)),  # bwd chunks
                pl.BlockSpec((2, H, G), full3),                         # Whh fused r|z|n
                pl.BlockSpec((2, 1, G), full3),                         # bhh
            ],
            out_specs=(pl.BlockSpec((tc, B, H), lambda c: (c, 0, 0)),
                       pl.BlockSpec((tc, B, H), lambda c: (C - 1 - c, 0, 0))),
            scratch_shapes=[pltpu.VMEM((B, H), jnp.float32),
                            pltpu.VMEM((B, H), jnp.float32)],
        ),
        compiler_params=_cparams(("arbitrary",), vmem),
    )(xg_f, xg_b, whh, bhh)


# ----------------------------------------------------------------------------
# bmax[t, p] = max over batch j of (gru_out[j] @ W2)[t, p]
# (streamed over batch chunks, output stays resident as the accumulator).
# ----------------------------------------------------------------------------
def batchmax_proj_kernel(x_ref, w_ref, o_ref):
    j = pl.program_id(0)

    @pl.when(j == 0)
    def _():
        o_ref[...] = jnp.full_like(o_ref, -jnp.inf)

    jc, T, U = x_ref.shape
    x2 = x_ref[...].astype(jnp.bfloat16).reshape(jc * T, U)
    p = jnp.dot(x2, w_ref[...], preferred_element_type=jnp.float32)
    o_ref[...] = jnp.maximum(o_ref[...], jnp.max(p.reshape(jc, T, -1), axis=0))


def batchmax_proj(x, w2, *, jc, vmem):
    B, T, U = x.shape
    P = w2.shape[1]
    return pl.pallas_call(
        batchmax_proj_kernel,
        out_shape=jax.ShapeDtypeStruct((T, P), jnp.float32),
        grid_spec=pltpu.PrefetchScalarGridSpec(
            num_scalar_prefetch=0,
            grid=(B // jc,),
            in_specs=[
                pl.BlockSpec((jc, T, U), lambda j: (j, 0, 0)),
                pl.BlockSpec((U, P), lambda j: (0, 0)),
            ],
            out_specs=pl.BlockSpec((T, P), lambda j: (0, 0)),
        ),
        compiler_params=_cparams(("arbitrary",), vmem),
    )(x, w2)


# ----------------------------------------------------------------------------
# Fused head kernel, Ic batch rows per grid step (no j streaming needed):
#   a       = gru_block @ W1 + b_lin
#   pooled  = relu(a + bmax)                      (== max_j relu(a + g_j@W2), exact)
#   qh      = pooled @ [W_att | W2a]              (fused matmul)
#   attend  = softmax((qh[:, :P] + b_att) pooled^T) pooled
#   h2      = relu(qh[:, P:] + attend @ W2b + b2)
#   out     = log_softmax(h2 @ W_out + b_out)     (lane-padded to 128 classes)
# ----------------------------------------------------------------------------
def head_kernel(x_ref, bmax_ref, w1_ref, b1_ref, wqa_ref, batt_ref,
                w2b_ref, b2_ref, wout_ref, bout_ref, o_ref):
    Ic, T, U = x_ref.shape
    P = bmax_ref.shape[-1]

    x2 = x_ref[...].astype(jnp.bfloat16).reshape(Ic * T, U)
    a = jnp.dot(x2, w1_ref[...], preferred_element_type=jnp.float32) + b1_ref[...]
    pooled = jnp.maximum(a.reshape(Ic, T, P) + bmax_ref[...], 0.0)     # (Ic, T, P)
    pooled_b = pooled.astype(jnp.bfloat16)
    p2 = pooled_b.reshape(Ic * T, P)

    qh = jnp.dot(p2, wqa_ref[...], preferred_element_type=jnp.float32)  # (Ic*T, 2P)
    q = (qh[:, :P] + batt_ref[...]).reshape(Ic, T, P)
    h2a = qh[:, P:]                                                     # pooled @ W2a part

    # TODO(synk): BatchAttentionLayer source not provided; bilinear softmax
    #             attention softmax((pooled W_att + b_att) pooled^T) pooled used.
    scores = jnp.einsum('itp,isp->its', q.astype(jnp.bfloat16), pooled_b,
                        preferred_element_type=jnp.float32)             # (Ic, T, T)
    scores = scores - jnp.max(scores, axis=-1, keepdims=True)
    e = jnp.exp(scores)
    attn = e / jnp.sum(e, axis=-1, keepdims=True)                       # exact divide
    attend = jnp.einsum('its,isp->itp', attn.astype(jnp.bfloat16), pooled_b,
                        preferred_element_type=jnp.float32)             # (Ic, T, P)

    # linear2 on cat([pooled, attend]) == pooled @ W2a + attend @ W2b + b2
    h2 = jnp.maximum(
        h2a
        + jnp.dot(attend.astype(jnp.bfloat16).reshape(Ic * T, P), w2b_ref[...],
                  preferred_element_type=jnp.float32)
        + b2_ref[...], 0.0)

    # lane-dense padded class dim: padded lanes carry a -1e30 bias so they
    # vanish from the log-softmax; caller slices them off.
    logits = jnp.dot(h2.astype(jnp.bfloat16), wout_ref[...],
                     preferred_element_type=jnp.float32) + bout_ref[...]  # (Ic*T, Dp)
    m = jnp.max(logits, axis=-1, keepdims=True)
    s = logits - m
    lse = jnp.log(jnp.sum(jnp.exp(s), axis=-1, keepdims=True))
    o_ref[...] = (s - lse).reshape(Ic, T, -1)


def head(x, bmax, w1, b1, wqa, batt, w2b, b2, wout_pad, bout_pad, *, ic, vmem):
    B, T, U = x.shape
    P = w1.shape[1]
    Dp = wout_pad.shape[-1]
    full2 = lambda i: (0, 0)
    return pl.pallas_call(
        head_kernel,
        out_shape=jax.ShapeDtypeStruct((B, T, Dp), jnp.float32),
        grid_spec=pltpu.PrefetchScalarGridSpec(
            num_scalar_prefetch=0,
            grid=(B // ic,),
            in_specs=[
                pl.BlockSpec((ic, T, U), lambda i: (i, 0, 0)),   # gru_out rows
                pl.BlockSpec((T, P), full2),                     # bmax
                pl.BlockSpec((U, P), full2),                     # W1
                pl.BlockSpec((1, P), full2),                     # b_lin
                pl.BlockSpec((P, 2 * P), full2),                 # [W_att | W2a]
                pl.BlockSpec((1, P), full2),                     # b_att
                pl.BlockSpec((P, P), full2),                     # W2b
                pl.BlockSpec((1, P), full2),                     # b2
                pl.BlockSpec((P, Dp), full2),                    # W_out (padded)
                pl.BlockSpec((1, Dp), full2),                    # b_out (padded)
            ],
            out_specs=pl.BlockSpec((ic, T, Dp), lambda i: (i, 0, 0)),
        ),
        compiler_params=_cparams(("parallel",), vmem),
    )(x, bmax, w1, b1, wqa, batt, w2b, b2, wout_pad, bout_pad)


# ----------------------------------------------------------------------------
# Parameter init (deterministic, synthetic).
# ----------------------------------------------------------------------------
def init_params(key, vocab_size, dim_embed, dim_u, dim_pool, dim_out, depth):
    H = dim_u // 2  # per-direction hidden so concat(fwd, bwd) has dim_u
    keys = iter(jax.random.split(key, 12 * depth + 24))
    nrm = lambda shape, s=0.1: jax.random.normal(next(keys), shape, jnp.float32) * s

    emb = nrm((vocab_size, dim_embed)).at[0].set(0.0)       # padding_idx = 0

    gru_layers = []
    din = dim_embed + 2
    for _ in range(depth):
        gru_layers.append(dict(
            wih_f=nrm((din, 3 * H)).astype(jnp.bfloat16),   # fused r|z|n, fwd dir
            bih_f=nrm((1, 3 * H)),
            wih_b=nrm((din, 3 * H)).astype(jnp.bfloat16),   # fused r|z|n, bwd dir
            bih_b=nrm((1, 3 * H)),
            whh=nrm((2, H, 3 * H)).astype(jnp.bfloat16),
            bhh=nrm((2, 1, 3 * H)),
        ))
        din = dim_u

    P, D = dim_pool, dim_out
    Dp = max(128, ((D + 127) // 128) * 128)                 # lane-dense output width

    w_att = nrm((P, P))
    w2a = nrm((P, P))
    wout, bout = nrm((P, D)), nrm((1, D))
    wout_pad = jnp.zeros((P, Dp), jnp.float32).at[:, :D].set(wout).astype(jnp.bfloat16)
    bout_pad = jnp.full((1, Dp), -1e30, jnp.float32).at[:, :D].set(bout)

    return dict(
        emb=emb,
        gru=gru_layers,
        w1=nrm((dim_u, P)).astype(jnp.bfloat16),
        b1=nrm((1, P)),
        w2=nrm((dim_u, P)).astype(jnp.bfloat16),
        wqa=jnp.concatenate([w_att, w2a], axis=1).astype(jnp.bfloat16),
        b_att=nrm((1, P)),
        w2b=nrm((P, P)).astype(jnp.bfloat16),
        b2=nrm((1, P)),
        wout_pad=wout_pad, bout_pad=bout_pad,
    )


# ----------------------------------------------------------------------------
# End-to-end forward.
# ----------------------------------------------------------------------------
def forward(params, words, is_pred, is_target, *, dim_out):
    vmem = _vmem_budget_bytes()

    # embedding lookup + feature concat (XLA glue)
    emb = jnp.take(params["emb"], words, axis=0)                     # (B, T, E)
    x = jnp.concatenate([emb, is_pred, is_target], axis=2)           # (B, T, E+2)
    B, T, _ = x.shape
    tc = _chunk(T, 32)

    # stacked bidirectional GRU (time-major); inter-layer dropout omitted (eval)
    h = jnp.transpose(x, (1, 0, 2))                                  # (T, B, Din)
    for layer in params["gru"]:
        din = h.shape[-1]
        G = layer["whh"].shape[-1]                                   # 3H
        hf2 = h.reshape(T * B, din)
        # hoisted input->hidden projections: one fused r|z|n matmul per direction,
        # emitted directly in per-direction layout (no XLA stack), stored in bf16
        xg_f = dense(hf2, layer["wih_f"], layer["bih_f"],
                     out_dtype=jnp.bfloat16, vmem=vmem).reshape(T, B, G)
        xg_b = dense(hf2, layer["wih_b"], layer["bih_b"],
                     out_dtype=jnp.bfloat16, vmem=vmem).reshape(T, B, G)
        out_f, out_b = bigru_layer(xg_f, xg_b, layer["whh"], layer["bhh"],
                                   tc=tc, vmem=vmem)                 # 2 x (T, B, H) bf16
        h = jnp.concatenate([out_f, out_b], axis=-1)                 # (T, B, dim_u) bf16
    gru_out = jnp.transpose(h, (1, 0, 2))                            # (B, T, dim_u) bf16

    # pooled_i = max_j relu(g_i@W1 + b + g_j@W2) == relu(g_i@W1 + b + max_j(g_j@W2));
    # the batch max of the j-projection is computed ONCE (O(B*T*P) traffic).
    jc = _chunk(B, 16)
    bmax = batchmax_proj(gru_out, params["w2"], jc=jc, vmem=vmem)    # (T, P) f32

    # fused head: W1 projection + pool + attention + linear2 + output + log_softmax
    ic = _chunk(B, 8)
    out_pad = head(gru_out, bmax, params["w1"], params["b1"], params["wqa"],
                   params["b_att"], params["w2b"], params["b2"],
                   params["wout_pad"], params["bout_pad"], ic=ic, vmem=vmem)
    out = out_pad[:, :, :dim_out]

    # PyTorch forward returns a list of per-batch-element log-prob matrices
    return [out[i] for i in range(B)]


if __name__ == "__main__":
    # small, module-consistent shapes
    vocab_size, dim_embed = 50, 16
    dim_u, dim_pool, depth, dim_out = 32, 32, 2, 4
    B, T = 2, 8

    key = jax.random.PRNGKey(0)
    kp, kw, k1, k2 = jax.random.split(key, 4)

    params = init_params(kp, vocab_size, dim_embed, dim_u, dim_pool, dim_out, depth)

    words = jax.random.randint(kw, (B, T), 0, vocab_size, dtype=jnp.int32)
    words = words.at[:, -1].set(0)          # exercise padding_idx = 0
    is_pred = (jax.random.uniform(k1, (B, T, 1)) > 0.8).astype(jnp.float32)
    is_target = (jax.random.uniform(k2, (B, T, 1)) > 0.8).astype(jnp.float32)

    fwd = jax.jit(functools.partial(forward, dim_out=dim_out))
    outs = fwd(params, words, is_pred, is_target)
    jax.block_until_ready(outs)

    assert len(outs) == B and outs[0].shape == (T, dim_out)
    assert all(bool(jnp.all(jnp.isfinite(o))) for o in outs)
    print("KERNEL_OK")
</pallas_src>

<mosaic_0001>
module attributes {stable_mosaic.version = 11 : i64} {
  func.func @dense_kernel(%arg0: i32, %arg1: memref<16x18xf32, #tpu.memory_space<vmem>>, %arg2: memref<18x48xbf16, #tpu.memory_space<vmem>>, %arg3: memref<1x48xf32, #tpu.memory_space<vmem>>, %arg4: memref<16x48xbf16, #tpu.memory_space<vmem>>) attributes {dimension_semantics = [#tpu.dimension_semantics<parallel>], iteration_bounds = array<i64: 1>, scalar_prefetch = 0 : i64, scratch_operands = 0 : i64, tpu.core_type = #tpu.core_type<tc>, window_params = [{transform_indices = @transform_0, window_bounds = array<i64: 16, 18>}, {pipeline_mode = #tpu.pipeline_mode<synchronous>, transform_indices = @transform_1, window_bounds = array<i64: 18, 48>}, {pipeline_mode = #tpu.pipeline_mode<synchronous>, transform_indices = @transform_2, window_bounds = array<i64: 1, 48>}, {transform_indices = @transform_3, window_bounds = array<i64: 16, 48>}]} {
    %c0 = arith.constant 0 : index
    %c0_0 = arith.constant 0 : index
    %0 = vector.load %arg1[%c0, %c0_0] : memref<16x18xf32, #tpu.memory_space<vmem>>, vector<16x18xf32>
    %1 = arith.truncf %0 : vector<16x18xf32> to vector<16x18xbf16>
    %c0_1 = arith.constant 0 : index
    %c0_2 = arith.constant 0 : index
    %2 = vector.load %arg2[%c0_1, %c0_2] : memref<18x48xbf16, #tpu.memory_space<vmem>>, vector<18x48xbf16>
    %cst = arith.constant dense<0.000000e+00> : vector<16x48xf32>
    %3 = tpu.matmul %1, %2, %cst {dimension_numbers = #tpu.dot_dimension_numbers<[1], [0], [0], [1], [0, 0, 1, 1], [], []>} : vector<16x18xbf16>, vector<18x48xbf16>, vector<16x48xf32> -> vector<16x48xf32>
    %c0_3 = arith.constant 0 : index
    %c0_4 = arith.constant 0 : index
    %4 = vector.load %arg3[%c0_3, %c0_4] : memref<1x48xf32, #tpu.memory_space<vmem>>, vector<1x48xf32>
    %5 = vector.broadcast %4 : vector<1x48xf32> to vector<16x48xf32>
    %6 = arith.addf %3, %5 : vector<16x48xf32>
    %7 = arith.truncf %6 : vector<16x48xf32> to vector<16x48xbf16>
    %c0_5 = arith.constant 0 : index
    %c0_6 = arith.constant 0 : index
    %8 = vector.load %arg4[%c0_5, %c0_6] : memref<16x48xbf16, #tpu.memory_space<vmem>>, vector<16x48xbf16>
    tpu.vector_store %arg4[%c0_5, %c0_6], %7 {strides = array<i32>} : memref<16x48xbf16, #tpu.memory_space<vmem>>, vector<16x48xbf16>,
    return
  }
  func.func @transform_0(%arg0: i32) -> (i32, i32) {
    %c0_i32 = arith.constant 0 : i32
    %c0_i32_0 = arith.constant 0 : i32
    return %arg0, %c0_i32 : i32, i32
  }
  func.func @transform_1(%arg0: i32) -> (i32, i32) {
    %c0_i32 = arith.constant 0 : i32
    %c0_i32_0 = arith.constant 0 : i32
    %c0_i32_1 = arith.constant 0 : i32
    return %c0_i32, %c0_i32_0 : i32, i32
  }
  func.func @transform_2(%arg0: i32) -> (i32, i32) {
    %c0_i32 = arith.constant 0 : i32
    %c0_i32_0 = arith.constant 0 : i32
    %c0_i32_1 = arith.constant 0 : i32
    return %c0_i32, %c0_i32_0 : i32, i32
  }
  func.func @transform_3(%arg0: i32) -> (i32, i32) {
    %c0_i32 = arith.constant 0 : i32
    %c0_i32_0 = arith.constant 0 : i32
    return %arg0, %c0_i32 : i32, i32
  }
}

module attributes {stable_mosaic.version = 11 : i64} {
  func.func @dense_kernel(%arg0: i32, %arg1: memref<16x32xbf16, #tpu.memory_space<vmem>>, %arg2: memref<32x48xbf16, #tpu.memory_space<vmem>>, %arg3: memref<1x48xf32, #tpu.memory_space<vmem>>, %arg4: memref<16x48xbf16, #tpu.memory_space<vmem>>) attributes {dimension_semantics = [#tpu.dimension_semantics<parallel>], iteration_bounds = array<i64: 1>, scalar_prefetch = 0 : i64, scratch_operands = 0 : i64, tpu.core_type = #tpu.core_type<tc>, window_params = [{transform_indices = @transform_0, window_bounds = array<i64: 16, 32>}, {pipeline_mode = #tpu.pipeline_mode<synchronous>, transform_indices = @transform_1, window_bounds = array<i64: 32, 48>}, {pipeline_mode = #tpu.pipeline_mode<synchronous>, transform_indices = @transform_2, window_bounds = array<i64: 1, 48>}, {transform_indices = @transform_3, window_bounds = array<i64: 16, 48>}]} {
    %c0 = arith.constant 0 : index
    %c0_0 = arith.constant 0 : index
    %0 = vector.load %arg1[%c0, %c0_0] : memref<16x32xbf16, #tpu.memory_space<vmem>>, vector<16x32xbf16>
    %c0_1 = arith.constant 0 : index
    %c0_2 = arith.constant 0 : index
    %1 = vector.load %arg2[%c0_1, %c0_2] : memref<32x48xbf16, #tpu.memory_space<vmem>>, vector<32x48xbf16>
    %cst = arith.constant dense<0.000000e+00> : vector<16x48xf32>
    %2 = tpu.matmul %0, %1, %cst {dimension_numbers = #tpu.dot_dimension_numbers<[1], [0], [0], [1], [0, 0, 1, 1], [], []>} : vector<16x32xbf16>, vector<32x48xbf16>, vector<16x48xf32> -> vector<16x48xf32>
    %c0_3 = arith.constant 0 : index
    %c0_4 = arith.constant 0 : index
    %3 = vector.load %arg3[%c0_3, %c0_4] : memref<1x48xf32, #tpu.memory_space<vmem>>, vector<1x48xf32>
    %4 = vector.broadcast %3 : vector<1x48xf32> to vector<16x48xf32>
    %5 = arith.addf %2, %4 : vector<16x48xf32>
    %6 = arith.truncf %5 : vector<16x48xf32> to vector<16x48xbf16>
    %c0_5 = arith.constant 0 : index
    %c0_6 = arith.constant 0 : index
    %7 = vector.load %arg4[%c0_5, %c0_6] : memref<16x48xbf16, #tpu.memory_space<vmem>>, vector<16x48xbf16>
    tpu.vector_store %arg4[%c0_5, %c0_6], %6 {strides = array<i32>} : memref<16x48xbf16, #tpu.memory_space<vmem>>, vector<16x48xbf16>,
    return
  }
  func.func @transform_0(%arg0: i32) -> (i32, i32) {
    %c0_i32 = arith.constant 0 : i32
    %c0_i32_0 = arith.constant 0 : i32
    return %arg0, %c0_i32 : i32, i32
  }
  func.func @transform_1(%arg0: i32) -> (i32, i32) {
    %c0_i32 = arith.constant 0 : i32
    %c0_i32_0 = arith.constant 0 : i32
    %c0_i32_1 = arith.constant 0 : i32
    return %c0_i32, %c0_i32_0 : i32, i32
  }
  func.func @transform_2(%arg0: i32) -> (i32, i32) {
    %c0_i32 = arith.constant 0 : i32
    %c0_i32_0 = arith.constant 0 : i32
    %c0_i32_1 = arith.constant 0 : i32
    return %c0_i32, %c0_i32_0 : i32, i32
  }
  func.func @transform_3(%arg0: i32) -> (i32, i32) {
    %c0_i32 = arith.constant 0 : i32
    %c0_i32_0 = arith.constant 0 : i32
    return %arg0, %c0_i32 : i32, i32
  }
}

module attributes {stable_mosaic.version = 11 : i64} {
  func.func @bigru_scan_kernel(%arg0: i32, %arg1: memref<8x2x48xbf16, #tpu.memory_space<vmem>>, %arg2: memref<8x2x48xbf16, #tpu.memory_space<vmem>>, %arg3: memref<2x16x48xbf16, #tpu.memory_space<vmem>>, %arg4: memref<2x1x48xf32, #tpu.memory_space<vmem>>, %arg5: memref<8x2x16xbf16, #tpu.memory_space<vmem>>, %arg6: memref<8x2x16xbf16, #tpu.memory_space<vmem>>, %arg7: memref<2x16xf32, #tpu.memory_space<vmem>>, %arg8: memref<2x16xf32, #tpu.memory_space<vmem>>) attributes {dimension_semantics = [#tpu.dimension_semantics<arbitrary>], iteration_bounds = array<i64: 1>, scalar_prefetch = 0 : i64, scratch_operands = 2 : i64, tpu.core_type = #tpu.core_type<tc>, window_params = [{transform_indices = @transform_0, window_bounds = array<i64: 8, 2, 48>}, {transform_indices = @transform_1, window_bounds = array<i64: 8, 2, 48>}, {pipeline_mode = #tpu.pipeline_mode<synchronous>, transform_indices = @transform_2, window_bounds = array<i64: 2, 16, 48>}, {pipeline_mode = #tpu.pipeline_mode<synchronous>, transform_indices = @transform_3, window_bounds = array<i64: 2, 1, 48>}, {transform_indices = @transform_4, window_bounds = array<i64: 8, 2, 16>}, {transform_indices = @transform_5, window_bounds = array<i64: 8, 2, 16>}]} {
    %c0_i32 = arith.constant 0 : i32
    %0 = arith.cmpi eq, %arg0, %c0_i32 : i32
    %1 = arith.extui %0 : i1 to i32
    %c0_i32_0 = arith.constant 0 : i32
    %2 = arith.cmpi ne, %1, %c0_i32_0 : i32
    scf.if %2 {
      %cst_211 = arith.constant 0.000000e+00 : f32
      %675 = vector.broadcast %cst_211 : f32 to vector<2x16xf32>
      %c0_212 = arith.constant 0 : index
      %c0_213 = arith.constant 0 : index
      %676 = vector.load %arg7[%c0_212, %c0_213] : memref<2x16xf32, #tpu.memory_space<vmem>>, vector<2x16xf32>
      tpu.vector_store %arg7[%c0_212, %c0_213], %675 {strides = array<i32>} : memref<2x16xf32, #tpu.memory_space<vmem>>, vector<2x16xf32>,
      %cst_214 = arith.constant 0.000000e+00 : f32
      %677 = vector.broadcast %cst_214 : f32 to vector<2x16xf32>
      %c0_215 = arith.constant 0 : index
      %c0_216 = arith.constant 0 : index
      %678 = vector.load %arg8[%c0_215, %c0_216] : memref<2x16xf32, #tpu.memory_space<vmem>>, vector<2x16xf32>
      tpu.vector_store %arg8[%c0_215, %c0_216], %677 {strides = array<i32>} : memref<2x16xf32, #tpu.memory_space<vmem>>, vector<2x16xf32>,
    } else {
    }
    %c0 = arith.constant 0 : index
    %c0_1 = arith.constant 0 : index
    %c0_2 = arith.constant 0 : index
    %3 = vector.load %arg3[%c0, %c0_1, %c0_2] : memref<2x16x48xbf16, #tpu.memory_space<vmem>>, vector<1x16x48xbf16>
    %4 = vector.shape_cast %3 : vector<1x16x48xbf16> to vector<16x48xbf16>
    %c1 = arith.constant 1 : index
    %c0_3 = arith.constant 0 : index
    %c0_4 = arith.constant 0 : index
    %5 = vector.load %arg3[%c1, %c0_3, %c0_4] : memref<2x16x48xbf16, #tpu.memory_space<vmem>>, vector<1x16x48xbf16>
    %6 = vector.shape_cast %5 : vector<1x16x48xbf16> to vector<16x48xbf16>
    %c0_5 = arith.constant 0 : index
    %c0_6 = arith.constant 0 : index
    %c0_7 = arith.constant 0 : index
    %7 = vector.load %arg4[%c0_5, %c0_6, %c0_7] : memref<2x1x48xf32, #tpu.memory_space<vmem>>, vector<1x1x48xf32>
    %8 = vector.shape_cast %7 : vector<1x1x48xf32> to vector<1x48xf32>
    %c1_8 = arith.constant 1 : index
    %c0_9 = arith.constant 0 : index
    %c0_10 = arith.constant 0 : index
    %9 = vector.load %arg4[%c1_8, %c0_9, %c0_10] : memref<2x1x48xf32, #tpu.memory_space<vmem>>, vector<1x1x48xf32>
    %10 = vector.shape_cast %9 : vector<1x1x48xf32> to vector<1x48xf32>
    %c0_i32_11 = arith.constant 0 : i32
    %c7_i32 = arith.constant 7 : i32
    %11 = arith.subi %c7_i32, %c0_i32_11 : i32
    %12 = arith.index_cast %c0_i32_11 : i32 to index
    %c0_12 = arith.constant 0 : index
    %c0_13 = arith.constant 0 : index
    %13 = vector.load %arg1[%12, %c0_12, %c0_13] : memref<8x2x48xbf16, #tpu.memory_space<vmem>>, vector<1x2x48xbf16>
    %14 = vector.shape_cast %13 : vector<1x2x48xbf16> to vector<2x48xbf16>
    %15 = arith.extf %14 : vector<2x48xbf16> to vector<2x48xf32>
    %c0_14 = arith.constant 0 : index
    %c0_15 = arith.constant 0 : index
    %16 = vector.load %arg7[%c0_14, %c0_15] : memref<2x16xf32, #tpu.memory_space<vmem>>, vector<2x16xf32>
    %17 = arith.truncf %16 : vector<2x16xf32> to vector<2x16xbf16>
    %cst = arith.constant dense<0.000000e+00> : vector<2x48xf32>
    %18 = tpu.matmul %17, %4, %cst {dimension_numbers = #tpu.dot_dimension_numbers<[1], [0], [0], [1], [0, 0, 1, 1], [], []>} : vector<2x16xbf16>, vector<16x48xbf16>, vector<2x48xf32> -> vector<2x48xf32>
    %19 = vector.broadcast %8 : vector<1x48xf32> to vector<2x48xf32>
    %20 = arith.addf %18, %19 : vector<2x48xf32>
    %21 = vector.extract_strided_slice %15 {offsets = [0, 0], sizes = [2, 16], strides = [1, 1]} : vector<2x48xf32> to vector<2x16xf32>
    %22 = vector.extract_strided_slice %20 {offsets = [0, 0], sizes = [2, 16], strides = [1, 1]} : vector<2x48xf32> to vector<2x16xf32>
    %23 = arith.addf %21, %22 : vector<2x16xf32>
    %24 = arith.negf %23 : vector<2x16xf32>
    %25 = math.exp %24 : vector<2x16xf32>
    %cst_16 = arith.constant 1.000000e+00 : f32
    %26 = vector.broadcast %cst_16 : f32 to vector<2x16xf32>
    %27 = arith.addf %26, %25 : vector<2x16xf32>
    %28 = arith.divf %26, %27 : vector<2x16xf32>
    %29 = vector.extract_strided_slice %15 {offsets = [0, 16], sizes = [2, 16], strides = [1, 1]} : vector<2x48xf32> to vector<2x16xf32>
    %30 = vector.extract_strided_slice %20 {offsets = [0, 16], sizes = [2, 16], strides = [1, 1]} : vector<2x48xf32> to vector<2x16xf32>
    %31 = arith.addf %29, %30 : vector<2x16xf32>
    %32 = arith.negf %31 : vector<2x16xf32>
    %33 = math.exp %32 : vector<2x16xf32>
    %cst_17 = arith.constant 1.000000e+00 : f32
    %34 = vector.broadcast %cst_17 : f32 to vector<2x16xf32>
    %35 = arith.addf %34, %33 : vector<2x16xf32>
    %36 = arith.divf %34, %35 : vector<2x16xf32>
    %37 = vector.extract_strided_slice %15 {offsets = [0, 32], sizes = [2, 16], strides = [1, 1]} : vector<2x48xf32> to vector<2x16xf32>
    %38 = vector.extract_strided_slice %20 {offsets = [0, 32], sizes = [2, 16], strides = [1, 1]} : vector<2x48xf32> to vector<2x16xf32>
    %39 = arith.mulf %28, %38 : vector<2x16xf32>
    %40 = arith.addf %37, %39 : vector<2x16xf32>
    %41 = math.tanh %40 : vector<2x16xf32>
    %cst_18 = arith.constant 1.000000e+00 : f32
    %42 = vector.broadcast %cst_18 : f32 to vector<2x16xf32>
    %43 = arith.subf %42, %36 : vector<2x16xf32>
    %44 = arith.mulf %43, %41 : vector<2x16xf32>
    %45 = arith.mulf %36, %16 : vector<2x16xf32>
    %46 = arith.addf %44, %45 : vector<2x16xf32>
    %47 = arith.index_cast %11 : i32 to index
    %c0_19 = arith.constant 0 : index
    %c0_20 = arith.constant 0 : index
    %48 = vector.load %arg2[%47, %c0_19, %c0_20] : memref<8x2x48xbf16, #tpu.memory_space<vmem>>, vector<1x2x48xbf16>
    %49 = vector.shape_cast %48 : vector<1x2x48xbf16> to vector<2x48xbf16>
    %50 = arith.extf %49 : vector<2x48xbf16> to vector<2x48xf32>
    %c0_21 = arith.constant 0 : index
    %c0_22 = arith.constant 0 : index
    %51 = vector.load %arg8[%c0_21, %c0_22] : memref<2x16xf32, #tpu.memory_space<vmem>>, vector<2x16xf32>
    %52 = arith.truncf %51 : vector<2x16xf32> to vector<2x16xbf16>
    %cst_23 = arith.constant dense<0.000000e+00> : vector<2x48xf32>
    %53 = tpu.matmul %52, %6, %cst_23 {dimension_numbers = #tpu.dot_dimension_numbers<[1], [0], [0], [1], [0, 0, 1, 1], [], []>} : vector<2x16xbf16>, vector<16x48xbf16>, vector<2x48xf32> -> vector<2x48xf32>
    %54 = vector.broadcast %10 : vector<1x48xf32> to vector<2x48xf32>
    %55 = arith.addf %53, %54 : vector<2x48xf32>
    %56 = vector.extract_strided_slice %50 {offsets = [0, 0], sizes = [2, 16], strides = [1, 1]} : vector<2x48xf32> to vector<2x16xf32>
    %57 = vector.extract_strided_slice %55 {offsets = [0, 0], sizes = [2, 16], strides = [1, 1]} : vector<2x48xf32> to vector<2x16xf32>
    %58 = arith.addf %56, %57 : vector<2x16xf32>
    %59 = arith.negf %58 : vector<2x16xf32>
    %60 = math.exp %59 : vector<2x16xf32>
    %cst_24 = arith.constant 1.000000e+00 : f32
    %61 = vector.broadcast %cst_24 : f32 to vector<2x16xf32>
    %62 = arith.addf %61, %60 : vector<2x16xf32>
    %63 = arith.divf %61, %62 : vector<2x16xf32>
    %64 = vector.extract_strided_slice %50 {offsets = [0, 16], sizes = [2, 16], strides = [1, 1]} : vector<2x48xf32> to vector<2x16xf32>
    %65 = vector.extract_strided_slice %55 {offsets = [0, 16], sizes = [2, 16], strides = [1, 1]} : vector<2x48xf32> to vector<2x16xf32>
    %66 = arith.addf %64, %65 : vector<2x16xf32>
    %67 = arith.negf %66 : vector<2x16xf32>
    %68 = math.exp %67 : vector<2x16xf32>
    %cst_25 = arith.constant 1.000000e+00 : f32
    %69 = vector.broadcast %cst_25 : f32 to vector<2x16xf32>
    %70 = arith.addf %69, %68 : vector<2x16xf32>
    %71 = arith.divf %69, %70 : vector<2x16xf32>
    %72 = vector.extract_strided_slice %50 {offsets = [0, 32], sizes = [2, 16], strides = [1, 1]} : vector<2x48xf32> to vector<2x16xf32>
    %73 = vector.extract_strided_slice %55 {offsets = [0, 32], sizes = [2, 16], strides = [1, 1]} : vector<2x48xf32> to vector<2x16xf32>
    %74 = arith.mulf %63, %73 : vector<2x16xf32>
    %75 = arith.addf %72, %74 : vector<2x16xf32>
    %76 = math.tanh %75 : vector<2x16xf32>
    %cst_26 = arith.constant 1.000000e+00 : f32
    %77 = vector.broadcast %cst_26 : f32 to vector<2x16xf32>
    %78 = arith.subf %77, %71 : vector<2x16xf32>
    %79 = arith.mulf %78, %76 : vector<2x16xf32>
    %80 = arith.mulf %71, %51 : vector<2x16xf32>
    %81 = arith.addf %79, %80 : vector<2x16xf32>
    %c0_27 = arith.constant 0 : index
    %c0_28 = arith.constant 0 : index
    %82 = vector.load %arg7[%c0_27, %c0_28] : memref<2x16xf32, #tpu.memory_space<vmem>>, vector<2x16xf32>
    tpu.vector_store %arg7[%c0_27, %c0_28], %46 {strides = array<i32>} : memref<2x16xf32, #tpu.memory_space<vmem>>, vector<2x16xf32>,
    %c0_29 = arith.constant 0 : index
    %c0_30 = arith.constant 0 : index
    %83 = vector.load %arg8[%c0_29, %c0_30] : memref<2x16xf32, #tpu.memory_space<vmem>>, vector<2x16xf32>
    tpu.vector_store %arg8[%c0_29, %c0_30], %81 {strides = array<i32>} : memref<2x16xf32, #tpu.memory_space<vmem>>, vector<2x16xf32>,
    %84 = arith.truncf %46 : vector<2x16xf32> to vector<2x16xbf16>
    %85 = arith.index_cast %c0_i32_11 : i32 to index
    %c0_31 = arith.constant 0 : index
    %c0_32 = arith.constant 0 : index
    %86 = vector.load %arg5[%85, %c0_31, %c0_32] : memref<8x2x16xbf16, #tpu.memory_space<vmem>>, vector<1x2x16xbf16>
    %87 = vector.shape_cast %86 : vector<1x2x16xbf16> to vector<2x16xbf16>
    %88 = vector.shape_cast %84 : vector<2x16xbf16> to vector<1x2x16xbf16>
    tpu.vector_store %arg5[%85, %c0_31, %c0_32], %88 {strides = array<i32>} : memref<8x2x16xbf16, #tpu.memory_space<vmem>>, vector<1x2x16xbf16>,
    %89 = arith.truncf %81 : vector<2x16xf32> to vector<2x16xbf16>
    %90 = arith.index_cast %11 : i32 to index
    %c0_33 = arith.constant 0 : index
    %c0_34 = arith.constant 0 : index
    %91 = vector.load %arg6[%90, %c0_33, %c0_34] : memref<8x2x16xbf16, #tpu.memory_space<vmem>>, vector<1x2x16xbf16>
    %92 = vector.shape_cast %91 : vector<1x2x16xbf16> to vector<2x16xbf16>
    %93 = vector.shape_cast %89 : vector<2x16xbf16> to vector<1x2x16xbf16>
    tpu.vector_store %arg6[%90, %c0_33, %c0_34], %93 {strides = array<i32>} : memref<8x2x16xbf16, #tpu.memory_space<vmem>>, vector<1x2x16xbf16>,
    %c1_i32 = arith.constant 1 : i32
    %c7_i32_35 = arith.constant 7 : i32
    %94 = arith.subi %c7_i32_35, %c1_i32 : i32
    %95 = arith.index_cast %c1_i32 : i32 to index
    %c0_36 = arith.constant 0 : index
    %c0_37 = arith.constant 0 : index
    %96 = vector.load %arg1[%95, %c0_36, %c0_37] : memref<8x2x48xbf16, #tpu.memory_space<vmem>>, vector<1x2x48xbf16>
    %97 = vector.shape_cast %96 : vector<1x2x48xbf16> to vector<2x48xbf16>
    %98 = arith.extf %97 : vector<2x48xbf16> to vector<2x48xf32>
    %c0_38 = arith.constant 0 : index
    %c0_39 = arith.constant 0 : index
    %99 = vector.load %arg7[%c0_38, %c0_39] : memref<2x16xf32, #tpu.memory_space<vmem>>, vector<2x16xf32>
    %100 = arith.truncf %99 : vector<2x16xf32> to vector<2x16xbf16>
    %cst_40 = arith.constant dense<0.000000e+00> : vector<2x48xf32>
    %101 = tpu.matmul %100, %4, %cst_40 {dimension_numbers = #tpu.dot_dimension_numbers<[1], [0], [0], [1], [0, 0, 1, 1], [], []>} : vector<2x16xbf16>, vector<16x48xbf16>, vector<2x48xf32> -> vector<2x48xf32>
    %102 = vector.broadcast %8 : vector<1x48xf32> to vector<2x48xf32>
    %103 = arith.addf %101, %102 : vector<2x48xf32>
    %104 = vector.extract_strided_slice %98 {offsets = [0, 0], sizes = [2, 16], strides = [1, 1]} : vector<2x48xf32> to vector<2x16xf32>
    %105 = vector.extract_strided_slice %103 {offsets = [0, 0], sizes = [2, 16], strides = [1, 1]} : vector<2x48xf32> to vector<2x16xf32>
    %106 = arith.addf %104, %105 : vector<2x16xf32>
    %107 = arith.negf %106 : vector<2x16xf32>
    %108 = math.exp %107 : vector<2x16xf32>
    %cst_41 = arith.constant 1.000000e+00 : f32
    %109 = vector.broadcast %cst_41 : f32 to vector<2x16xf32>
    %110 = arith.addf %109, %108 : vector<2x16xf32>
    %111 = arith.divf %109, %110 : vector<2x16xf32>
    %112 = vector.extract_strided_slice %98 {offsets = [0, 16], sizes = [2, 16], strides = [1, 1]} : vector<2x48xf32> to vector<2x16xf32>
    %113 = vector.extract_strided_slice %103 {offsets = [0, 16], sizes = [2, 16], strides = [1, 1]} : vector<2x48xf32> to vector<2x16xf32>
    %114 = arith.addf %112, %113 : vector<2x16xf32>
    %115 = arith.negf %114 : vector<2x16xf32>
    %116 = math.exp %115 : vector<2x16xf32>
    %cst_42 = arith.constant 1.000000e+00 : f32
    %117 = vector.broadcast %cst_42 : f32 to vector<2x16xf32>
    %118 = arith.addf %117, %116 : vector<2x16xf32>
    %119 = arith.divf %117, %118 : vector<2x16xf32>
    %120 = vector.extract_strided_slice %98 {offsets = [0, 32], sizes = [2, 16], strides = [1, 1]} : vector<2x48xf32> to vector<2x16xf32>
    %121 = vector.extract_strided_slice %103 {offsets = [0, 32], sizes = [2, 16], strides = [1, 1]} : vector<2x48xf32> to vector<2x16xf32>
    %122 = arith.mulf %111, %121 : vector<2x16xf32>
    %123 = arith.addf %120, %122 : vector<2x16xf32>
    %124 = math.tanh %123 : vector<2x16xf32>
    %cst_43 = arith.constant 1.000000e+00 : f32
    %125 = vector.broadcast %cst_43 : f32 to vector<2x16xf32>
    %126 = arith.subf %125, %119 : vector<2x16xf32>
    %127 = arith.mulf %126, %124 : vector<2x16xf32>
    %128 = arith.mulf %119, %99 : vector<2x16xf32>
    %129 = arith.addf %127, %128 : vector<2x16xf32>
    %130 = arith.index_cast %94 : i32 to index
    %c0_44 = arith.constant 0 : index
    %c0_45 = arith.constant 0 : index
    %131 = vector.load %arg2[%130, %c0_44, %c0_45] : memref<8x2x48xbf16, #tpu.memory_space<vmem>>, vector<1x2x48xbf16>
    %132 = vector.shape_cast %131 : vector<1x2x48xbf16> to vector<2x48xbf16>
    %133 = arith.extf %132 : vector<2x48xbf16> to vector<2x48xf32>
    %c0_46 = arith.constant 0 : index
    %c0_47 = arith.constant 0 : index
    %134 = vector.load %arg8[%c0_46, %c0_47] : memref<2x16xf32, #tpu.memory_space<vmem>>, vector<2x16xf32>
    %135 = arith.truncf %134 : vector<2x16xf32> to vector<2x16xbf16>
    %cst_48 = arith.constant dense<0.000000e+00> : vector<2x48xf32>
    %136 = tpu.matmul %135, %6, %cst_48 {dimension_numbers = #tpu.dot_dimension_numbers<[1], [0], [0], [1], [0, 0, 1, 1], [], []>} : vector<2x16xbf16>, vector<16x48xbf16>, vector<2x48xf32> -> vector<2x48xf32>
    %137 = vector.broadcast %10 : vector<1x48xf32> to vector<2x48xf32>
    %138 = arith.addf %136, %137 : vector<2x48xf32>
    %139 = vector.extract_strided_slice %133 {offsets = [0, 0], sizes = [2, 16], strides = [1, 1]} : vector<2x48xf32> to vector<2x16xf32>
    %140 = vector.extract_strided_slice %138 {offsets = [0, 0], sizes = [2, 16], strides = [1, 1]} : vector<2x48xf32> to vector<2x16xf32>
    %141 = arith.addf %139, %140 : vector<2x16xf32>
    %142 = arith.negf %141 : vector<2x16xf32>
    %143 = math.exp %142 : vector<2x16xf32>
    %cst_49 = arith.constant 1.000000e+00 : f32
    %144 = vector.broadcast %cst_49 : f32 to vector<2x16xf32>
    %145 = arith.addf %144, %143 : vector<2x16xf32>
    %146 = arith.divf %144, %145 : vector<2x16xf32>
    %147 = vector.extract_strided_slice %133 {offsets = [0, 16], sizes = [2, 16], strides = [1, 1]} : vector<2x48xf32> to vector<2x16xf32>
    %148 = vector.extract_strided_slice %138 {offsets = [0, 16], sizes = [2, 16], strides = [1, 1]} : vector<2x48xf32> to vector<2x16xf32>
    %149 = arith.addf %147, %148 : vector<2x16xf32>
    %150 = arith.negf %149 : vector<2x16xf32>
    %151 = math.exp %150 : vector<2x16xf32>
    %cst_50 = arith.constant 1.000000e+00 : f32
    %152 = vector.broadcast %cst_50 : f32 to vector<2x16xf32>
    %153 = arith.addf %152, %151 : vector<2x16xf32>
    %154 = arith.divf %152, %153 : vector<2x16xf32>
    %155 = vector.extract_strided_slice %133 {offsets = [0, 32], sizes = [2, 16], strides = [1, 1]} : vector<2x48xf32> to vector<2x16xf32>
    %156 = vector.extract_strided_slice %138 {offsets = [0, 32], sizes = [2, 16], strides = [1, 1]} : vector<2x48xf32> to vector<2x16xf32>
    %157 = arith.mulf %146, %156 : vector<2x16xf32>
    %158 = arith.addf %155, %157 : vector<2x16xf32>
    %159 = math.tanh %158 : vector<2x16xf32>
    %cst_51 = arith.constant 1.000000e+00 : f32
    %160 = vector.broadcast %cst_51 : f32 to vector<2x16xf32>
    %161 = arith.subf %160, %154 : vector<2x16xf32>
    %162 = arith.mulf %161, %159 : vector<2x16xf32>
    %163 = arith.mulf %154, %134 : vector<2x16xf32>
    %164 = arith.addf %162, %163 : vector<2x16xf32>
    %c0_52 = arith.constant 0 : index
    %c0_53 = arith.constant 0 : index
    %165 = vector.load %arg7[%c0_52, %c0_53] : memref<2x16xf32, #tpu.memory_space<vmem>>, vector<2x16xf32>
    tpu.vector_store %arg7[%c0_52, %c0_53], %129 {strides = array<i32>} : memref<2x16xf32, #tpu.memory_space<vmem>>, vector<2x16xf32>,
    %c0_54 = arith.constant 0 : index
    %c0_55 = arith.constant 0 : index
    %166 = vector.load %arg8[%c0_54, %c0_55] : memref<2x16xf32, #tpu.memory_space<vmem>>, vector<2x16xf32>
    tpu.vector_store %arg8[%c0_54, %c0_55], %164 {strides = array<i32>} : memref<2x16xf32, #tpu.memory_space<vmem>>, vector<2x16xf32>,
    %167 = arith.truncf %129 : vector<2x16xf32> to vector<2x16xbf16>
    %168 = arith.index_cast %c1_i32 : i32 to index
    %c0_56 = arith.constant 0 : index
    %c0_57 = arith.constant 0 : index
    %169 = vector.load %arg5[%168, %c0_56, %c0_57] : memref<8x2x16xbf16, #tpu.memory_space<vmem>>, vector<1x2x16xbf16>
    %170 = vector.shape_cast %169 : vector<1x2x16xbf16> to vector<2x16xbf16>
    %171 = vector.shape_cast %167 : vector<2x16xbf16> to vector<1x2x16xbf16>
    tpu.vector_store %arg5[%168, %c0_56, %c0_57], %171 {strides = array<i32>} : memref<8x2x16xbf16, #tpu.memory_space<vmem>>, vector<1x2x16xbf16>,
    %172 = arith.truncf %164 : vector<2x16xf32> to vector<2x16xbf16>
    %173 = arith.index_cast %94 : i32 to index
    %c0_58 = arith.constant 0 : index
    %c0_59 = arith.constant 0 : index
    %174 = vector.load %arg6[%173, %c0_58, %c0_59] : memref<8x2x16xbf16, #tpu.memory_space<vmem>>, vector<1x2x16xbf16>
    %175 = vector.shape_cast %174 : vector<1x2x16xbf16> to vector<2x16xbf16>
    %176 = vector.shape_cast %172 : vector<2x16xbf16> to vector<1x2x16xbf16>
    tpu.vector_store %arg6[%173, %c0_58, %c0_59], %176 {strides = array<i32>} : memref<8x2x16xbf16, #tpu.memory_space<vmem>>, vector<1x2x16xbf16>,
    %c2_i32 = arith.constant 2 : i32
    %c7_i32_60 = arith.constant 7 : i32
    %177 = arith.subi %c7_i32_60, %c2_i32 : i32
    %178 = arith.index_cast %c2_i32 : i32 to index
    %c0_61 = arith.constant 0 : index
    %c0_62 = arith.constant 0 : index
    %179 = vector.load %arg1[%178, %c0_61, %c0_62] : memref<8x2x48xbf16, #tpu.memory_space<vmem>>, vector<1x2x48xbf16>
    %180 = vector.shape_cast %179 : vector<1x2x48xbf16> to vector<2x48xbf16>
    %181 = arith.extf %180 : vector<2x48xbf16> to vector<2x48xf32>
    %c0_63 = arith.constant 0 : index
    %c0_64 = arith.constant 0 : index
    %182 = vector.load %arg7[%c0_63, %c0_64] : memref<2x16xf32, #tpu.memory_space<vmem>>, vector<2x16xf32>
    %183 = arith.truncf %182 : vector<2x16xf32> to vector<2x16xbf16>
    %cst_65 = arith.constant dense<0.000000e+00> : vector<2x48xf32>
    %184 = tpu.matmul %183, %4, %cst_65 {dimension_numbers = #tpu.dot_dimension_numbers<[1], [0], [0], [1], [0, 0, 1, 1], [], []>} : vector<2x16xbf16>, vector<16x48xbf16>, vector<2x48xf32> -> vector<2x48xf32>
    %185 = vector.broadcast %8 : vector<1x48xf32> to vector<2x48xf32>
    %186 = arith.addf %184, %185 : vector<2x48xf32>
    %187 = vector.extract_strided_slice %181 {offsets = [0, 0], sizes = [2, 16], strides = [1, 1]} : vector<2x48xf32> to vector<2x16xf32>
    %188 = vector.extract_strided_slice %186 {offsets = [0, 0], sizes = [2, 16], strides = [1, 1]} : vector<2x48xf32> to vector<2x16xf32>
    %189 = arith.addf %187, %188 : vector<2x16xf32>
    %190 = arith.negf %189 : vector<2x16xf32>
    %191 = math.exp %190 : vector<2x16xf32>
    %cst_66 = arith.constant 1.000000e+00 : f32
    %192 = vector.broadcast %cst_66 : f32 to vector<2x16xf32>
    %193 = arith.addf %192, %191 : vector<2x16xf32>
    %194 = arith.divf %192, %193 : vector<2x16xf32>
    %195 = vector.extract_strided_slice %181 {offsets = [0, 16], sizes = [2, 16], strides = [1, 1]} : vector<2x48xf32> to vector<2x16xf32>
    %196 = vector.extract_strided_slice %186 {offsets = [0, 16], sizes = [2, 16], strides = [1, 1]} : vector<2x48xf32> to vector<2x16xf32>
    %197 = arith.addf %195, %196 : vector<2x16xf32>
    %198 = arith.negf %197 : vector<2x16xf32>
    %199 = math.exp %198 : vector<2x16xf32>
    %cst_67 = arith.constant 1.000000e+00 : f32
    %200 = vector.broadcast %cst_67 : f32 to vector<2x16xf32>
    %201 = arith.addf %200, %199 : vector<2x16xf32>
    %202 = arith.divf %200, %201 : vector<2x16xf32>
    %203 = vector.extract_strided_slice %181 {offsets = [0, 32], sizes = [2, 16], strides = [1, 1]} : vector<2x48xf32> to vector<2x16xf32>
    %204 = vector.extract_strided_slice %186 {offsets = [0, 32], sizes = [2, 16], strides = [1, 1]} : vector<2x48xf32> to vector<2x16xf32>
    %205 = arith.mulf %194, %204 : vector<2x16xf32>
    %206 = arith.addf %203, %205 : vector<2x16xf32>
    %207 = math.tanh %206 : vector<2x16xf32>
    %cst_68 = arith.constant 1.000000e+00 : f32
    %208 = vector.broadcast %cst_68 : f32 to vector<2x16xf32>
    %209 = arith.subf %208, %202 : vector<2x16xf32>
    %210 = arith.mulf %209, %207 : vector<2x16xf32>
    %211 = arith.mulf %202, %182 : vector<2x16xf32>
    %212 = arith.addf %210, %211 : vector<2x16xf32>
    %213 = arith.index_cast %177 : i32 to index
    %c0_69 = arith.constant 0 : index
    %c0_70 = arith.constant 0 : index
    %214 = vector.load %arg2[%213, %c0_69, %c0_70] : memref<8x2x48xbf16, #tpu.memory_space<vmem>>, vector<1x2x48xbf16>
    %215 = vector.shape_cast %214 : vector<1x2x48xbf16> to vector<2x48xbf16>
    %216 = arith.extf %215 : vector<2x48xbf16> to vector<2x48xf32>
    %c0_71 = arith.constant 0 : index
    %c0_72 = arith.constant 0 : index
    %217 = vector.load %arg8[%c0_71, %c0_72] : memref<2x16xf32, #tpu.memory_space<vmem>>, vector<2x16xf32>
    %218 = arith.truncf %217 : vector<2x16xf32> to vector<2x16xbf16>
    %cst_73 = arith.constant dense<0.000000e+00> : vector<2x48xf32>
    %219 = tpu.matmul %218, %6, %cst_73 {dimension_numbers = #tpu.dot_dimension_numbers<[1], [0], [0], [1], [0, 0, 1, 1], [], []>} : vector<2x16xbf16>, vector<16x48xbf16>, vector<2x48xf32> -> vector<2x48xf32>
    %220 = vector.broadcast %10 : vector<1x48xf32> to vector<2x48xf32>
    %221 = arith.addf %219, %220 : vector<2x48xf32>
    %222 = vector.extract_strided_slice %216 {offsets = [0, 0], sizes = [2, 16], strides = [1, 1]} : vector<2x48xf32> to vector<2x16xf32>
    %223 = vector.extract_strided_slice %221 {offsets = [0, 0], sizes = [2, 16], strides = [1, 1]} : vector<2x48xf32> to vector<2x16xf32>
    %224 = arith.addf %222, %223 : vector<2x16xf32>
    %225 = arith.negf %224 : vector<2x16xf32>
    %226 = math.exp %225 : vector<2x16xf32>
    %cst_74 = arith.constant 1.000000e+00 : f32
    %227 = vector.broadcast %cst_74 : f32 to vector<2x16xf32>
    %228 = arith.addf %227, %226 : vector<2x16xf32>
    %229 = arith.divf %227, %228 : vector<2x16xf32>
    %230 = vector.extract_strided_slice %216 {offsets = [0, 16], sizes = [2, 16], strides = [1, 1]} : vector<2x48xf32> to vector<2x16xf32>
    %231 = vector.extract_strided_slice %221 {offsets = [0, 16], sizes = [2, 16], strides = [1, 1]} : vector<2x48xf32> to vector<2x16xf32>
    %232 = arith.addf %230, %231 : vector<2x16xf32>
    %233 = arith.negf %232 : vector<2x16xf32>
    %234 = math.exp %233 : vector<2x16xf32>
    %cst_75 = arith.constant 1.000000e+00 : f32
    %235 = vector.broadcast %cst_75 : f32 to vector<2x16xf32>
    %236 = arith.addf %235, %234 : vector<2x16xf32>
    %237 = arith.divf %235, %236 : vector<2x16xf32>
    %238 = vector.extract_strided_slice %216 {offsets = [0, 32], sizes = [2, 16], strides = [1, 1]} : vector<2x48xf32> to vector<2x16xf32>
    %239 = vector.extract_strided_slice %221 {offsets = [0, 32], sizes = [2, 16], strides = [1, 1]} : vector<2x48xf32> to vector<2x16xf32>
    %240 = arith.mulf %229, %239 : vector<2x16xf32>
    %241 = arith.addf %238, %240 : vector<2x16xf32>
    %242 = math.tanh %241 : vector<2x16xf32>
    %cst_76 = arith.constant 1.000000e+00 : f32
    %243 = vector.broadcast %cst_76 : f32 to vector<2x16xf32>
    %244 = arith.subf %243, %237 : vector<2x16xf32>
    %245 = arith.mulf %244, %242 : vector<2x16xf32>
    %246 = arith.mulf %237, %217 : vector<2x16xf32>
    %247 = arith.addf %245, %246 : vector<2x16xf32>
    %c0_77 = arith.constant 0 : index
    %c0_78 = arith.constant 0 : index
    %248 = vector.load %arg7[%c0_77, %c0_78] : memref<2x16xf32, #tpu.memory_space<vmem>>, vector<2x16xf32>
    tpu.vector_store %arg7[%c0_77, %c0_78], %212 {strides = array<i32>} : memref<2x16xf32, #tpu.memory_space<vmem>>, vector<2x16xf32>,
    %c0_79 = arith.constant 0 : index
    %c0_80 = arith.constant 0 : index
    %249 = vector.load %arg8[%c0_79, %c0_80] : memref<2x16xf32, #tpu.memory_space<vmem>>, vector<2x16xf32>
    tpu.vector_store %arg8[%c0_79, %c0_80], %247 {strides = array<i32>} : memref<2x16xf32, #tpu.memory_space<vmem>>, vector<2x16xf32>,
    %250 = arith.truncf %212 : vector<2x16xf32> to vector<2x16xbf16>
    %251 = arith.index_cast %c2_i32 : i32 to index
    %c0_81 = arith.constant 0 : index
    %c0_82 = arith.constant 0 : index
    %252 = vector.load %arg5[%251, %c0_81, %c0_82] : memref<8x2x16xbf16, #tpu.memory_space<vmem>>, vector<1x2x16xbf16>
    %253 = vector.shape_cast %252 : vector<1x2x16xbf16> to vector<2x16xbf16>
    %254 = vector.shape_cast %250 : vector<2x16xbf16> to vector<1x2x16xbf16>
    tpu.vector_store %arg5[%251, %c0_81, %c0_82], %254 {strides = array<i32>} : memref<8x2x16xbf16, #tpu.memory_space<vmem>>, vector<1x2x16xbf16>,
    %255 = arith.truncf %247 : vector<2x16xf32> to vector<2x16xbf16>
    %256 = arith.index_cast %177 : i32 to index
    %c0_83 = arith.constant 0 : index
    %c0_84 = arith.constant 0 : index
    %257 = vector.load %arg6[%256, %c0_83, %c0_84] : memref<8x2x16xbf16, #tpu.memory_space<vmem>>, vector<1x2x16xbf16>
    %258 = vector.shape_cast %257 : vector<1x2x16xbf16> to vector<2x16xbf16>
    %259 = vector.shape_cast %255 : vector<2x16xbf16> to vector<1x2x16xbf16>
    tpu.vector_store %arg6[%256, %c0_83, %c0_84], %259 {strides = array<i32>} : memref<8x2x16xbf16, #tpu.memory_space<vmem>>, vector<1x2x16xbf16>,
    %c3_i32 = arith.constant 3 : i32
    %c7_i32_85 = arith.constant 7 : i32
    %260 = arith.subi %c7_i32_85, %c3_i32 : i32
    %261 = arith.index_cast %c3_i32 : i32 to index
    %c0_86 = arith.constant 0 : index
    %c0_87 = arith.constant 0 : index
    %262 = vector.load %arg1[%261, %c0_86, %c0_87] : memref<8x2x48xbf16, #tpu.memory_space<vmem>>, vector<1x2x48xbf16>
    %263 = vector.shape_cast %262 : vector<1x2x48xbf16> to vector<2x48xbf16>
    %264 = arith.extf %263 : vector<2x48xbf16> to vector<2x48xf32>
    %c0_88 = arith.constant 0 : index
    %c0_89 = arith.constant 0 : index
    %265 = vector.load %arg7[%c0_88, %c0_89] : memref<2x16xf32, #tpu.memory_space<vmem>>, vector<2x16xf32>
    %266 = arith.truncf %265 : vector<2x16xf32> to vector<2x16xbf16>
    %cst_90 = arith.constant dense<0.000000e+00> : vector<2x48xf32>
    %267 = tpu.matmul %266, %4, %cst_90 {dimension_numbers = #tpu.dot_dimension_numbers<[1], [0], [0], [1], [0, 0, 1, 1], [], []>} : vector<2x16xbf16>, vector<16x48xbf16>, vector<2x48xf32> -> vector<2x48xf32>
    %268 = vector.broadcast %8 : vector<1x48xf32> to vector<2x48xf32>
    %269 = arith.addf %267, %268 : vector<2x48xf32>
    %270 = vector.extract_strided_slice %264 {offsets = [0, 0], sizes = [2, 16], strides = [1, 1]} : vector<2x48xf32> to vector<2x16xf32>
    %271 = vector.extract_strided_slice %269 {offsets = [0, 0], sizes = [2, 16], strides = [1, 1]} : vector<2x48xf32> to vector<2x16xf32>
    %272 = arith.addf %270, %271 : vector<2x16xf32>
    %273 = arith.negf %272 : vector<2x16xf32>
    %274 = math.exp %273 : vector<2x16xf32>
    %cst_91 = arith.constant 1.000000e+00 : f32
    %275 = vector.broadcast %cst_91 : f32 to vector<2x16xf32>
    %276 = arith.addf %275, %274 : vector<2x16xf32>
    %277 = arith.divf %275, %276 : vector<2x16xf32>
    %278 = vector.extract_strided_slice %264 {offsets = [0, 16], sizes = [2, 16], strides = [1, 1]} : vector<2x48xf32> to vector<2x16xf32>
    %279 = vector.extract_strided_slice %269 {offsets = [0, 16], sizes = [2, 16], strides = [1, 1]} : vector<2x48xf32> to vector<2x16xf32>
    %280 = arith.addf %278, %279 : vector<2x16xf32>
    %281 = arith.negf %280 : vector<2x16xf32>
    %282 = math.exp %281 : vector<2x16xf32>
    %cst_92 = arith.constant 1.000000e+00 : f32
    %283 = vector.broadcast %cst_92 : f32 to vector<2x16xf32>
    %284 = arith.addf %283, %282 : vector<2x16xf32>
    %285 = arith.divf %283, %284 : vector<2x16xf32>
    %286 = vector.extract_strided_slice %264 {offsets = [0, 32], sizes = [2, 16], strides = [1, 1]} : vector<2x48xf32> to vector<2x16xf32>
    %287 = vector.extract_strided_slice %269 {offsets = [0, 32], sizes = [2, 16], strides = [1, 1]} : vector<2x48xf32> to vector<2x16xf32>
    %288 = arith.mulf %277, %287 : vector<2x16xf32>
    %289 = arith.addf %286, %288 : vector<2x16xf32>
    %290 = math.tanh %289 : vector<2x16xf32>
    %cst_93 = arith.constant 1.000000e+00 : f32
    %291 = vector.broadcast %cst_93 : f32 to vector<2x16xf32>
    %292 = arith.subf %291, %285 : vector<2x16xf32>
    %293 = arith.mulf %292, %290 : vector<2x16xf32>
    %294 = arith.mulf %285, %265 : vector<2x16xf32>
    %295 = arith.addf %293, %294 : vector<2x16xf32>
    %296 = arith.index_cast %260 : i32 to index
    %c0_94 = arith.constant 0 : index
    %c0_95 = arith.constant 0 : index
    %297 = vector.load %arg2[%296, %c0_94, %c0_95] : memref<8x2x48xbf16, #tpu.memory_space<vmem>>, vector<1x2x48xbf16>
    %298 = vector.shape_cast %297 : vector<1x2x48xbf16> to vector<2x48xbf16>
    %299 = arith.extf %298 : vector<2x48xbf16> to vector<2x48xf32>
    %c0_96 = arith.constant 0 : index
    %c0_97 = arith.constant 0 : index
    %300 = vector.load %arg8[%c0_96, %c0_97] : memref<2x16xf32, #tpu.memory_space<vmem>>, vector<2x16xf32>
    %301 = arith.truncf %300 : vector<2x16xf32> to vector<2x16xbf16>
    %cst_98 = arith.constant dense<0.000000e+00> : vector<2x48xf32>
    %302 = tpu.matmul %301, %6, %cst_98 {dimension_numbers = #tpu.dot_dimension_numbers<[1], [0], [0], [1], [0, 0, 1, 1], [], []>} : vector<2x16xbf16>, vector<16x48xbf16>, vector<2x48xf32> -> vector<2x48xf32>
    %303 = vector.broadcast %10 : vector<1x48xf32> to vector<2x48xf32>
    %304 = arith.addf %302, %303 : vector<2x48xf32>
    %305 = vector.extract_strided_slice %299 {offsets = [0, 0], sizes = [2, 16], strides = [1, 1]} : vector<2x48xf32> to vector<2x16xf32>
    %306 = vector.extract_strided_slice %304 {offsets = [0, 0], sizes = [2, 16], strides = [1, 1]} : vector<2x48xf32> to vector<2x16xf32>
    %307 = arith.addf %305, %306 : vector<2x16xf32>
    %308 = arith.negf %307 : vector<2x16xf32>
    %309 = math.exp %308 : vector<2x16xf32>
    %cst_99 = arith.constant 1.000000e+00 : f32
    %310 = vector.broadcast %cst_99 : f32 to vector<2x16xf32>
    %311 = arith.addf %310, %309 : vector<2x16xf32>
    %312 = arith.divf %310, %311 : vector<2x16xf32>
    %313 = vector.extract_strided_slice %299 {offsets = [0, 16], sizes = [2, 16], strides = [1, 1]} : vector<2x48xf32> to vector<2x16xf32>
    %314 = vector.extract_strided_slice %304 {offsets = [0, 16], sizes = [2, 16], strides = [1, 1]} : vector<2x48xf32> to vector<2x16xf32>
    %315 = arith.addf %313, %314 : vector<2x16xf32>
    %316 = arith.negf %315 : vector<2x16xf32>
    %317 = math.exp %316 : vector<2x16xf32>
    %cst_100 = arith.constant 1.000000e+00 : f32
    %318 = vector.broadcast %cst_100 : f32 to vector<2x16xf32>
    %319 = arith.addf %318, %317 : vector<2x16xf32>
    %320 = arith.divf %318, %319 : vector<2x16xf32>
    %321 = vector.extract_strided_slice %299 {offsets = [0, 32], sizes = [2, 16], strides = [1, 1]} : vector<2x48xf32> to vector<2x16xf32>
    %322 = vector.extract_strided_slice %304 {offsets = [0, 32], sizes = [2, 16], strides = [1, 1]} : vector<2x48xf32> to vector<2x16xf32>
    %323 = arith.mulf %312, %322 : vector<2x16xf32>
    %324 = arith.addf %321, %323 : vector<2x16xf32>
    %325 = math.tanh %324 : vector<2x16xf32>
    %cst_101 = arith.constant 1.000000e+00 : f32
    %326 = vector.broadcast %cst_101 : f32 to vector<2x16xf32>
    %327 = arith.subf %326, %320 : vector<2x16xf32>
    %328 = arith.mulf %327, %325 : vector<2x16xf32>
    %329 = arith.mulf %320, %300 : vector<2x16xf32>
    %330 = arith.addf %328, %329 : vector<2x16xf32>
    %c0_102 = arith.constant 0 : index
    %c0_103 = arith.constant 0 : index
    %331 = vector.load %arg7[%c0_102, %c0_103] : memref<2x16xf32, #tpu.memory_space<vmem>>, vector<2x16xf32>
    tpu.vector_store %arg7[%c0_102, %c0_103], %295 {strides = array<i32>} : memref<2x16xf32, #tpu.memory_space<vmem>>, vector<2x16xf32>,
    %c0_104 = arith.constant 0 : index
    %c0_105 = arith.constant 0 : index
    %332 = vector.load %arg8[%c0_104, %c0_105] : memref<2x16xf32, #tpu.memory_space<vmem>>, vector<2x16xf32>
    tpu.vector_store %arg8[%c0_104, %c0_105], %330 {strides = array<i32>} : memref<2x16xf32, #tpu.memory_space<vmem>>, vector<2x16xf32>,
    %333 = arith.truncf %295 : vector<2x16xf32> to vector<2x16xbf16>
    %334 = arith.index_cast %c3_i32 : i32 to index
    %c0_106 = arith.constant 0 : index
    %c0_107 = arith.constant 0 : index
    %335 = vector.load %arg5[%334, %c0_106, %c0_107] : memref<8x2x16xbf16, #tpu.memory_space<vmem>>, vector<1x2x16xbf16>
    %336 = vector.shape_cast %335 : vector<1x2x16xbf16> to vector<2x16xbf16>
    %337 = vector.shape_cast %333 : vector<2x16xbf16> to vector<1x2x16xbf16>
    tpu.vector_store %arg5[%334, %c0_106, %c0_107], %337 {strides = array<i32>} : memref<8x2x16xbf16, #tpu.memory_space<vmem>>, vector<1x2x16xbf16>,
    %338 = arith.truncf %330 : vector<2x16xf32> to vector<2x16xbf16>
    %339 = arith.index_cast %260 : i32 to index
    %c0_108 = arith.constant 0 : index
    %c0_109 = arith.constant 0 : index
    %340 = vector.load %arg6[%339, %c0_108, %c0_109] : memref<8x2x16xbf16, #tpu.memory_space<vmem>>, vector<1x2x16xbf16>
    %341 = vector.shape_cast %340 : vector<1x2x16xbf16> to vector<2x16xbf16>
    %342 = vector.shape_cast %338 : vector<2x16xbf16> to vector<1x2x16xbf16>
    tpu.vector_store %arg6[%339, %c0_108, %c0_109], %342 {strides = array<i32>} : memref<8x2x16xbf16, #tpu.memory_space<vmem>>, vector<1x2x16xbf16>,
    %c4_i32 = arith.constant 4 : i32
    %c7_i32_110 = arith.constant 7 : i32
    %343 = arith.subi %c7_i32_110, %c4_i32 : i32
    %344 = arith.index_cast %c4_i32 : i32 to index
    %c0_111 = arith.constant 0 : index
    %c0_112 = arith.constant 0 : index
    %345 = vector.load %arg1[%344, %c0_111, %c0_112] : memref<8x2x48xbf16, #tpu.memory_space<vmem>>, vector<1x2x48xbf16>
    %346 = vector.shape_cast %345 : vector<1x2x48xbf16> to vector<2x48xbf16>
    %347 = arith.extf %346 : vector<2x48xbf16> to vector<2x48xf32>
    %c0_113 = arith.constant 0 : index
    %c0_114 = arith.constant 0 : index
    %348 = vector.load %arg7[%c0_113, %c0_114] : memref<2x16xf32, #tpu.memory_space<vmem>>, vector<2x16xf32>
    %349 = arith.truncf %348 : vector<2x16xf32> to vector<2x16xbf16>
    %cst_115 = arith.constant dense<0.000000e+00> : vector<2x48xf32>
    %350 = tpu.matmul %349, %4, %cst_115 {dimension_numbers = #tpu.dot_dimension_numbers<[1], [0], [0], [1], [0, 0, 1, 1], [], []>} : vector<2x16xbf16>, vector<16x48xbf16>, vector<2x48xf32> -> vector<2x48xf32>
    %351 = vector.broadcast %8 : vector<1x48xf32> to vector<2x48xf32>
    %352 = arith.addf %350, %351 : vector<2x48xf32>
    %353 = vector.extract_strided_slice %347 {offsets = [0, 0], sizes = [2, 16], strides = [1, 1]} : vector<2x48xf32> to vector<2x16xf32>
    %354 = vector.extract_strided_slice %352 {offsets = [0, 0], sizes = [2, 16], strides = [1, 1]} : vector<2x48xf32> to vector<2x16xf32>
    %355 = arith.addf %353, %354 : vector<2x16xf32>
    %356 = arith.negf %355 : vector<2x16xf32>
    %357 = math.exp %356 : vector<2x16xf32>
    %cst_116 = arith.constant 1.000000e+00 : f32
    %358 = vector.broadcast %cst_116 : f32 to vector<2x16xf32>
    %359 = arith.addf %358, %357 : vector<2x16xf32>
    %360 = arith.divf %358, %359 : vector<2x16xf32>
    %361 = vector.extract_strided_slice %347 {offsets = [0, 16], sizes = [2, 16], strides = [1, 1]} : vector<2x48xf32> to vector<2x16xf32>
    %362 = vector.extract_strided_slice %352 {offsets = [0, 16], sizes = [2, 16], strides = [1, 1]} : vector<2x48xf32> to vector<2x16xf32>
    %363 = arith.addf %361, %362 : vector<2x16xf32>
    %364 = arith.negf %363 : vector<2x16xf32>
    %365 = math.exp %364 : vector<2x16xf32>
    %cst_117 = arith.constant 1.000000e+00 : f32
    %366 = vector.broadcast %cst_117 : f32 to vector<2x16xf32>
    %367 = arith.addf %366, %365 : vector<2x16xf32>
    %368 = arith.divf %366, %367 : vector<2x16xf32>
    %369 = vector.extract_strided_slice %347 {offsets = [0, 32], sizes = [2, 16], strides = [1, 1]} : vector<2x48xf32> to vector<2x16xf32>
    %370 = vector.extract_strided_slice %352 {offsets = [0, 32], sizes = [2, 16], strides = [1, 1]} : vector<2x48xf32> to vector<2x16xf32>
    %371 = arith.mulf %360, %370 : vector<2x16xf32>
    %372 = arith.addf %369, %371 : vector<2x16xf32>
    %373 = math.tanh %372 : vector<2x16xf32>
    %cst_118 = arith.constant 1.000000e+00 : f32
    %374 = vector.broadcast %cst_118 : f32 to vector<2x16xf32>
    %375 = arith.subf %374, %368 : vector<2x16xf32>
    %376 = arith.mulf %375, %373 : vector<2x16xf32>
    %377 = arith.mulf %368, %348 : vector<2x16xf32>
    %378 = arith.addf %376, %377 : vector<2x16xf32>
    %379 = arith.index_cast %343 : i32 to index
    %c0_119 = arith.constant 0 : index
    %c0_120 = arith.constant 0 : index
    %380 = vector.load %arg2[%379, %c0_119, %c0_120] : memref<8x2x48xbf16, #tpu.memory_space<vmem>>, vector<1x2x48xbf16>
    %381 = vector.shape_cast %380 : vector<1x2x48xbf16> to vector<2x48xbf16>
    %382 = arith.extf %381 : vector<2x48xbf16> to vector<2x48xf32>
    %c0_121 = arith.constant 0 : index
    %c0_122 = arith.constant 0 : index
    %383 = vector.load %arg8[%c0_121, %c0_122] : memref<2x16xf32, #tpu.memory_space<vmem>>, vector<2x16xf32>
    %384 = arith.truncf %383 : vector<2x16xf32> to vector<2x16xbf16>
    %cst_123 = arith.constant dense<0.000000e+00> : vector<2x48xf32>
    %385 = tpu.matmul %384, %6, %cst_123 {dimension_numbers = #tpu.dot_dimension_numbers<[1], [0], [0], [1], [0, 0, 1, 1], [], []>} : vector<2x16xbf16>, vector<16x48xbf16>, vector<2x48xf32> -> vector<2x48xf32>
    %386 = vector.broadcast %10 : vector<1x48xf32> to vector<2x48xf32>
    %387 = arith.addf %385, %386 : vector<2x48xf32>
    %388 = vector.extract_strided_slice %382 {offsets = [0, 0], sizes = [2, 16], strides = [1, 1]} : vector<2x48xf32> to vector<2x16xf32>
    %389 = vector.extract_strided_slice %387 {offsets = [0, 0], sizes = [2, 16], strides = [1, 1]} : vector<2x48xf32> to vector<2x16xf32>
    %390 = arith.addf %388, %389 : vector<2x16xf32>
    %391 = arith.negf %390 : vector<2x16xf32>
    %392 = math.exp %391 : vector<2x16xf32>
    %cst_124 = arith.constant 1.000000e+00 : f32
    %393 = vector.broadcast %cst_124 : f32 to vector<2x16xf32>
    %394 = arith.addf %393, %392 : vector<2x16xf32>
    %395 = arith.divf %393, %394 : vector<2x16xf32>
    %396 = vector.extract_strided_slice %382 {offsets = [0, 16], sizes = [2, 16], strides = [1, 1]} : vector<2x48xf32> to vector<2x16xf32>
    %397 = vector.extract_strided_slice %387 {offsets = [0, 16], sizes = [2, 16], strides = [1, 1]} : vector<2x48xf32> to vector<2x16xf32>
    %398 = arith.addf %396, %397 : vector<2x16xf32>
    %399 = arith.negf %398 : vector<2x16xf32>
    %400 = math.exp %399 : vector<2x16xf32>
    %cst_125 = arith.constant 1.000000e+00 : f32
    %401 = vector.broadcast %cst_125 : f32 to vector<2x16xf32>
    %402 = arith.addf %401, %400 : vector<2x16xf32>
    %403 = arith.divf %401, %402 : vector<2x16xf32>
    %404 = vector.extract_strided_slice %382 {offsets = [0, 32], sizes = [2, 16], strides = [1, 1]} : vector<2x48xf32> to vector<2x16xf32>
    %405 = vector.extract_strided_slice %387 {offsets = [0, 32], sizes = [2, 16], strides = [1, 1]} : vector<2x48xf32> to vector<2x16xf32>
    %406 = arith.mulf %395, %405 : vector<2x16xf32>
    %407 = arith.addf %404, %406 : vector<2x16xf32>
    %408 = math.tanh %407 : vector<2x16xf32>
    %cst_126 = arith.constant 1.000000e+00 : f32
    %409 = vector.broadcast %cst_126 : f32 to vector<2x16xf32>
    %410 = arith.subf %409, %403 : vector<2x16xf32>
    %411 = arith.mulf %410, %408 : vector<2x16xf32>
    %412 = arith.mulf %403, %383 : vector<2x16xf32>
    %413 = arith.addf %411, %412 : vector<2x16xf32>
    %c0_127 = arith.constant 0 : index
    %c0_128 = arith.constant 0 : index
    %414 = vector.load %arg7[%c0_127, %c0_128] : memref<2x16xf32, #tpu.memory_space<vmem>>, vector<2x16xf32>
    tpu.vector_store %arg7[%c0_127, %c0_128], %378 {strides = array<i32>} : memref<2x16xf32, #tpu.memory_space<vmem>>, vector<2x16xf32>,
    %c0_129 = arith.constant 0 : index
    %c0_130 = arith.constant 0 : index
    %415 = vector.load %arg8[%c0_129, %c0_130] : memref<2x16xf32, #tpu.memory_space<vmem>>, vector<2x16xf32>
    tpu.vector_store %arg8[%c0_129, %c0_130], %413 {strides = array<i32>} : memref<2x16xf32, #tpu.memory_space<vmem>>, vector<2x16xf32>,
    %416 = arith.truncf %378 : vector<2x16xf32> to vector<2x16xbf16>
    %417 = arith.index_cast %c4_i32 : i32 to index
    %c0_131 = arith.constant 0 : index
    %c0_132 = arith.constant 0 : index
    %418 = vector.load %arg5[%417, %c0_131, %c0_132] : memref<8x2x16xbf16, #tpu.memory_space<vmem>>, vector<1x2x16xbf16>
    %419 = vector.shape_cast %418 : vector<1x2x16xbf16> to vector<2x16xbf16>
    %420 = vector.shape_cast %416 : vector<2x16xbf16> to vector<1x2x16xbf16>
    tpu.vector_store %arg5[%417, %c0_131, %c0_132], %420 {strides = array<i32>} : memref<8x2x16xbf16, #tpu.memory_space<vmem>>, vector<1x2x16xbf16>,
    %421 = arith.truncf %413 : vector<2x16xf32> to vector<2x16xbf16>
    %422 = arith.index_cast %343 : i32 to index
    %c0_133 = arith.constant 0 : index
    %c0_134 = arith.constant 0 : index
    %423 = vector.load %arg6[%422, %c0_133, %c0_134] : memref<8x2x16xbf16, #tpu.memory_space<vmem>>, vector<1x2x16xbf16>
    %424 = vector.shape_cast %423 : vector<1x2x16xbf16> to vector<2x16xbf16>
    %425 = vector.shape_cast %421 : vector<2x16xbf16> to vector<1x2x16xbf16>
    tpu.vector_store %arg6[%422, %c0_133, %c0_134], %425 {strides = array<i32>} : memref<8x2x16xbf16, #tpu.memory_space<vmem>>, vector<1x2x16xbf16>,
    %c5_i32 = arith.constant 5 : i32
    %c7_i32_135 = arith.constant 7 : i32
    %426 = arith.subi %c7_i32_135, %c5_i32 : i32
    %427 = arith.index_cast %c5_i32 : i32 to index
    %c0_136 = arith.constant 0 : index
    %c0_137 = arith.constant 0 : index
    %428 = vector.load %arg1[%427, %c0_136, %c0_137] : memref<8x2x48xbf16, #tpu.memory_space<vmem>>, vector<1x2x48xbf16>
    %429 = vector.shape_cast %428 : vector<1x2x48xbf16> to vector<2x48xbf16>
    %430 = arith.extf %429 : vector<2x48xbf16> to vector<2x48xf32>
    %c0_138 = arith.constant 0 : index
    %c0_139 = arith.constant 0 : index
    %431 = vector.load %arg7[%c0_138, %c0_139] : memref<2x16xf32, #tpu.memory_space<vmem>>, vector<2x16xf32>
    %432 = arith.truncf %431 : vector<2x16xf32> to vector<2x16xbf16>
    %cst_140 = arith.constant dense<0.000000e+00> : vector<2x48xf32>
    %433 = tpu.matmul %432, %4, %cst_140 {dimension_numbers = #tpu.dot_dimension_numbers<[1], [0], [0], [1], [0, 0, 1, 1], [], []>} : vector<2x16xbf16>, vector<16x48xbf16>, vector<2x48xf32> -> vector<2x48xf32>
    %434 = vector.broadcast %8 : vector<1x48xf32> to vector<2x48xf32>
    %435 = arith.addf %433, %434 : vector<2x48xf32>
    %436 = vector.extract_strided_slice %430 {offsets = [0, 0], sizes = [2, 16], strides = [1, 1]} : vector<2x48xf32> to vector<2x16xf32>
    %437 = vector.extract_strided_slice %435 {offsets = [0, 0], sizes = [2, 16], strides = [1, 1]} : vector<2x48xf32> to vector<2x16xf32>
    %438 = arith.addf %436, %437 : vector<2x16xf32>
    %439 = arith.negf %438 : vector<2x16xf32>
    %440 = math.exp %439 : vector<2x16xf32>
    %cst_141 = arith.constant 1.000000e+00 : f32
    %441 = vector.broadcast %cst_141 : f32 to vector<2x16xf32>
    %442 = arith.addf %441, %440 : vector<2x16xf32>
    %443 = arith.divf %441, %442 : vector<2x16xf32>
    %444 = vector.extract_strided_slice %430 {offsets = [0, 16], sizes = [2, 16], strides = [1, 1]} : vector<2x48xf32> to vector<2x16xf32>
    %445 = vector.extract_strided_slice %435 {offsets = [0, 16], sizes = [2, 16], strides = [1, 1]} : vector<2x48xf32> to vector<2x16xf32>
    %446 = arith.addf %444, %445 : vector<2x16xf32>
    %447 = arith.negf %446 : vector<2x16xf32>
    %448 = math.exp %447 : vector<2x16xf32>
    %cst_142 = arith.constant 1.000000e+00 : f32
    %449 = vector.broadcast %cst_142 : f32 to vector<2x16xf32>
    %450 = arith.addf %449, %448 : vector<2x16xf32>
    %451 = arith.divf %449, %450 : vector<2x16xf32>
    %452 = vector.extract_strided_slice %430 {offsets = [0, 32], sizes = [2, 16], strides = [1, 1]} : vector<2x48xf32> to vector<2x16xf32>
    %453 = vector.extract_strided_slice %435 {offsets = [0, 32], sizes = [2, 16], strides = [1, 1]} : vector<2x48xf32> to vector<2x16xf32>
    %454 = arith.mulf %443, %453 : vector<2x16xf32>
    %455 = arith.addf %452, %454 : vector<2x16xf32>
    %456 = math.tanh %455 : vector<2x16xf32>
    %cst_143 = arith.constant 1.000000e+00 : f32
    %457 = vector.broadcast %cst_143 : f32 to vector<2x16xf32>
    %458 = arith.subf %457, %451 : vector<2x16xf32>
    %459 = arith.mulf %458, %456 : vector<2x16xf32>
    %460 = arith.mulf %451, %431 : vector<2x16xf32>
    %461 = arith.addf %459, %460 : vector<2x16xf32>
    %462 = arith.index_cast %426 : i32 to index
    %c0_144 = arith.constant 0 : index
    %c0_145 = arith.constant 0 : index
    %463 = vector.load %arg2[%462, %c0_144, %c0_145] : memref<8x2x48xbf16, #tpu.memory_space<vmem>>, vector<1x2x48xbf16>
    %464 = vector.shape_cast %463 : vector<1x2x48xbf16> to vector<2x48xbf16>
    %465 = arith.extf %464 : vector<2x48xbf16> to vector<2x48xf32>
    %c0_146 = arith.constant 0 : index
    %c0_147 = arith.constant 0 : index
    %466 = vector.load %arg8[%c0_146, %c0_147] : memref<2x16xf32, #tpu.memory_space<vmem>>, vector<2x16xf32>
    %467 = arith.truncf %466 : vector<2x16xf32> to vector<2x16xbf16>
    %cst_148 = arith.constant dense<0.000000e+00> : vector<2x48xf32>
    %468 = tpu.matmul %467, %6, %cst_148 {dimension_numbers = #tpu.dot_dimension_numbers<[1], [0], [0], [1], [0, 0, 1, 1], [], []>} : vector<2x16xbf16>, vector<16x48xbf16>, vector<2x48xf32> -> vector<2x48xf32>
    %469 = vector.broadcast %10 : vector<1x48xf32> to vector<2x48xf32>
    %470 = arith.addf %468, %469 : vector<2x48xf32>
    %471 = vector.extract_strided_slice %465 {offsets = [0, 0], sizes = [2, 16], strides = [1, 1]} : vector<2x48xf32> to vector<2x16xf32>
    %472 = vector.extract_strided_slice %470 {offsets = [0, 0], sizes = [2, 16], strides = [1, 1]} : vector<2x48xf32> to vector<2x16xf32>
    %473 = arith.addf %471, %472 : vector<2x16xf32>
    %474 = arith.negf %473 : vector<2x16xf32>
    %475 = math.exp %474 : vector<2x16xf32>
    %cst_149 = arith.constant 1.000000e+00 : f32
    %476 = vector.broadcast %cst_149 : f32 to vector<2x16xf32>
    %477 = arith.addf %476, %475 : vector<2x16xf32>
    %478 = arith.divf %476, %477 : vector<2x16xf32>
    %479 = vector.extract_strided_slice %465 {offsets = [0, 16], sizes = [2, 16], strides = [1, 1]} : vector<2x48xf32> to vector<2x16xf32>
    %480 = vector.extract_strided_slice %470 {offsets = [0, 16], sizes = [2, 16], strides = [1, 1]} : vector<2x48xf32> to vector<2x16xf32>
    %481 = arith.addf %479, %480 : vector<2x16xf32>
    %482 = arith.negf %481 : vector<2x16xf32>
    %483 = math.exp %482 : vector<2x16xf32>
    %cst_150 = arith.constant 1.000000e+00 : f32
    %484 = vector.broadcast %cst_150 : f32 to vector<2x16xf32>
    %485 = arith.addf %484, %483 : vector<2x16xf32>
    %486 = arith.divf %484, %485 : vector<2x16xf32>
    %487 = vector.extract_strided_slice %465 {offsets = [0, 32], sizes = [2, 16], strides = [1, 1]} : vector<2x48xf32> to vector<2x16xf32>
    %488 = vector.extract_strided_slice %470 {offsets = [0, 32], sizes = [2, 16], strides = [1, 1]} : vector<2x48xf32> to vector<2x16xf32>
    %489 = arith.mulf %478, %488 : vector<2x16xf32>
    %490 = arith.addf %487, %489 : vector<2x16xf32>
    %491 = math.tanh %490 : vector<2x16xf32>
    %cst_151 = arith.constant 1.000000e+00 : f32
    %492 = vector.broadcast %cst_151 : f32 to vector<2x16xf32>
    %493 = arith.subf %492, %486 : vector<2x16xf32>
    %494 = arith.mulf %493, %491 : vector<2x16xf32>
    %495 = arith.mulf %486, %466 : vector<2x16xf32>
    %496 = arith.addf %494, %495 : vector<2x16xf32>
    %c0_152 = arith.constant 0 : index
    %c0_153 = arith.constant 0 : index
    %497 = vector.load %arg7[%c0_152, %c0_153] : memref<2x16xf32, #tpu.memory_space<vmem>>, vector<2x16xf32>
    tpu.vector_store %arg7[%c0_152, %c0_153], %461 {strides = array<i32>} : memref<2x16xf32, #tpu.memory_space<vmem>>, vector<2x16xf32>,
    %c0_154 = arith.constant 0 : index
    %c0_155 = arith.constant 0 : index
    %498 = vector.load %arg8[%c0_154, %c0_155] : memref<2x16xf32, #tpu.memory_space<vmem>>, vector<2x16xf32>
    tpu.vector_store %arg8[%c0_154, %c0_155], %496 {strides = array<i32>} : memref<2x16xf32, #tpu.memory_space<vmem>>, vector<2x16xf32>,
    %499 = arith.truncf %461 : vector<2x16xf32> to vector<2x16xbf16>
    %500 = arith.index_cast %c5_i32 : i32 to index
    %c0_156 = arith.constant 0 : index
    %c0_157 = arith.constant 0 : index
    %501 = vector.load %arg5[%500, %c0_156, %c0_157] : memref<8x2x16xbf16, #tpu.memory_space<vmem>>, vector<1x2x16xbf16>
    %502 = vector.shape_cast %501 : vector<1x2x16xbf16> to vector<2x16xbf16>
    %503 = vector.shape_cast %499 : vector<2x16xbf16> to vector<1x2x16xbf16>
    tpu.vector_store %arg5[%500, %c0_156, %c0_157], %503 {strides = array<i32>} : memref<8x2x16xbf16, #tpu.memory_space<vmem>>, vector<1x2x16xbf16>,
    %504 = arith.truncf %496 : vector<2x16xf32> to vector<2x16xbf16>
    %505 = arith.index_cast %426 : i32 to index
    %c0_158 = arith.constant 0 : index
    %c0_159 = arith.constant 0 : index
    %506 = vector.load %arg6[%505, %c0_158, %c0_159] : memref<8x2x16xbf16, #tpu.memory_space<vmem>>, vector<1x2x16xbf16>
    %507 = vector.shape_cast %506 : vector<1x2x16xbf16> to vector<2x16xbf16>
    %508 = vector.shape_cast %504 : vector<2x16xbf16> to vector<1x2x16xbf16>
    tpu.vector_store %arg6[%505, %c0_158, %c0_159], %508 {strides = array<i32>} : memref<8x2x16xbf16, #tpu.memory_space<vmem>>, vector<1x2x16xbf16>,
    %c6_i32 = arith.constant 6 : i32
    %c7_i32_160 = arith.constant 7 : i32
    %509 = arith.subi %c7_i32_160, %c6_i32 : i32
    %510 = arith.index_cast %c6_i32 : i32 to index
    %c0_161 = arith.constant 0 : index
    %c0_162 = arith.constant 0 : index
    %511 = vector.load %arg1[%510, %c0_161, %c0_162] : memref<8x2x48xbf16, #tpu.memory_space<vmem>>, vector<1x2x48xbf16>
    %512 = vector.shape_cast %511 : vector<1x2x48xbf16> to vector<2x48xbf16>
    %513 = arith.extf %512 : vector<2x48xbf16> to vector<2x48xf32>
    %c0_163 = arith.constant 0 : index
    %c0_164 = arith.constant 0 : index
    %514 = vector.load %arg7[%c0_163, %c0_164] : memref<2x16xf32, #tpu.memory_space<vmem>>, vector<2x16xf32>
    %515 = arith.truncf %514 : vector<2x16xf32> to vector<2x16xbf16>
    %cst_165 = arith.constant dense<0.000000e+00> : vector<2x48xf32>
    %516 = tpu.matmul %515, %4, %cst_165 {dimension_numbers = #tpu.dot_dimension_numbers<[1], [0], [0], [1], [0, 0, 1, 1], [], []>} : vector<2x16xbf16>, vector<16x48xbf16>, vector<2x48xf32> -> vector<2x48xf32>
    %517 = vector.broadcast %8 : vector<1x48xf32> to vector<2x48xf32>
    %518 = arith.addf %516, %517 : vector<2x48xf32>
    %519 = vector.extract_strided_slice %513 {offsets = [0, 0], sizes = [2, 16], strides = [1, 1]} : vector<2x48xf32> to vector<2x16xf32>
    %520 = vector.extract_strided_slice %518 {offsets = [0, 0], sizes = [2, 16], strides = [1, 1]} : vector<2x48xf32> to vector<2x16xf32>
    %521 = arith.addf %519, %520 : vector<2x16xf32>
    %522 = arith.negf %521 : vector<2x16xf32>
    %523 = math.exp %522 : vector<2x16xf32>
    %cst_166 = arith.constant 1.000000e+00 : f32
    %524 = vector.broadcast %cst_166 : f32 to vector<2x16xf32>
    %525 = arith.addf %524, %523 : vector<2x16xf32>
    %526 = arith.divf %524, %525 : vector<2x16xf32>
    %527 = vector.extract_strided_slice %513 {offsets = [0, 16], sizes = [2, 16], strides = [1, 1]} : vector<2x48xf32> to vector<2x16xf32>
    %528 = vector.extract_strided_slice %518 {offsets = [0, 16], sizes = [2, 16], strides = [1, 1]} : vector<2x48xf32> to vector<2x16xf32>
    %529 = arith.addf %527, %528 : vector<2x16xf32>
    %530 = arith.negf %529 : vector<2x16xf32>
    %531 = math.exp %530 : vector<2x16xf32>
    %cst_167 = arith.constant 1.000000e+00 : f32
    %532 = vector.broadcast %cst_167 : f32 to vector<2x16xf32>
    %533 = arith.addf %532, %531 : vector<2x16xf32>
    %534 = arith.divf %532, %533 : vector<2x16xf32>
    %535 = vector.extract_strided_slice %513 {offsets = [0, 32], sizes = [2, 16], strides = [1, 1]} : vector<2x48xf32> to vector<2x16xf32>
    %536 = vector.extract_strided_slice %518 {offsets = [0, 32], sizes = [2, 16], strides = [1, 1]} : vector<2x48xf32> to vector<2x16xf32>
    %537 = arith.mulf %526, %536 : vector<2x16xf32>
    %538 = arith.addf %535, %537 : vector<2x16xf32>
    %539 = math.tanh %538 : vector<2x16xf32>
    %cst_168 = arith.constant 1.000000e+00 : f32
    %540 = vector.broadcast %cst_168 : f32 to vector<2x16xf32>
    %541 = arith.subf %540, %534 : vector<2x16xf32>
    %542 = arith.mulf %541, %539 : vector<2x16xf32>
    %543 = arith.mulf %534, %514 : vector<2x16xf32>
    %544 = arith.addf %542, %543 : vector<2x16xf32>
    %545 = arith.index_cast %509 : i32 to index
    %c0_169 = arith.constant 0 : index
    %c0_170 = arith.constant 0 : index
    %546 = vector.load %arg2[%545, %c0_169, %c0_170] : memref<8x2x48xbf16, #tpu.memory_space<vmem>>, vector<1x2x48xbf16>
    %547 = vector.shape_cast %546 : vector<1x2x48xbf16> to vector<2x48xbf16>
    %548 = arith.extf %547 : vector<2x48xbf16> to vector<2x48xf32>
    %c0_171 = arith.constant 0 : index
    %c0_172 = arith.constant 0 : index
    %549 = vector.load %arg8[%c0_171, %c0_172] : memref<2x16xf32, #tpu.memory_space<vmem>>, vector<2x16xf32>
    %550 = arith.truncf %549 : vector<2x16xf32> to vector<2x16xbf16>
    %cst_173 = arith.constant dense<0.000000e+00> : vector<2x48xf32>
    %551 = tpu.matmul %550, %6, %cst_173 {dimension_numbers = #tpu.dot_dimension_numbers<[1], [0], [0], [1], [0, 0, 1, 1], [], []>} : vector<2x16xbf16>, vector<16x48xbf16>, vector<2x48xf32> -> vector<2x48xf32>
    %552 = vector.broadcast %10 : vector<1x48xf32> to vector<2x48xf32>
    %553 = arith.addf %551, %552 : vector<2x48xf32>
    %554 = vector.extract_strided_slice %548 {offsets = [0, 0], sizes = [2, 16], strides = [1, 1]} : vector<2x48xf32> to vector<2x16xf32>
    %555 = vector.extract_strided_slice %553 {offsets = [0, 0], sizes = [2, 16], strides = [1, 1]} : vector<2x48xf32> to vector<2x16xf32>
    %556 = arith.addf %554, %555 : vector<2x16xf32>
    %557 = arith.negf %556 : vector<2x16xf32>
    %558 = math.exp %557 : vector<2x16xf32>
    %cst_174 = arith.constant 1.000000e+00 : f32
    %559 = vector.broadcast %cst_174 : f32 to vector<2x16xf32>
    %560 = arith.addf %559, %558 : vector<2x16xf32>
    %561 = arith.divf %559, %560 : vector<2x16xf32>
    %562 = vector.extract_strided_slice %548 {offsets = [0, 16], sizes = [2, 16], strides = [1, 1]} : vector<2x48xf32> to vector<2x16xf32>
    %563 = vector.extract_strided_slice %553 {offsets = [0, 16], sizes = [2, 16], strides = [1, 1]} : vector<2x48xf32> to vector<2x16xf32>
    %564 = arith.addf %562, %563 : vector<2x16xf32>
    %565 = arith.negf %564 : vector<2x16xf32>
    %566 = math.exp %565 : vector<2x16xf32>
    %cst_175 = arith.constant 1.000000e+00 : f32
    %567 = vector.broadcast %cst_175 : f32 to vector<2x16xf32>
    %568 = arith.addf %567, %566 : vector<2x16xf32>
    %569 = arith.divf %567, %568 : vector<2x16xf32>
    %570 = vector.extract_strided_slice %548 {offsets = [0, 32], sizes = [2, 16], strides = [1, 1]} : vector<2x48xf32> to vector<2x16xf32>
    %571 = vector.extract_strided_slice %553 {offsets = [0, 32], sizes = [2, 16], strides = [1, 1]} : vector<2x48xf32> to vector<2x16xf32>
    %572 = arith.mulf %561, %571 : vector<2x16xf32>
    %573 = arith.addf %570, %572 : vector<2x16xf32>
    %574 = math.tanh %573 : vector<2x16xf32>
    %cst_176 = arith.constant 1.000000e+00 : f32
    %575 = vector.broadcast %cst_176 : f32 to vector<2x16xf32>
    %576 = arith.subf %575, %569 : vector<2x16xf32>
    %577 = arith.mulf %576, %574 : vector<2x16xf32>
    %578 = arith.mulf %569, %549 : vector<2x16xf32>
    %579 = arith.addf %577, %578 : vector<2x16xf32>
    %c0_177 = arith.constant 0 : index
    %c0_178 = arith.constant 0 : index
    %580 = vector.load %arg7[%c0_177, %c0_178] : memref<2x16xf32, #tpu.memory_space<vmem>>, vector<2x16xf32>
    tpu.vector_store %arg7[%c0_177, %c0_178], %544 {strides = array<i32>} : memref<2x16xf32, #tpu.memory_space<vmem>>, vector<2x16xf32>,
    %c0_179 = arith.constant 0 : index
    %c0_180 = arith.constant 0 : index
    %581 = vector.load %arg8[%c0_179, %c0_180] : memref<2x16xf32, #tpu.memory_space<vmem>>, vector<2x16xf32>
    tpu.vector_store %arg8[%c0_179, %c0_180], %579 {strides = array<i32>} : memref<2x16xf32, #tpu.memory_space<vmem>>, vector<2x16xf32>,
    %582 = arith.truncf %544 : vector<2x16xf32> to vector<2x16xbf16>
    %583 = arith.index_cast %c6_i32 : i32 to index
    %c0_181 = arith.constant 0 : index
    %c0_182 = arith.constant 0 : index
    %584 = vector.load %arg5[%583, %c0_181, %c0_182] : memref<8x2x16xbf16, #tpu.memory_space<vmem>>, vector<1x2x16xbf16>
    %585 = vector.shape_cast %584 : vector<1x2x16xbf16> to vector<2x16xbf16>
    %586 = vector.shape_cast %582 : vector<2x16xbf16> to vector<1x2x16xbf16>
    tpu.vector_store %arg5[%583, %c0_181, %c0_182], %586 {strides = array<i32>} : memref<8x2x16xbf16, #tpu.memory_space<vmem>>, vector<1x2x16xbf16>,
    %587 = arith.truncf %579 : vector<2x16xf32> to vector<2x16xbf16>
    %588 = arith.index_cast %509 : i32 to index
    %c0_183 = arith.constant 0 : index
    %c0_184 = arith.constant 0 : index
    %589 = vector.load %arg6[%588, %c0_183, %c0_184] : memref<8x2x16xbf16, #tpu.memory_space<vmem>>, vector<1x2x16xbf16>
    %590 = vector.shape_cast %589 : vector<1x2x16xbf16> to vector<2x16xbf16>
    %591 = vector.shape_cast %587 : vector<2x16xbf16> to vector<1x2x16xbf16>
    tpu.vector_store %arg6[%588, %c0_183, %c0_184], %591 {strides = array<i32>} : memref<8x2x16xbf16, #tpu.memory_space<vmem>>, vector<1x2x16xbf16>,
    %c7_i32_185 = arith.constant 7 : i32
    %c7_i32_186 = arith.constant 7 : i32
    %592 = arith.subi %c7_i32_186, %c7_i32_185 : i32
    %593 = arith.index_cast %c7_i32_185 : i32 to index
    %c0_187 = arith.constant 0 : index
    %c0_188 = arith.constant 0 : index
    %594 = vector.load %arg1[%593, %c0_187, %c0_188] : memref<8x2x48xbf16, #tpu.memory_space<vmem>>, vector<1x2x48xbf16>
    %595 = vector.shape_cast %594 : vector<1x2x48xbf16> to vector<2x48xbf16>
    %596 = arith.extf %595 : vector<2x48xbf16> to vector<2x48xf32>
    %c0_189 = arith.constant 0 : index
    %c0_190 = arith.constant 0 : index
    %597 = vector.load %arg7[%c0_189, %c0_190] : memref<2x16xf32, #tpu.memory_space<vmem>>, vector<2x16xf32>
    %598 = arith.truncf %597 : vector<2x16xf32> to vector<2x16xbf16>
    %cst_191 = arith.constant dense<0.000000e+00> : vector<2x48xf32>
    %599 = tpu.matmul %598, %4, %cst_191 {dimension_numbers = #tpu.dot_dimension_numbers<[1], [0], [0], [1], [0, 0, 1, 1], [], []>} : vector<2x16xbf16>, vector<16x48xbf16>, vector<2x48xf32> -> vector<2x48xf32>
    %600 = vector.broadcast %8 : vector<1x48xf32> to vector<2x48xf32>
    %601 = arith.addf %599, %600 : vector<2x48xf32>
    %602 = vector.extract_strided_slice %596 {offsets = [0, 0], sizes = [2, 16], strides = [1, 1]} : vector<2x48xf32> to vector<2x16xf32>
    %603 = vector.extract_strided_slice %601 {offsets = [0, 0], sizes = [2, 16], strides = [1, 1]} : vector<2x48xf32> to vector<2x16xf32>
    %604 = arith.addf %602, %603 : vector<2x16xf32>
    %605 = arith.negf %604 : vector<2x16xf32>
    %606 = math.exp %605 : vector<2x16xf32>
    %cst_192 = arith.constant 1.000000e+00 : f32
    %607 = vector.broadcast %cst_192 : f32 to vector<2x16xf32>
    %608 = arith.addf %607, %606 : vector<2x16xf32>
    %609 = arith.divf %607, %608 : vector<2x16xf32>
    %610 = vector.extract_strided_slice %596 {offsets = [0, 16], sizes = [2, 16], strides = [1, 1]} : vector<2x48xf32> to vector<2x16xf32>
    %611 = vector.extract_strided_slice %601 {offsets = [0, 16], sizes = [2, 16], strides = [1, 1]} : vector<2x48xf32> to vector<2x16xf32>
    %612 = arith.addf %610, %611 : vector<2x16xf32>
    %613 = arith.negf %612 : vector<2x16xf32>
    %614 = math.exp %613 : vector<2x16xf32>
    %cst_193 = arith.constant 1.000000e+00 : f32
    %615 = vector.broadcast %cst_193 : f32 to vector<2x16xf32>
    %616 = arith.addf %615, %614 : vector<2x16xf32>
    %617 = arith.divf %615, %616 : vector<2x16xf32>
    %618 = vector.extract_strided_slice %596 {offsets = [0, 32], sizes = [2, 16], strides = [1, 1]} : vector<2x48xf32> to vector<2x16xf32>
    %619 = vector.extract_strided_slice %601 {offsets = [0, 32], sizes = [2, 16], strides = [1, 1]} : vector<2x48xf32> to vector<2x16xf32>
    %620 = arith.mulf %609, %619 : vector<2x16xf32>
    %621 = arith.addf %618, %620 : vector<2x16xf32>
    %622 = math.tanh %621 : vector<2x16xf32>
    %cst_194 = arith.constant 1.000000e+00 : f32
    %623 = vector.broadcast %cst_194 : f32 to vector<2x16xf32>
    %624 = arith.subf %623, %617 : vector<2x16xf32>
    %625 = arith.mulf %624, %622 : vector<2x16xf32>
    %626 = arith.mulf %617, %597 : vector<2x16xf32>
    %627 = arith.addf %625, %626 : vector<2x16xf32>
    %628 = arith.index_cast %592 : i32 to index
    %c0_195 = arith.constant 0 : index
    %c0_196 = arith.constant 0 : index
    %629 = vector.load %arg2[%628, %c0_195, %c0_196] : memref<8x2x48xbf16, #tpu.memory_space<vmem>>, vector<1x2x48xbf16>
    %630 = vector.shape_cast %629 : vector<1x2x48xbf16> to vector<2x48xbf16>
    %631 = arith.extf %630 : vector<2x48xbf16> to vector<2x48xf32>
    %c0_197 = arith.constant 0 : index
    %c0_198 = arith.constant 0 : index
    %632 = vector.load %arg8[%c0_197, %c0_198] : memref<2x16xf32, #tpu.memory_space<vmem>>, vector<2x16xf32>
    %633 = arith.truncf %632 : vector<2x16xf32> to vector<2x16xbf16>
    %cst_199 = arith.constant dense<0.000000e+00> : vector<2x48xf32>
    %634 = tpu.matmul %633, %6, %cst_199 {dimension_numbers = #tpu.dot_dimension_numbers<[1], [0], [0], [1], [0, 0, 1, 1], [], []>} : vector<2x16xbf16>, vector<16x48xbf16>, vector<2x48xf32> -> vector<2x48xf32>
    %635 = vector.broadcast %10 : vector<1x48xf32> to vector<2x48xf32>
    %636 = arith.addf %634, %635 : vector<2x48xf32>
    %637 = vector.extract_strided_slice %631 {offsets = [0, 0], sizes = [2, 16], strides = [1, 1]} : vector<2x48xf32> to vector<2x16xf32>
    %638 = vector.extract_strided_slice %636 {offsets = [0, 0], sizes = [2, 16], strides = [1, 1]} : vector<2x48xf32> to vector<2x16xf32>
    %639 = arith.addf %637, %638 : vector<2x16xf32>
    %640 = arith.negf %639 : vector<2x16xf32>
    %641 = math.exp %640 : vector<2x16xf32>
    %cst_200 = arith.constant 1.000000e+00 : f32
    %642 = vector.broadcast %cst_200 : f32 to vector<2x16xf32>
    %643 = arith.addf %642, %641 : vector<2x16xf32>
    %644 = arith.divf %642, %643 : vector<2x16xf32>
    %645 = vector.extract_strided_slice %631 {offsets = [0, 16], sizes = [2, 16], strides = [1, 1]} : vector<2x48xf32> to vector<2x16xf32>
    %646 = vector.extract_strided_slice %636 {offsets = [0, 16], sizes = [2, 16], strides = [1, 1]} : vector<2x48xf32> to vector<2x16xf32>
    %647 = arith.addf %645, %646 : vector<2x16xf32>
    %648 = arith.negf %647 : vector<2x16xf32>
    %649 = math.exp %648 : vector<2x16xf32>
    %cst_201 = arith.constant 1.000000e+00 : f32
    %650 = vector.broadcast %cst_201 : f32 to vector<2x16xf32>
    %651 = arith.addf %650, %649 : vector<2x16xf32>
    %652 = arith.divf %650, %651 : vector<2x16xf32>
    %653 = vector.extract_strided_slice %631 {offsets = [0, 32], sizes = [2, 16], strides = [1, 1]} : vector<2x48xf32> to vector<2x16xf32>
    %654 = vector.extract_strided_slice %636 {offsets = [0, 32], sizes = [2, 16], strides = [1, 1]} : vector<2x48xf32> to vector<2x16xf32>
    %655 = arith.mulf %644, %654 : vector<2x16xf32>
    %656 = arith.addf %653, %655 : vector<2x16xf32>
    %657 = math.tanh %656 : vector<2x16xf32>
    %cst_202 = arith.constant 1.000000e+00 : f32
    %658 = vector.broadcast %cst_202 : f32 to vector<2x16xf32>
    %659 = arith.subf %658, %652 : vector<2x16xf32>
    %660 = arith.mulf %659, %657 : vector<2x16xf32>
    %661 = arith.mulf %652, %632 : vector<2x16xf32>
    %662 = arith.addf %660, %661 : vector<2x16xf32>
    %c0_203 = arith.constant 0 : index
    %c0_204 = arith.constant 0 : index
    %663 = vector.load %arg7[%c0_203, %c0_204] : memref<2x16xf32, #tpu.memory_space<vmem>>, vector<2x16xf32>
    tpu.vector_store %arg7[%c0_203, %c0_204], %627 {strides = array<i32>} : memref<2x16xf32, #tpu.memory_space<vmem>>, vector<2x16xf32>,
    %c0_205 = arith.constant 0 : index
    %c0_206 = arith.constant 0 : index
    %664 = vector.load %arg8[%c0_205, %c0_206] : memref<2x16xf32, #tpu.memory_space<vmem>>, vector<2x16xf32>
    tpu.vector_store %arg8[%c0_205, %c0_206], %662 {strides = array<i32>} : memref<2x16xf32, #tpu.memory_space<vmem>>, vector<2x16xf32>,
    %665 = arith.truncf %627 : vector<2x16xf32> to vector<2x16xbf16>
    %666 = arith.index_cast %c7_i32_185 : i32 to index
    %c0_207 = arith.constant 0 : index
    %c0_208 = arith.constant 0 : index
    %667 = vector.load %arg5[%666, %c0_207, %c0_208] : memref<8x2x16xbf16, #tpu.memory_space<vmem>>, vector<1x2x16xbf16>
    %668 = vector.shape_cast %667 : vector<1x2x16xbf16> to vector<2x16xbf16>
    %669 = vector.shape_cast %665 : vector<2x16xbf16> to vector<1x2x16xbf16>
    tpu.vector_store %arg5[%666, %c0_207, %c0_208], %669 {strides = array<i32>} : memref<8x2x16xbf16, #tpu.memory_space<vmem>>, vector<1x2x16xbf16>,
    %670 = arith.truncf %662 : vector<2x16xf32> to vector<2x16xbf16>
    %671 = arith.index_cast %592 : i32 to index
    %c0_209 = arith.constant 0 : index
    %c0_210 = arith.constant 0 : index
    %672 = vector.load %arg6[%671, %c0_209, %c0_210] : memref<8x2x16xbf16, #tpu.memory_space<vmem>>, vector<1x2x16xbf16>
    %673 = vector.shape_cast %672 : vector<1x2x16xbf16> to vector<2x16xbf16>
    %674 = vector.shape_cast %670 : vector<2x16xbf16> to vector<1x2x16xbf16>
    tpu.vector_store %arg6[%671, %c0_209, %c0_210], %674 {strides = array<i32>} : memref<8x2x16xbf16, #tpu.memory_space<vmem>>, vector<1x2x16xbf16>,
    %c8_i32 = arith.constant 8 : i32
    return
  }
  func.func @transform_0(%arg0: i32) -> (i32, i32, i32) {
    %c0_i32 = arith.constant 0 : i32
    %c0_i32_0 = arith.constant 0 : i32
    %c0_i32_1 = arith.constant 0 : i32
    return %arg0, %c0_i32, %c0_i32_0 : i32, i32, i32
  }
  func.func @transform_1(%arg0: i32) -> (i32, i32, i32) {
    %c0_i32 = arith.constant 0 : i32
    %0 = arith.subi %c0_i32, %arg0 : i32
    %c0_i32_0 = arith.constant 0 : i32
    %c0_i32_1 = arith.constant 0 : i32
    %c0_i32_2 = arith.constant 0 : i32
    return %0, %c0_i32_0, %c0_i32_1 : i32, i32, i32
  }
  func.func @transform_2(%arg0: i32) -> (i32, i32, i32) {
    %c0_i32 = arith.constant 0 : i32
    %c0_i32_0 = arith.constant 0 : i32
    %c0_i32_1 = arith.constant 0 : i32
    %c0_i32_2 = arith.constant 0 : i32
    return %c0_i32, %c0_i32_0, %c0_i32_1 : i32, i32, i32
  }
  func.func @transform_3(%arg0: i32) -> (i32, i32, i32) {
    %c0_i32 = arith.constant 0 : i32
    %c0_i32_0 = arith.constant 0 : i32
    %c0_i32_1 = arith.constant 0 : i32
    %c0_i32_2 = arith.constant 0 : i32
    return %c0_i32, %c0_i32_0, %c0_i32_1 : i32, i32, i32
  }
  func.func @transform_4(%arg0: i32) -> (i32, i32, i32) {
    %c0_i32 = arith.constant 0 : i32
    %c0_i32_0 = arith.constant 0 : i32
    %c0_i32_1 = arith.constant 0 : i32
    return %arg0, %c0_i32, %c0_i32_0 : i32, i32, i32
  }
  func.func @transform_5(%arg0: i32) -> (i32, i32, i32) {
    %c0_i32 = arith.constant 0 : i32
    %0 = arith.subi %c0_i32, %arg0 : i32
    %c0_i32_0 = arith.constant 0 : i32
    %c0_i32_1 = arith.constant 0 : i32
    %c0_i32_2 = arith.constant 0 : i32
    return %0, %c0_i32_0, %c0_i32_1 : i32, i32, i32
  }
}

module attributes {stable_mosaic.version = 11 : i64} {
  func.func @batchmax_proj_kernel(%arg0: i32, %arg1: memref<2x8x32xbf16, #tpu.memory_space<vmem>>, %arg2: memref<32x32xbf16, #tpu.memory_space<vmem>>, %arg3: memref<8x32xf32, #tpu.memory_space<vmem>>) attributes {dimension_semantics = [#tpu.dimension_semantics<arbitrary>], iteration_bounds = array<i64: 1>, scalar_prefetch = 0 : i64, scratch_operands = 0 : i64, tpu.core_type = #tpu.core_type<tc>, window_params = [{transform_indices = @transform_0, window_bounds = array<i64: 2, 8, 32>}, {pipeline_mode = #tpu.pipeline_mode<synchronous>, transform_indices = @transform_1, window_bounds = array<i64: 32, 32>}, {pipeline_mode = #tpu.pipeline_mode<synchronous>, transform_indices = @transform_2, window_bounds = array<i64: 8, 32>}]} {
    %c0_i32 = arith.constant 0 : i32
    %0 = arith.cmpi eq, %arg0, %c0_i32 : i32
    %1 = arith.extui %0 : i1 to i32
    %c0_i32_0 = arith.constant 0 : i32
    %2 = arith.cmpi ne, %1, %c0_i32_0 : i32
    scf.if %2 {
      %cst_10 = arith.constant 0xFF800000 : f32
      %12 = vector.broadcast %cst_10 : f32 to vector<8x32xf32>
      %c0_11 = arith.constant 0 : index
      %c0_12 = arith.constant 0 : index
      %13 = vector.load %arg3[%c0_11, %c0_12] : memref<8x32xf32, #tpu.memory_space<vmem>>, vector<8x32xf32>
      tpu.vector_store %arg3[%c0_11, %c0_12], %12 {strides = array<i32>} : memref<8x32xf32, #tpu.memory_space<vmem>>, vector<8x32xf32>,
    } else {
    }
    %c0 = arith.constant 0 : index
    %c0_1 = arith.constant 0 : index
    %c0_2 = arith.constant 0 : index
    %3 = vector.load %arg1[%c0, %c0_1, %c0_2] : memref<2x8x32xbf16, #tpu.memory_space<vmem>>, vector<2x8x32xbf16>
    %4 = vector.shape_cast %3 : vector<2x8x32xbf16> to vector<16x32xbf16>
    %c0_3 = arith.constant 0 : index
    %c0_4 = arith.constant 0 : index
    %5 = vector.load %arg2[%c0_3, %c0_4] : memref<32x32xbf16, #tpu.memory_space<vmem>>, vector<32x32xbf16>
    %cst = arith.constant dense<0.000000e+00> : vector<16x32xf32>
    %6 = tpu.matmul %4, %5, %cst {dimension_numbers = #tpu.dot_dimension_numbers<[1], [0], [0], [1], [0, 0, 1, 1], [], []>} : vector<16x32xbf16>, vector<32x32xbf16>, vector<16x32xf32> -> vector<16x32xf32>
    %c0_5 = arith.constant 0 : index
    %c0_6 = arith.constant 0 : index
    %7 = vector.load %arg3[%c0_5, %c0_6] : memref<8x32xf32, #tpu.memory_space<vmem>>, vector<8x32xf32>
    %8 = vector.shape_cast %6 : vector<16x32xf32> to vector<2x8x32xf32>
    %cst_7 = arith.constant dense<0xFF800000> : vector<8x32xf32>
    %9 = vector.multi_reduction <maximumf>, %8, %cst_7 [0] : vector<2x8x32xf32> to vector<8x32xf32>
    %10 = arith.maximumf %7, %9 : vector<8x32xf32>
    %c0_8 = arith.constant 0 : index
    %c0_9 = arith.constant 0 : index
    %11 = vector.load %arg3[%c0_8, %c0_9] : memref<8x32xf32, #tpu.memory_space<vmem>>, vector<8x32xf32>
    tpu.vector_store %arg3[%c0_8, %c0_9], %10 {strides = array<i32>} : memref<8x32xf32, #tpu.memory_space<vmem>>, vector<8x32xf32>,
    return
  }
  func.func @transform_0(%arg0: i32) -> (i32, i32, i32) {
    %c0_i32 = arith.constant 0 : i32
    %c0_i32_0 = arith.constant 0 : i32
    %c0_i32_1 = arith.constant 0 : i32
    return %arg0, %c0_i32, %c0_i32_0 : i32, i32, i32
  }
  func.func @transform_1(%arg0: i32) -> (i32, i32) {
    %c0_i32 = arith.constant 0 : i32
    %c0_i32_0 = arith.constant 0 : i32
    %c0_i32_1 = arith.constant 0 : i32
    return %c0_i32, %c0_i32_0 : i32, i32
  }
  func.func @transform_2(%arg0: i32) -> (i32, i32) {
    %c0_i32 = arith.constant 0 : i32
    %c0_i32_0 = arith.constant 0 : i32
    %c0_i32_1 = arith.constant 0 : i32
    return %c0_i32, %c0_i32_0 : i32, i32
  }
}

module attributes {stable_mosaic.version = 11 : i64} {
  func.func @head_kernel(%arg0: i32, %arg1: memref<2x8x32xbf16, #tpu.memory_space<vmem>>, %arg2: memref<8x32xf32, #tpu.memory_space<vmem>>, %arg3: memref<32x32xbf16, #tpu.memory_space<vmem>>, %arg4: memref<1x32xf32, #tpu.memory_space<vmem>>, %arg5: memref<32x64xbf16, #tpu.memory_space<vmem>>, %arg6: memref<1x32xf32, #tpu.memory_space<vmem>>, %arg7: memref<32x32xbf16, #tpu.memory_space<vmem>>, %arg8: memref<1x32xf32, #tpu.memory_space<vmem>>, %arg9: memref<32x128xbf16, #tpu.memory_space<vmem>>, %arg10: memref<1x128xf32, #tpu.memory_space<vmem>>, %arg11: memref<2x8x128xf32, #tpu.memory_space<vmem>>) attributes {dimension_semantics = [#tpu.dimension_semantics<parallel>], iteration_bounds = array<i64: 1>, scalar_prefetch = 0 : i64, scratch_operands = 0 : i64, tpu.core_type = #tpu.core_type<tc>, window_params = [{transform_indices = @transform_0, window_bounds = array<i64: 2, 8, 32>}, {pipeline_mode = #tpu.pipeline_mode<synchronous>, transform_indices = @transform_1, window_bounds = array<i64: 8, 32>}, {pipeline_mode = #tpu.pipeline_mode<synchronous>, transform_indices = @transform_2, window_bounds = array<i64: 32, 32>}, {pipeline_mode = #tpu.pipeline_mode<synchronous>, transform_indices = @transform_3, window_bounds = array<i64: 1, 32>}, {pipeline_mode = #tpu.pipeline_mode<synchronous>, transform_indices = @transform_4, window_bounds = array<i64: 32, 64>}, {pipeline_mode = #tpu.pipeline_mode<synchronous>, transform_indices = @transform_5, window_bounds = array<i64: 1, 32>}, {pipeline_mode = #tpu.pipeline_mode<synchronous>, transform_indices = @transform_6, window_bounds = array<i64: 32, 32>}, {pipeline_mode = #tpu.pipeline_mode<synchronous>, transform_indices = @transform_7, window_bounds = array<i64: 1, 32>}, {pipeline_mode = #tpu.pipeline_mode<synchronous>, transform_indices = @transform_8, window_bounds = array<i64: 32, 128>}, {pipeline_mode = #tpu.pipeline_mode<synchronous>, transform_indices = @transform_9, window_bounds = array<i64: 1, 128>}, {transform_indices = @transform_10, window_bounds = array<i64: 2, 8, 128>}]} {
    %c0 = arith.constant 0 : index
    %c0_0 = arith.constant 0 : index
    %c0_1 = arith.constant 0 : index
    %0 = vector.load %arg1[%c0, %c0_0, %c0_1] : memref<2x8x32xbf16, #tpu.memory_space<vmem>>, vector<2x8x32xbf16>
    %1 = vector.shape_cast %0 : vector<2x8x32xbf16> to vector<16x32xbf16>
    %c0_2 = arith.constant 0 : index
    %c0_3 = arith.constant 0 : index
    %2 = vector.load %arg3[%c0_2, %c0_3] : memref<32x32xbf16, #tpu.memory_space<vmem>>, vector<32x32xbf16>
    %cst = arith.constant dense<0.000000e+00> : vector<16x32xf32>
    %3 = tpu.matmul %1, %2, %cst {dimension_numbers = #tpu.dot_dimension_numbers<[1], [0], [0], [1], [0, 0, 1, 1], [], []>} : vector<16x32xbf16>, vector<32x32xbf16>, vector<16x32xf32> -> vector<16x32xf32>
    %c0_4 = arith.constant 0 : index
    %c0_5 = arith.constant 0 : index
    %4 = vector.load %arg4[%c0_4, %c0_5] : memref<1x32xf32, #tpu.memory_space<vmem>>, vector<1x32xf32>
    %5 = vector.broadcast %4 : vector<1x32xf32> to vector<16x32xf32>
    %6 = arith.addf %3, %5 : vector<16x32xf32>
    %7 = vector.shape_cast %6 : vector<16x32xf32> to vector<2x8x32xf32>
    %c0_6 = arith.constant 0 : index
    %c0_7 = arith.constant 0 : index
    %8 = vector.load %arg2[%c0_6, %c0_7] : memref<8x32xf32, #tpu.memory_space<vmem>>, vector<8x32xf32>
    %9 = vector.shape_cast %8 : vector<8x32xf32> to vector<1x8x32xf32>
    %10 = vector.broadcast %9 : vector<1x8x32xf32> to vector<2x8x32xf32>
    %11 = arith.addf %7, %10 : vector<2x8x32xf32>
    %cst_8 = arith.constant 0.000000e+00 : f32
    %12 = vector.broadcast %cst_8 : f32 to vector<2x8x32xf32>
    %13 = arith.maximumf %11, %12 : vector<2x8x32xf32>
    %14 = arith.truncf %13 : vector<2x8x32xf32> to vector<2x8x32xbf16>
    %15 = vector.shape_cast %14 : vector<2x8x32xbf16> to vector<16x32xbf16>
    %c0_9 = arith.constant 0 : index
    %c0_10 = arith.constant 0 : index
    %16 = vector.load %arg5[%c0_9, %c0_10] : memref<32x64xbf16, #tpu.memory_space<vmem>>, vector<32x64xbf16>
    %cst_11 = arith.constant dense<0.000000e+00> : vector<16x64xf32>
    %17 = tpu.matmul %15, %16, %cst_11 {dimension_numbers = #tpu.dot_dimension_numbers<[1], [0], [0], [1], [0, 0, 1, 1], [], []>} : vector<16x32xbf16>, vector<32x64xbf16>, vector<16x64xf32> -> vector<16x64xf32>
    %18 = vector.extract_strided_slice %17 {offsets = [0, 0], sizes = [16, 32], strides = [1, 1]} : vector<16x64xf32> to vector<16x32xf32>
    %c0_12 = arith.constant 0 : index
    %c0_13 = arith.constant 0 : index
    %19 = vector.load %arg6[%c0_12, %c0_13] : memref<1x32xf32, #tpu.memory_space<vmem>>, vector<1x32xf32>
    %20 = vector.broadcast %19 : vector<1x32xf32> to vector<16x32xf32>
    %21 = arith.addf %18, %20 : vector<16x32xf32>
    %22 = vector.shape_cast %21 : vector<16x32xf32> to vector<2x8x32xf32>
    %23 = vector.extract_strided_slice %17 {offsets = [0, 32], sizes = [16, 32], strides = [1, 1]} : vector<16x64xf32> to vector<16x32xf32>
    %24 = arith.truncf %22 : vector<2x8x32xf32> to vector<2x8x32xbf16>
    "tpu.trace_start"() <{level = 10 : i32, message = "itp,isp->its"}> : () -> ()
    %cst_14 = arith.constant dense<0.000000e+00> : vector<2x8x8xf32>
    %25 = tpu.matmul %24, %14, %cst_14 {dimension_numbers = #tpu.dot_dimension_numbers<[2], [2], [1], [1], [0, 0, 0, 1, 1, 1], [0], [0]>} : vector<2x8x32xbf16>, vector<2x8x32xbf16>, vector<2x8x8xf32> -> vector<2x8x8xf32>
    "tpu.trace_stop"() : () -> ()
    %cst_15 = arith.constant dense<0xFF800000> : vector<2x8xf32>
    %26 = vector.multi_reduction <maximumf>, %25, %cst_15 [2] : vector<2x8x8xf32> to vector<2x8xf32>
    %27 = vector.shape_cast %26 : vector<2x8xf32> to vector<2x8x1xf32>
    %28 = vector.broadcast %27 : vector<2x8x1xf32> to vector<2x8x8xf32>
    %29 = arith.subf %25, %28 : vector<2x8x8xf32>
    %30 = math.exp %29 : vector<2x8x8xf32>
    %cst_16 = arith.constant dense<0.000000e+00> : vector<2x8xf32>
    %31 = vector.multi_reduction <add>, %30, %cst_16 [2] : vector<2x8x8xf32> to vector<2x8xf32>
    %32 = vector.shape_cast %31 : vector<2x8xf32> to vector<2x8x1xf32>
    %33 = vector.broadcast %32 : vector<2x8x1xf32> to vector<2x8x8xf32>
    %34 = arith.divf %30, %33 : vector<2x8x8xf32>
    %35 = arith.truncf %34 : vector<2x8x8xf32> to vector<2x8x8xbf16>
    "tpu.trace_start"() <{level = 10 : i32, message = "its,isp->itp"}> : () -> ()
    %cst_17 = arith.constant dense<0.000000e+00> : vector<2x8x32xf32>
    %36 = tpu.matmul %35, %14, %cst_17 {dimension_numbers = #tpu.dot_dimension_numbers<[2], [1], [1], [2], [0, 0, 0, 1, 1, 2], [0], [0]>} : vector<2x8x8xbf16>, vector<2x8x32xbf16>, vector<2x8x32xf32> -> vector<2x8x32xf32>
    "tpu.trace_stop"() : () -> ()
    %37 = arith.truncf %36 : vector<2x8x32xf32> to vector<2x8x32xbf16>
    %38 = vector.shape_cast %37 : vector<2x8x32xbf16> to vector<16x32xbf16>
    %c0_18 = arith.constant 0 : index
    %c0_19 = arith.constant 0 : index
    %39 = vector.load %arg7[%c0_18, %c0_19] : memref<32x32xbf16, #tpu.memory_space<vmem>>, vector<32x32xbf16>
    %cst_20 = arith.constant dense<0.000000e+00> : vector<16x32xf32>
    %40 = tpu.matmul %38, %39, %cst_20 {dimension_numbers = #tpu.dot_dimension_numbers<[1], [0], [0], [1], [0, 0, 1, 1], [], []>} : vector<16x32xbf16>, vector<32x32xbf16>, vector<16x32xf32> -> vector<16x32xf32>
    %41 = arith.addf %23, %40 : vector<16x32xf32>
    %c0_21 = arith.constant 0 : index
    %c0_22 = arith.constant 0 : index
    %42 = vector.load %arg8[%c0_21, %c0_22] : memref<1x32xf32, #tpu.memory_space<vmem>>, vector<1x32xf32>
    %43 = vector.broadcast %42 : vector<1x32xf32> to vector<16x32xf32>
    %44 = arith.addf %41, %43 : vector<16x32xf32>
    %cst_23 = arith.constant 0.000000e+00 : f32
    %45 = vector.broadcast %cst_23 : f32 to vector<16x32xf32>
    %46 = arith.maximumf %44, %45 : vector<16x32xf32>
    %47 = arith.truncf %46 : vector<16x32xf32> to vector<16x32xbf16>
    %c0_24 = arith.constant 0 : index
    %c0_25 = arith.constant 0 : index
    %48 = vector.load %arg9[%c0_24, %c0_25] : memref<32x128xbf16, #tpu.memory_space<vmem>>, vector<32x128xbf16>
    %cst_26 = arith.constant dense<0.000000e+00> : vector<16x128xf32>
    %49 = tpu.matmul %47, %48, %cst_26 {dimension_numbers = #tpu.dot_dimension_numbers<[1], [0], [0], [1], [0, 0, 1, 1], [], []>} : vector<16x32xbf16>, vector<32x128xbf16>, vector<16x128xf32> -> vector<16x128xf32>
    %c0_27 = arith.constant 0 : index
    %c0_28 = arith.constant 0 : index
    %50 = vector.load %arg10[%c0_27, %c0_28] : memref<1x128xf32, #tpu.memory_space<vmem>>, vector<1x128xf32>
    %51 = vector.broadcast %50 : vector<1x128xf32> to vector<16x128xf32>
    %52 = arith.addf %49, %51 : vector<16x128xf32>
    %cst_29 = arith.constant dense<0xFF800000> : vector<16xf32>
    %53 = vector.multi_reduction <maximumf>, %52, %cst_29 [1] : vector<16x128xf32> to vector<16xf32>
    %54 = vector.shape_cast %53 : vector<16xf32> to vector<16x1xf32>
    %55 = vector.broadcast %54 : vector<16x1xf32> to vector<16x128xf32>
    %56 = arith.subf %52, %55 : vector<16x128xf32>
    %57 = math.exp %56 : vector<16x128xf32>
    %cst_30 = arith.constant dense<0.000000e+00> : vector<16xf32>
    %58 = vector.multi_reduction <add>, %57, %cst_30 [1] : vector<16x128xf32> to vector<16xf32>
    %59 = vector.shape_cast %58 : vector<16xf32> to vector<16x1xf32>
    %60 = math.log %59 : vector<16x1xf32>
    %61 = vector.broadcast %60 : vector<16x1xf32> to vector<16x128xf32>
    %62 = arith.subf %56, %61 : vector<16x128xf32>
    %63 = vector.shape_cast %62 : vector<16x128xf32> to vector<2x8x128xf32>
    %c0_31 = arith.constant 0 : index
    %c0_32 = arith.constant 0 : index
    %c0_33 = arith.constant 0 : index
    %64 = vector.load %arg11[%c0_31, %c0_32, %c0_33] : memref<2x8x128xf32, #tpu.memory_space<vmem>>, vector<2x8x128xf32>
    tpu.vector_store %arg11[%c0_31, %c0_32, %c0_33], %63 {strides = array<i32>} : memref<2x8x128xf32, #tpu.memory_space<vmem>>, vector<2x8x128xf32>,
    return
  }
  func.func @transform_0(%arg0: i32) -> (i32, i32, i32) {
    %c0_i32 = arith.constant 0 : i32
    %c0_i32_0 = arith.constant 0 : i32
    %c0_i32_1 = arith.constant 0 : i32
    return %arg0, %c0_i32, %c0_i32_0 : i32, i32, i32
  }
  func.func @transform_1(%arg0: i32) -> (i32, i32) {
    %c0_i32 = arith.constant 0 : i32
    %c0_i32_0 = arith.constant 0 : i32
    %c0_i32_1 = arith.constant 0 : i32
    return %c0_i32, %c0_i32_0 : i32, i32
  }
  func.func @transform_2(%arg0: i32) -> (i32, i32) {
    %c0_i32 = arith.constant 0 : i32
    %c0_i32_0 = arith.constant 0 : i32
    %c0_i32_1 = arith.constant 0 : i32
    return %c0_i32, %c0_i32_0 : i32, i32
  }
  func.func @transform_3(%arg0: i32) -> (i32, i32) {
    %c0_i32 = arith.constant 0 : i32
    %c0_i32_0 = arith.constant 0 : i32
    %c0_i32_1 = arith.constant 0 : i32
    return %c0_i32, %c0_i32_0 : i32, i32
  }
  func.func @transform_4(%arg0: i32) -> (i32, i32) {
    %c0_i32 = arith.constant 0 : i32
    %c0_i32_0 = arith.constant 0 : i32
    %c0_i32_1 = arith.constant 0 : i32
    return %c0_i32, %c0_i32_0 : i32, i32
  }
  func.func @transform_5(%arg0: i32) -> (i32, i32) {
    %c0_i32 = arith.constant 0 : i32
    %c0_i32_0 = arith.constant 0 : i32
    %c0_i32_1 = arith.constant 0 : i32
    return %c0_i32, %c0_i32_0 : i32, i32
  }
  func.func @transform_6(%arg0: i32) -> (i32, i32) {
    %c0_i32 = arith.constant 0 : i32
    %c0_i32_0 = arith.constant 0 : i32
    %c0_i32_1 = arith.constant 0 : i32
    return %c0_i32, %c0_i32_0 : i32, i32
  }
  func.func @transform_7(%arg0: i32) -> (i32, i32) {
    %c0_i32 = arith.constant 0 : i32
    %c0_i32_0 = arith.constant 0 : i32
    %c0_i32_1 = arith.constant 0 : i32
    return %c0_i32, %c0_i32_0 : i32, i32
  }
  func.func @transform_8(%arg0: i32) -> (i32, i32) {
    %c0_i32 = arith.constant 0 : i32
    %c0_i32_0 = arith.constant 0 : i32
    %c0_i32_1 = arith.constant 0 : i32
    return %c0_i32, %c0_i32_0 : i32, i32
  }
  func.func @transform_9(%arg0: i32) -> (i32, i32) {
    %c0_i32 = arith.constant 0 : i32
    %c0_i32_0 = arith.constant 0 : i32
    %c0_i32_1 = arith.constant 0 : i32
    return %c0_i32, %c0_i32_0 : i32, i32
  }
  func.func @transform_10(%arg0: i32) -> (i32, i32, i32) {
    %c0_i32 = arith.constant 0 : i32
    %c0_i32_0 = arith.constant 0 : i32
    %c0_i32_1 = arith.constant 0 : i32
    return %arg0, %c0_i32, %c0_i32_0 : i32, i32, i32
  }
}

</mosaic_0001>

<bundles_post_ra>
// kernel: forward.11
= control target key start
LH: loop header
LB: loop body
LE: loop exit
PB: predicated region body
PF: predicated region fallthrough
CT: control target
= control target key end

     0   :  { %vm42_vm0 = vcmask 261120   ;;  %vm62_vm1 = vcmask 388096   ;;  %s124_s1 = inlined_call_operand.vmem [shape: bf16[32,48], index: 1, kind: input, shape index: {}]   ;;  %s125_s2 = inlined_call_operand.vmem [shape: f32[1,48], index: 2, kind: input, shape index: {}]   ;;  %s126_s0 = inlined_call_operand.vmem [shape: bf16[16,32], index: 0, kind: input, shape index: {}]   ;;  %s127_s3 = inlined_call_operand.vmem [shape: bf16[16,48], index: 3, kind: output, shape index: {}]  }
   0x1   :  { %v84_v0 = vld [vmem:[%s124_s1 + $0x8] sm:$0xff]  ;;  %v83_v1 = vld [vmem:[%s124_s1] sm:$0xff] }
   0x2   :  { %52 = vmatpush.bf16.msra.mxu0 %v84_v0  ;;  %v82_v2 = vld [vmem:[%s126_s0] sm:$0xff] }
   0x3   :  { %v85_v3 = vld [vmem:[%s125_s2] ss:$0 sm:$0xff] }
   0x6   :  { %53 = vmatpush.bf16.msra.mxu0 %v83_v1 }
   0x9   :  { %81 = vmatmul.msk.bf16.vlgmr.msra.gmra.mxu0 %vm42_vm0, %v82_v2 }
  0x86   :  { %v55_v4 = vpop.f32.mrf.mxu0 }
  0x87   :  { %v56_v5 = vadd.f32 %v85_v3, %v55_v4 }
  0x89   :  { %v60_v6 = vpack.c.bf16 %v56_v5, %v56_v5 }
  0x8b   :  { %63 = vst.msk [vmem:[%s127_s3] sm:$0xf] %vm62_vm1, %v60_v6 }
  0x8e   :  { %v57_v7 = vpop.f32.mrf.mxu0 }
  0x8f   :  { %v58_v8 = vadd.f32 %v85_v3, %v57_v7 }
  0x91   :  { %v61_v9 = vpack.c.bf16 %v58_v8, %v58_v8 }
  0x93   :  { %64 = vst.msk [vmem:[%s127_s3 + $0x4] sm:$0xf] %vm62_vm1, %v61_v9 }

// kernel: forward.14
= control target key start
LH: loop header
LB: loop body
LE: loop exit
PB: predicated region body
PF: predicated region fallthrough
CT: control target
= control target key end

     0   :  { %vm16_vm0 = vcmask 261120   ;;  %v86_v3 = vmov -inf   ;;  %s120_s1 = inlined_call_operand.vmem [shape: bf16[32,32], index: 1, kind: input, shape index: {}]   ;;  %s121_s0 = inlined_call_operand.vmem [shape: bf16[2,8,32], index: 0, kind: input, shape index: {}]   ;;  %s122_s2 = inlined_call_operand.vmem [shape: f32[8,32], index: 2, kind: output, shape index: {}]  }
   0x1   :  { %v84_v0 = vld [vmem:[%s120_s1 + $0x8] sm:$0xff]  ;;  %v83_v1 = vld [vmem:[%s120_s1] sm:$0xff]  ;;  %17 = vst.msk [vmem:[%s122_s2] sm:$0xff] %vm16_vm0, %v86_v3 }
   0x2   :  { %51 = vmatpush.bf16.msra.mxu0 %v84_v0  ;;  %v82_v2 = vld [vmem:[%s121_s0] sm:$0xff] }
   0x6   :  { %52 = vmatpush.bf16.msra.mxu0 %v83_v1 }
   0x8   :  { %v59_v7 = vld [vmem:[%s122_s2] sm:$0xff] }
   0x9   :  { %81 = vmatmul.msk.bf16.vlgmr.msra.gmra.mxu0 %vm16_vm0, %v82_v2 }
  0x86   :  { %v54_v4 = vpop.f32.mrf.mxu0 }
  0x87   :  { %v60_v6 = vsel %vm16_vm0, %v54_v4, -inf }
  0x8e   :  { %v56_v5 = vpop.f32.mrf.mxu0 }
  0x8f   :  { %v61_v8 = vsel %vm16_vm0, %v56_v5, -inf }
  0x90   :  { %v62_v9 = vmax.f32 %v60_v6, %v61_v8 }
  0x92   :  { %v63_v10 = vmax.f32 %v59_v7, %v62_v9 }
  0x94   :  { %64 = vst.msk [vmem:[%s122_s2] sm:$0xff] %vm16_vm0, %v63_v10 }

// kernel: forward.8
= control target key start
LH: loop header
LB: loop body
LE: loop exit
PB: predicated region body
PF: predicated region fallthrough
CT: control target
= control target key end

     0   :  { %vm38_vm0 = vcmask 1040384   ;;  %vm34_vm1 = vcmask 146432   ;;  %vm58_vm2 = vcmask 388096   ;;  %s113_s1 = inlined_call_operand.vmem [shape: bf16[18,48], index: 1, kind: input, shape index: {}]   ;;  %s114_s2 = inlined_call_operand.vmem [shape: f32[1,48], index: 2, kind: input, shape index: {}]   ;;  %s115_s0 = inlined_call_operand.vmem [shape: f32[16,18], index: 0, kind: input, shape index: {}]   ;;  %s116_s3 = inlined_call_operand.vmem [shape: bf16[16,48], index: 3, kind: output, shape index: {}]  }
   0x1   :  { %v20_v0 = vld [vmem:[%s113_s1 + $0x8] sm:$0x1]  ;;  %v70_v4 = vld [vmem:[%s113_s1] sm:$0xff] }
   0x2   :  { %v30_v1 = vunpack.c.l.b16 %v20_v0  ;;  %v15_v5 = vld [vmem:[%s115_s0] sm:$0xff]  ;;  %v16_v6 = vld [vmem:[%s115_s0 + $0x8] sm:$0xff] }
   0x3   :  { %v17_v7 = vpack.c.bf16 %v16_v6, %v15_v5  ;;  %v71_v8 = vld [vmem:[%s114_s2] ss:$0 sm:$0xff] }
   0x4   :  { %v32_v2 = vpack.c.b16 %v30_v1, %v30_v1 }
   0x6   :  { %v40_v3 = vsel %vm38_vm0, %v32_v2, 0 }
   0x7   :  { %48 = vmatpush.bf16.msra.mxu0 %v40_v3 }
   0xb   :  { %49 = vmatpush.bf16.msra.mxu0 %v70_v4 }
   0xe   :  { %69 = vmatmul.msk.bf16.vlgmr.msra.gmra.mxu0 %vm34_vm1, %v17_v7 }
  0x8b   :  { %v51_v9 = vpop.f32.mrf.mxu0 }
  0x8c   :  { %v52_v10 = vadd.f32 %v71_v8, %v51_v9 }
  0x8e   :  { %v56_v11 = vpack.c.bf16 %v52_v10, %v52_v10 }
  0x90   :  { %59 = vst.msk [vmem:[%s116_s3] sm:$0xf] %vm58_vm2, %v56_v11 }
  0x93   :  { %v53_v12 = vpop.f32.mrf.mxu0 }
  0x94   :  { %v54_v13 = vadd.f32 %v71_v8, %v53_v12 }
  0x96   :  { %v57_v14 = vpack.c.bf16 %v54_v13, %v54_v13 }
  0x98   :  { %60 = vst.msk [vmem:[%s116_s3 + $0x4] sm:$0xf] %vm58_vm2, %v57_v14 }

// kernel: forward.15
= control target key start
LH: loop header
LB: loop body
LE: loop exit
PB: predicated region body
PF: predicated region fallthrough
CT: control target
= control target key end

     0   :  { %vm63_vm0 = vcmask 261120   ;;  %vm226_vm1 = vcmask 1043456   ;;  %vm172_vm2 = vcmask 64512   ;;  %s462_s29 = smov 32   ;;  %s463_s12 = smov 96   ;;  %s589_s2 = inlined_call_operand.vmem [shape: bf16[32,32], index: 2, kind: input, shape index: {}]   ;;  %s590_s3 = inlined_call_operand.vmem [shape: f32[1,32], index: 3, kind: input, shape index: {}]   ;;  %s591_s0 = inlined_call_operand.vmem [shape: bf16[2,8,32], index: 0, kind: input, shape index: {}]   ;;  %s592_s5 = inlined_call_operand.vmem [shape: f32[1,32], index: 5, kind: input, shape index: {}]   ;;  %s593_s4 = inlined_call_operand.vmem [shape: bf16[32,64], index: 4, kind: input, shape index: {}]   ;;  %s594_s1 = inlined_call_operand.vmem [shape: f32[8,32], index: 1, kind: input, shape index: {}]   ;;  %s595_s6 = inlined_call_operand.vmem [shape: bf16[32,32], index: 6, kind: input, shape index: {}]   ;;  %s596_s7 = inlined_call_operand.vmem [shape: f32[1,32], index: 7, kind: input, shape index: {}]   ;;  %s597_s8 = inlined_call_operand.vmem [shape: bf16[32,128], index: 8, kind: input, shape index: {}]   ;;  %s598_s9 = inlined_call_operand.vmem [shape: f32[1,128], index: 9, kind: input, shape index: {}]   ;;  %s599_s10 = inlined_call_operand.vmem [shape: f32[2,8,128], index: 10, kind: output, shape index: {}]  }
   0x1   :  { %v433_v0 = vld [vmem:[%s589_s2 + $0x8] sm:$0xff]  ;;  %v432_v1 = vld [vmem:[%s589_s2] sm:$0xff] }
   0x2   :  { %73 = vmatpush.bf16.msra.mxu0 %v433_v0  ;;  %v431_v2 = vld [vmem:[%s591_s0] sm:$0xff]  ;;  %v435_v3 = vld [vmem:[%s593_s4 + $0x8] sm:$0xff] }
   0x3   :  { %118 = vmatpush.bf16.msra.mxu1 %v435_v3  ;;  %v434_v4 = vld [vmem:[%s593_s4] sm:$0xff]  ;;  %v437_v47 = vld [vmem:[%s595_s6 + $0x8] sm:$0xff] }
   0x4   :  { %v442_v5 = vld [vmem:[%s590_s3] ss:$0 sm:$0xff] }
   0x5   :  { %v81_v7 = vld [vmem:[%s594_s1] sm:$0xff] }
   0x6   :  { %74 = vmatpush.bf16.msra.mxu0 %v432_v1  ;;  %v443_v24 = vld [vmem:[%s592_s5] ss:$0 sm:$0xff] }
   0x7   :  { %119 = vmatpush.bf16.msra.mxu1 %v434_v4 }
   0x9   :  { %399 = vmatmul.msk.bf16.vlgmr.msra.gmra.mxu0 %vm63_vm0, %v431_v2 }
  0x86   :  { %v76_v6 = vpop.f32.mrf.mxu0 }
  0x87   :  { %v77_v8 = vadd.f32 %v442_v5, %v76_v6 }
  0x89   :  { %v82_v9 = vadd.f32 %v81_v7, %v77_v8 }
  0x8b   :  { %v84_v10 = vmax.f32 %v82_v9, 0.0 }
  0x8d   :  { %v86_v11 = vpack.c.bf16 %v84_v10, %v84_v10  ;;  %v436_v10 = vld [vmem:[%s595_s6] sm:$0xff] }
  0x8e   :  { %v78_v12 = vpop.f32.mrf.mxu0 }
  0x8f   :  { %v79_v13 = vadd.f32 %v442_v5, %v78_v12  ;;  %v138_v14 = vsel %vm63_vm0, %v86_v11, 0  ;;  %v227_v15 = vsel %vm226_vm1, %v86_v11, 0  ;;  %v94_v21 = vunpack.c.l.b16 %v86_v11  ;;  %v444_v11 = vld [vmem:[%s596_s7] ss:$0 sm:$0xff] }
  0x90   :  { %147 = vmatpush.bf16.xpose.msra.mxu2 %v138_v14  ;;  %236 = vmatpush.bf16.msrb.mxu0 %v227_v15 }
  0x91   :  { %v83_v16 = vadd.f32 %v81_v7, %v79_v13 }
  0x93   :  { %v85_v17 = vmax.f32 %v83_v16, 0.0 }
  0x95   :  { %v87_v18 = vpack.c.bf16 %v85_v17, %v85_v17 }
  0x97   :  { %v157_v19 = vsel %vm63_vm0, %v87_v18, 0  ;;  %v245_v20 = vsel %vm226_vm1, %v87_v18, 0  ;;  %v95_v22 = vunpack.c.l.b16 %v87_v18 }
  0x98   :  { %166 = vmatpush.bf16.xpose.msra.mxu3 %v157_v19  ;;  %254 = vmatpush.bf16.msrb.mxu1 %v245_v20 }
  0x99   :  { %v96_v23 = vpack.c.b16 %v95_v22, %v94_v21  ;;  %292 = vmatpush.bf16.msrb.mxu2 %v437_v47 }
  0x9b   :  { %408 = vmatmul.msk.bf16.vlgmr.msra.gmra.mxu1 %vm63_vm0, %v96_v23  ;;  %v439_v23 = vld [vmem:[%s597_s8 + $0x8] sm:$0xff] }
  0x9d   :  { %293 = vmatpush.bf16.msrb.mxu2 %v436_v10 }
  0xa0   :  { %353 = vmatpush.bf16.msrb.mxu3 %v439_v23 }
 0x118   :  { %v547_v25 = vpop.f32.mrf.mxu1 }
 0x119   :  { %v130_v26 = vadd.f32 %v443_v24, %v547_v25 }
 0x11b   :  { %v132_v27 = vpack.c.bf16 %v130_v26, %v130_v26 }
 0x11d   :  { %409 = vmatmul.msk.bf16.vlgmr.msra.gmra.mxu2 %vm63_vm0, %v132_v27 }
 0x120   :  { %v551_v28 = vpop.f32.mrf.mxu1 }
 0x121   :  { %v131_v29 = vadd.f32 %v443_v24, %v551_v28  ;;  %v438_v24 = vld [vmem:[%s597_s8] sm:$0xff] }
 0x122   :  { %354 = vmatpush.bf16.msrb.mxu3 %v438_v24 }
 0x123   :  { %v133_v30 = vpack.c.bf16 %v131_v29, %v131_v29 }
 0x125   :  { %410 = vmatmul.msk.bf16.vlgmr.msra.gmra.mxu3 %vm63_vm0, %v133_v30 }
 0x1a0   :  { %v149_v31 = vpop.f32.mrf.mxu2 }
 0x1a1   :  { %v173_v32 = vsel %vm172_vm2, %v149_v31, -inf }
 0x1a2   :  { %174 = vmax.xlane.f32.xlu0 %v173_v32 }
 0x1a8   :  { %v151_v33 = vpop.f32.mrf.mxu2  ;;  %v168_v34 = vpop.f32.mrf.mxu3 }
 0x1a9   :  { %v176_v35 = vsel %vm172_vm2, %v168_v34, -inf }
 0x1aa   :  { %177 = vmax.xlane.f32.xlu0 %v176_v35 }
 0x1b0   :  { %v170_v36 = vpop.f32.mrf.mxu3 }
 0x1be   :  { %313 = vrot.lane.b32.xlu0 %v444_v11, %s462_s29 }
 0x215   :  { %v175_v37 = vpop.xlane.xlu0 %174 }
 0x216   :  { %v179_v38 = vsub.f32 %v149_v31, %v175_v37 }
 0x218   :  { %v181_v39 = vmul.f32 1.442695, %v179_v38  ;;  %v445_v38 = vld [vmem:[%s598_s9] ss:$0 sm:$0xff] }
 0x21a   :  { %446 = vpow2.f32 %v181_v39 }
 0x21d   :  { %v178_v40 = vpop.xlane.xlu0 %177 }
 0x21e   :  { %v180_v41 = vsub.f32 %v168_v34, %v178_v40 }
 0x220   :  { %v447_v42 = vpop.eup %446  ;;  %v183_v43 = vmul.f32 1.442695, %v180_v41 }
 0x221   :  { %v185_v44 = vsel %vm172_vm2, %v447_v42, 0.0 }
 0x222   :  { %448 = vpow2.f32 %v183_v43  ;;  %186 = vadd.xlane.f32.xlu1 %v185_v44 }
 0x228   :  { %v449_v45 = vpop.eup %448 }
 0x229   :  { %v188_v46 = vsel %vm172_vm2, %v449_v45, 0.0 }
 0x22a   :  { %189 = vadd.xlane.f32.xlu1 %v188_v46 }
 0x230   :  { %v314_v29 = vpop.permute.xlu0 %313 }
 0x295   :  { %v187_v48 = vpop.xlane.xlu1 %186 }
 0x296   :  { %450 = vrcp.f32 %v187_v48  ;;  %v202_v53 = vand.u32 2147483648, %v187_v48  ;;  %v200_v55 = vand.u32 2147483647, %v187_v48  ;;  %vm196_vm4 = vweird.f32 %v187_v48 }
 0x298   :  { %v203_v58 = vor.u32 1.1754944e-38, %v202_v53  ;;  %vm201_vm6 = vcmp.eq.f32.partialorder %v200_v55, 8.507059e+37 }
 0x29c   :  { %v451_v49 = vpop.eup %450 }
 0x29d   :  { %v192_v50 = vmul.f32 %v451_v49, %v187_v48  ;;  %v190_v51 = vpop.xlane.xlu1 %189  ;;  %vm197_vm3 = vweird.f32 %v451_v49 }
 0x29e   :  { %452 = vrcp.f32 %v190_v51  ;;  %vm198_vm5 = vmor %vm196_vm4, %vm197_vm3  ;;  %v217_v0 = vand.u32 2147483648, %v190_v51  ;;  %v215_v2 = vand.u32 2147483647, %v190_v51  ;;  %vm211_vm8 = vweird.f32 %v190_v51 }
 0x29f   :  { %v193_v52 = vsub.f32 1.0, %v192_v50 }
 0x2a0   :  { %v218_v5 = vor.u32 1.1754944e-38, %v217_v0  ;;  %vm216_vm10 = vcmp.eq.f32.partialorder %v215_v2, 8.507059e+37 }
 0x2a1   :  { %v194_v54 = vmul.f32 %v451_v49, %v193_v52 }
 0x2a3   :  { %v195_v56 = vadd.f32 %v451_v49, %v194_v54 }
 0x2a4   :  { %v453_v57 = vpop.eup %452 }
 0x2a5   :  { %v207_v59 = vmul.f32 %v453_v57, %v190_v51  ;;  %v199_v60 = vsel %vm198_vm5, %v451_v49, %v195_v56  ;;  %vm212_vm7 = vweird.f32 %v453_v57 }
 0x2a6   :  { %v204_v61 = vsel %vm201_vm6, %v203_v58, %v199_v60  ;;  %vm213_vm9 = vmor %vm211_vm8, %vm212_vm7 }
 0x2a7   :  { %v208_v62 = vsub.f32 1.0, %v207_v59  ;;  %v205_v63 = vmul.f32 %v447_v42, %v204_v61 }
 0x2a9   :  { %v209_v1 = vmul.f32 %v453_v57, %v208_v62  ;;  %v221_v3 = vpack.c.bf16 %v205_v63, %v205_v63 }
 0x2ab   :  { %v210_v4 = vadd.f32 %v453_v57, %v209_v1  ;;  %411 = vmatmul.msk.bf16.vlgmr.msrb.gmra.mxu0 %vm172_vm2, %v221_v3 }
 0x2ad   :  { %v214_v6 = vsel %vm213_vm9, %v453_v57, %v210_v4 }
 0x2ae   :  { %v219_v7 = vsel %vm216_vm10, %v218_v5, %v214_v6 }
 0x2af   :  { %v220_v8 = vmul.f32 %v449_v45, %v219_v7 }
 0x2b1   :  { %v222_v9 = vpack.c.bf16 %v220_v8, %v220_v8 }
 0x2b3   :  { %412 = vmatmul.msk.bf16.vlgmr.msrb.gmra.mxu1 %vm172_vm2, %v222_v9 }
 0x328   :  { %v238_v12 = vpop.f32.mrf.mxu0 }
 0x329   :  { %v260_v13 = vpack.c.bf16 %v238_v12, %v238_v12 }
 0x32b   :  { %v268_v17 = vunpack.c.l.b16 %v260_v13 }
 0x330   :  { %v240_v14 = vpop.f32.mrf.mxu0  ;;  %v256_v15 = vpop.f32.mrf.mxu1 }
 0x331   :  { %v261_v16 = vpack.c.bf16 %v256_v15, %v256_v15 }
 0x333   :  { %v269_v18 = vunpack.c.l.b16 %v261_v16 }
 0x335   :  { %v270_v19 = vpack.c.b16 %v269_v18, %v268_v17 }
 0x337   :  { %421 = vmatmul.msk.bf16.vlgmr.msrb.gmra.mxu2 %vm63_vm0, %v270_v19 }
 0x338   :  { %v258_v20 = vpop.f32.mrf.mxu1 }
 0x3ba   :  { %v295_v21 = vpop.f32.mrf.mxu2 }
 0x3bb   :  { %302 = vrot.lane.b32.xlu2 %v295_v21, %s462_s29 }
 0x3c2   :  { %v297_v22 = vpop.f32.mrf.mxu2 }
 0x3c3   :  { %304 = vrot.lane.b32.xlu2 %v297_v22, %s462_s29 }
 0x415   :  { %v303_v26 = vpop.permute.xlu2 %302 }
 0x416   :  { %v308_v27 = vadd.f32 %v303_v26, %v547_v25 }
 0x418   :  { %v316_v31 = vadd.f32 %v314_v29, %v308_v27 }
 0x41a   :  { %v318_v34 = vmax.f32 %v316_v31, 0.0 }
 0x41d   :  { %v305_v30 = vpop.permute.xlu2 %304 }
 0x41e   :  { %v309_v32 = vadd.f32 %v305_v30, %v551_v28 }
 0x420   :  { %v317_v33 = vadd.f32 %v314_v29, %v309_v32 }
 0x422   :  { %v319_v35 = vmax.f32 %v317_v33, 0.0 }
 0x424   :  { %v320_v36 = vpack.c.bf16 %v319_v35, %v318_v34 }
 0x426   :  { %330 = vrot.lane.b32.xlu1 %v320_v36, %s463_s12 }
 0x498   :  { %v331_v37 = vpop.permute.xlu1 %330 }
 0x499   :  { %430 = vmatmul.msk.bf16.vlgmr.msrb.gmra.mxu3 %vm63_vm0, %v331_v37 }
 0x51c   :  { %v356_v39 = vpop.f32.mrf.mxu3 }
 0x51d   :  { %v357_v25 = vadd.f32 %v445_v38, %v356_v39 }
 0x51f   :  { %361 = vmax.xlane.f32.xlu2 %v357_v25 }
 0x524   :  { %v358_v40 = vpop.f32.mrf.mxu3 }
 0x525   :  { %v359_v41 = vadd.f32 %v445_v38, %v358_v40 }
 0x527   :  { %363 = vmax.xlane.f32.xlu0 %v359_v41 }
 0x592   :  { %v362_v28 = vpop.xlane.xlu2 %361 }
 0x593   :  { %v365_v42 = vsub.f32 %v357_v25, %v362_v28 }
 0x595   :  { %v367_v43 = vmul.f32 1.442695, %v365_v42 }
 0x597   :  { %454 = vpow2.f32 %v367_v43 }
 0x59a   :  { %v364_v44 = vpop.xlane.xlu0 %363 }
 0x59b   :  { %v366_v45 = vsub.f32 %v359_v41, %v364_v44 }
 0x59d   :  { %v455_v46 = vpop.eup %454  ;;  %v369_v47 = vmul.f32 1.442695, %v366_v45 }
 0x59e   :  { %371 = vadd.xlane.f32.xlu1 %v455_v46 }
 0x59f   :  { %456 = vpow2.f32 %v369_v47 }
 0x5a5   :  { %v457_v48 = vpop.eup %456 }
 0x5a6   :  { %373 = vadd.xlane.f32.xlu2 %v457_v48 }
 0x611   :  { %v372_v49 = vpop.xlane.xlu1 %371 }
 0x612   :  { %458 = vlog2.f32 %v372_v49 }
 0x618   :  { %v459_v50 = vpop.eup %458 }
 0x619   :  { %v376_v51 = vmul.f32 0.6931472, %v459_v50  ;;  %v374_v52 = vpop.xlane.xlu2 %373 }
 0x61a   :  { %460 = vlog2.f32 %v374_v52 }
 0x61b   :  { %v379_v53 = vsub.f32 %v365_v42, %v376_v51 }
 0x61d   :  { %381 = vst [vmem:[%s599_s10] sm:$0xff] %v379_v53 }
 0x620   :  { %v461_v54 = vpop.eup %460 }
 0x621   :  { %v378_v55 = vmul.f32 0.6931472, %v461_v54 }
 0x623   :  { %v380_v56 = vsub.f32 %v366_v45, %v378_v55 }
 0x625   :  { %382 = vst [vmem:[%s599_s10 + $0x8] sm:$0xff] %v380_v56 }

// kernel: forward.10
= control target key start
LH: loop header
LB: loop body
LE: loop exit
PB: predicated region body
PF: predicated region fallthrough
CT: control target
= control target key end

     0   :  { %vm55_vm0 = vcmask 123904   ;;  %v1617_v2 = vmov 0.0   ;;  %vm79_vm1 = vcmask 130048   ;;  %s1618_s23 = smov 96   ;;  %s1619_s30 = smov 32   ;;  %s2121_s2 = inlined_call_operand.vmem [shape: bf16[2,16,48], index: 2, kind: input, shape index: {}]   ;;  %s2122_s3 = inlined_call_operand.vmem [shape: f32[2,1,48], index: 3, kind: input, shape index: {}]   ;;  %s2123_s0 = inlined_call_operand.vmem [shape: bf16[8,2,48], index: 0, kind: input, shape index: {}]   ;;  %s2124_s1 = inlined_call_operand.vmem [shape: bf16[8,2,48], index: 1, kind: input, shape index: {}]   ;;  %s2125_s4 = inlined_call_operand.vmem [shape: bf16[8,2,16], index: 4, kind: output, shape index: {0}]   ;;  %s2126_s5 = inlined_call_operand.vmem [shape: bf16[8,2,16], index: 5, kind: output, shape index: {1}]  }
   0x1   :  { %v1655_v0 = vld [vmem:[%s2121_s2] sm:$0xff]  ;;  %v1660_v1 = vld [vmem:[%s2121_s2 + $0x8] sm:$0xff]  ;;  %56 = vst.msk [vmem:[#allocation2] sm:$0x3] %vm55_vm0, %v1617_v2  ;;  %s1620_s6 = smov 16   ;;  %s1621_s7 = smov 112  }
   0x2   :  { %57 = vst.msk [vmem:[#allocation3] sm:$0x3] %vm55_vm0, %v1617_v2  ;;  %90 = vmatpush.bf16.msra.mxu0 %v1655_v0  ;;  %163 = vmatpush.bf16.msra.mxu1 %v1660_v1  ;;  %v1687_v7 = vld [vmem:[%s2122_s3] ss:$0 sm:$0xff]  ;;  %v1694_v11 = vld [vmem:[%s2122_s3 + $0x1] ss:$0 sm:$0xff] }
   0x3   :  { %267 = vmatpush.bf16.msra.mxu2 %v1655_v0  ;;  %331 = vmatpush.bf16.msra.mxu3 %v1660_v1  ;;  %v66_v15 = vld [vmem:[%s2123_s0] sm:$0x1]  ;;  %v1448_v18 = vld [vmem:[%s2124_s1 + $0x7] sm:$0x1] }
   0x4   :  { %v67_v16 = vunpack.c.l.bf16 %v66_v15  ;;  %v141_v20 = vunpack.c.l.bf16 %v1448_v18 }
   0x6   :  { %433 = vmatpush.bf16.msrb.mxu0 %v1655_v0  ;;  %497 = vmatpush.bf16.msrb.mxu1 %v1660_v1 }
   0x7   :  { %663 = vmatpush.bf16.msrb.mxu3 %v1660_v1  ;;  %599 = vmatpush.bf16.msrb.mxu2 %v1655_v0 }
   0x8   :  { %v1672_v3 = vld [vmem:[#allocation2] sm:$0x3] }
   0x9   :  { %v69_v4 = vpack.c.bf16 %v1672_v3, %v1672_v3  ;;  %v1676_v5 = vld [vmem:[#allocation3] sm:$0x3] }
   0xa   :  { %v143_v6 = vpack.c.bf16 %v1676_v5, %v1676_v5 }
   0xb   :  { %1446 = vmatmul.msk.bf16.vlgmr.msra.gmra.mxu0 %vm79_vm1, %v69_v4 }
   0xc   :  { %1453 = vmatmul.msk.bf16.vlgmr.msra.gmra.mxu1 %vm79_vm1, %v143_v6  ;;  %765 = vmatpush.bf16.msra.mxu0 %v1655_v0 }
   0xd   :  { %829 = vmatpush.bf16.msra.mxu1 %v1660_v1 }
  0x88   :  { %v92_v8 = vpop.f32.mrf.mxu0 }
  0x89   :  { %v93_v9 = vadd.f32 %v1687_v7, %v92_v8  ;;  %v165_v10 = vpop.f32.mrf.mxu1 }
  0x8a   :  { %v166_v13 = vadd.f32 %v1694_v11, %v165_v10 }
  0x8b   :  { %117 = vrot.lane.b32.xlu0 %v93_v9, %s1618_s23  ;;  %v96_v17 = vadd.f32 %v93_v9, %v67_v16 }
  0x8c   :  { %v169_v21 = vadd.f32 %v166_v13, %v141_v20 }
  0x8d   :  { %v1447_v19 = vmul.f32 -1.442695, %v96_v17 }
  0x8e   :  { %v1454_v22 = vmul.f32 -1.442695, %v169_v21 }
  0x8f   :  { %1519 = vpow2.f32 %v1447_v19 }
  0x90   :  { %v94_v12 = vpop.f32.mrf.mxu0  ;;  %1521 = vpow2.f32 %v1454_v22 }
  0x91   :  { %v167_v14 = vpop.f32.mrf.mxu1 }
  0x93   :  { %190 = vrot.lane.b32.xlu0 %v166_v13, %s1618_s23 }
  0x95   :  { %v1520_v23 = vpop.eup %1519 }
  0x96   :  { %v100_v24 = vadd.f32 1.0, %v1520_v23  ;;  %v1522_v25 = vpop.eup %1521  ;;  %v1456_v23 = vld [vmem:[%s2123_s0 + $0x1] sm:$0x1] }
  0x97   :  { %v173_v26 = vadd.f32 1.0, %v1522_v25 }
  0x98   :  { %1523 = vrcp.f32 %v100_v24  ;;  %v112_v35 = vand.u32 2147483648, %v100_v24  ;;  %vm106_vm3 = vweird.f32 %v100_v24  ;;  %v110_v36 = vand.u32 2147483647, %v100_v24 }
  0x99   :  { %1525 = vrcp.f32 %v173_v26  ;;  %vm179_vm6 = vweird.f32 %v173_v26  ;;  %v185_v44 = vand.u32 2147483648, %v173_v26  ;;  %v183_v45 = vand.u32 2147483647, %v173_v26 }
  0x9a   :  { %v113_v39 = vor.u32 1.1754944e-38, %v112_v35  ;;  %vm111_vm5 = vcmp.eq.f32.partialorder %v110_v36, 8.507059e+37 }
  0x9b   :  { %v186_v47 = vor.u32 1.1754944e-38, %v185_v44  ;;  %vm184_vm9 = vcmp.eq.f32.partialorder %v183_v45, 8.507059e+37 }
  0x9e   :  { %v1524_v27 = vpop.eup %1523 }
  0x9f   :  { %v102_v28 = vmul.f32 %v1524_v27, %v100_v24  ;;  %v1526_v30 = vpop.eup %1525  ;;  %vm107_vm2 = vweird.f32 %v1524_v27  ;;  %v254_v24 = vunpack.c.l.bf16 %v1456_v23 }
  0xa0   :  { %v175_v32 = vmul.f32 %v1526_v30, %v173_v26  ;;  %vm108_vm4 = vmor %vm106_vm3, %vm107_vm2  ;;  %vm180_vm7 = vweird.f32 %v1526_v30 }
  0xa1   :  { %v103_v29 = vsub.f32 1.0, %v102_v28  ;;  %vm181_vm8 = vmor %vm179_vm6, %vm180_vm7 }
  0xa2   :  { %v176_v34 = vsub.f32 1.0, %v175_v32 }
  0xa3   :  { %v104_v31 = vmul.f32 %v1524_v27, %v103_v29  ;;  %v1459_v29 = vld [vmem:[%s2124_s1 + $0x6] sm:$0x1] }
  0xa4   :  { %v177_v38 = vmul.f32 %v1526_v30, %v176_v34 }
  0xa5   :  { %v105_v33 = vadd.f32 %v1524_v27, %v104_v31 }
  0xa6   :  { %v178_v43 = vadd.f32 %v1526_v30, %v177_v38 }
  0xa7   :  { %v109_v37 = vsel %vm108_vm4, %v1524_v27, %v105_v33 }
  0xa8   :  { %v114_v41 = vsel %vm111_vm5, %v113_v39, %v109_v37  ;;  %v182_v46 = vsel %vm181_vm8, %v1526_v30, %v178_v43  ;;  %v318_v30 = vunpack.c.l.bf16 %v1459_v29 }
  0xa9   :  { %v187_v49 = vsel %vm184_vm9, %v186_v47, %v182_v46  ;;  %v127_v58 = vsub.f32 1.0, %v114_v41 }
  0xaa   :  { %v200_v4 = vsub.f32 1.0, %v187_v49 }
  0xfd   :  { %v118_v40 = vpop.permute.xlu0 %117 }
  0xfe   :  { %v120_v42 = vmul.f32 %v118_v40, %v114_v41 }
 0x100   :  { %122 = vrot.lane.b32.xlu1 %v120_v42, %s1619_s30 }
 0x105   :  { %v191_v48 = vpop.permute.xlu0 %190 }
 0x106   :  { %v193_v50 = vmul.f32 %v191_v48, %v187_v49 }
 0x108   :  { %195 = vrot.lane.b32.xlu1 %v193_v50, %s1619_s30 }
 0x110   :  { %207 = vrot.lane.b32.xlu1 %v1676_v5, %s1620_s6 }
 0x172   :  { %v123_v51 = vpop.permute.xlu1 %122 }
 0x173   :  { %v125_v52 = vadd.f32 %v123_v51, %v67_v16 }
 0x175   :  { %1527 = vtanh.f32 %v125_v52 }
 0x17a   :  { %v196_v53 = vpop.permute.xlu1 %195 }
 0x17b   :  { %v1528_v54 = vpop.eup %1527  ;;  %v198_v55 = vadd.f32 %v196_v53, %v141_v20 }
 0x17c   :  { %129 = vrot.lane.b32.xlu2 %v1528_v54, %s1621_s7 }
 0x17d   :  { %1529 = vtanh.f32 %v198_v55 }
 0x182   :  { %v208_v2 = vpop.permute.xlu1 %207 }
 0x183   :  { %v1530_v56 = vpop.eup %1529  ;;  %v210_v6 = vmul.f32 %v208_v2, %v187_v49 }
 0x184   :  { %134 = vrot.lane.b32.xlu2 %v1672_v3, %s1620_s6  ;;  %202 = vrot.lane.b32.xlu0 %v1530_v56, %s1621_s7 }
 0x1d6   :  { %v130_v57 = vpop.permute.xlu2 %129 }
 0x1d7   :  { %v132_v60 = vmul.f32 %v130_v57, %v127_v58 }
 0x1de   :  { %v135_v59 = vpop.permute.xlu2 %134 }
 0x1df   :  { %v137_v61 = vmul.f32 %v135_v59, %v114_v41 }
 0x1e1   :  { %v1712_v62 = vadd.f32 %v137_v61, %v132_v60 }
 0x1e3   :  { %213 = vst [vmem:[#allocation1] ss:$4 sm:$0xff] %v1712_v62 }
 0x1ea   :  { %v214_v63 = vld.sshfl [vmem:[#allocation1] sm:$0xff pattern:$0x73625140] }
 0x1eb   :  { %215 = vrot.lane.b32.xlu2 %v214_v63, %s1621_s7 }
 0x1f6   :  { %v203_v5 = vpop.permute.xlu0 %202 }
 0x1f7   :  { %v205_v8 = vmul.f32 %v203_v5, %v200_v4 }
 0x1f9   :  { %v1716_v3 = vadd.f32 %v210_v6, %v205_v8 }
 0x1fb   :  { %221 = vst [vmem:[#allocation1] ss:$4 sm:$0xff] %v1716_v3 }
 0x202   :  { %v222_v9 = vld.sshfl [vmem:[#allocation1] sm:$0xff pattern:$0x73625140] }
 0x203   :  { %223 = vrot.lane.b32.xlu0 %v222_v9, %s1621_s7 }
 0x245   :  { %v216_v10 = vpop.permute.xlu2 %215 }
 0x246   :  { %219 = vst.msk [vmem:[#allocation2] sm:$0x3] %vm55_vm0, %v216_v10 }
 0x24d   :  { %v255_v12 = vld [vmem:[#allocation2] sm:$0x3] }
 0x24e   :  { %v256_v13 = vpack.c.bf16 %v255_v12, %v255_v12 }
 0x250   :  { %1457 = vmatmul.msk.bf16.vlgmr.msra.gmra.mxu2 %vm79_vm1, %v256_v13 }
 0x251   :  { %931 = vmatpush.bf16.msra.mxu2 %v1655_v0 }
 0x275   :  { %v224_v14 = vpop.permute.xlu0 %223 }
 0x276   :  { %226 = vst.msk [vmem:[#allocation3] sm:$0x3] %vm55_vm0, %v224_v14 }
 0x27d   :  { %v1724_v15 = vld [vmem:[#allocation3] sm:$0x3] }
 0x27e   :  { %v320_v16 = vpack.c.bf16 %v1724_v15, %v1724_v15 }
 0x280   :  { %1460 = vmatmul.msk.bf16.vlgmr.msra.gmra.mxu3 %vm79_vm1, %v320_v16 }
 0x281   :  { %995 = vmatpush.bf16.msra.mxu3 %v1660_v1 }
 0x2d3   :  { %v269_v17 = vpop.f32.mrf.mxu2 }
 0x2d4   :  { %v270_v18 = vadd.f32 %v1687_v7, %v269_v17 }
 0x2d6   :  { %294 = vrot.lane.b32.xlu1 %v270_v18, %s1618_s23  ;;  %v273_v25 = vadd.f32 %v270_v18, %v254_v24 }
 0x2d8   :  { %v1458_v26 = vmul.f32 -1.442695, %v273_v25 }
 0x2da   :  { %1531 = vpow2.f32 %v1458_v26 }
 0x2db   :  { %v271_v19 = vpop.f32.mrf.mxu2 }
 0x2e0   :  { %v1532_v27 = vpop.eup %1531 }
 0x2e1   :  { %v277_v28 = vadd.f32 1.0, %v1532_v27 }
 0x2e3   :  { %1533 = vrcp.f32 %v277_v28  ;;  %v289_v40 = vand.u32 2147483648, %v277_v28  ;;  %vm283_vm11 = vweird.f32 %v277_v28  ;;  %v287_v41 = vand.u32 2147483647, %v277_v28 }
 0x2e5   :  { %v290_v43 = vor.u32 1.1754944e-38, %v289_v40  ;;  %vm288_vm13 = vcmp.eq.f32.partialorder %v287_v41, 8.507059e+37 }
 0x2e9   :  { %v1534_v32 = vpop.eup %1533 }
 0x2ea   :  { %v279_v34 = vmul.f32 %v1534_v32, %v277_v28  ;;  %vm284_vm10 = vweird.f32 %v1534_v32 }
 0x2eb   :  { %vm285_vm12 = vmor %vm283_vm11, %vm284_vm10 }
 0x2ec   :  { %v280_v35 = vsub.f32 1.0, %v279_v34 }
 0x2ee   :  { %v281_v37 = vmul.f32 %v1534_v32, %v280_v35 }
 0x2f0   :  { %v282_v39 = vadd.f32 %v1534_v32, %v281_v37 }
 0x2f2   :  { %v286_v42 = vsel %vm285_vm12, %v1534_v32, %v282_v39 }
 0x2f3   :  { %v291_v44 = vsel %vm288_vm13, %v290_v43, %v286_v42 }
 0x2f4   :  { %v304_v6 = vsub.f32 1.0, %v291_v44 }
 0x303   :  { %v333_v20 = vpop.f32.mrf.mxu3 }
 0x304   :  { %v334_v21 = vadd.f32 %v1694_v11, %v333_v20 }
 0x306   :  { %358 = vrot.lane.b32.xlu2 %v334_v21, %s1618_s23  ;;  %v337_v31 = vadd.f32 %v334_v21, %v318_v30 }
 0x308   :  { %v1461_v33 = vmul.f32 -1.442695, %v337_v31 }
 0x30a   :  { %1535 = vpow2.f32 %v1461_v33 }
 0x30b   :  { %v335_v22 = vpop.f32.mrf.mxu3 }
 0x310   :  { %v1536_v36 = vpop.eup %1535 }
 0x311   :  { %v341_v38 = vadd.f32 1.0, %v1536_v36 }
 0x313   :  { %1537 = vrcp.f32 %v341_v38  ;;  %v353_v52 = vand.u32 2147483648, %v341_v38  ;;  %vm347_vm15 = vweird.f32 %v341_v38  ;;  %v351_v53 = vand.u32 2147483647, %v341_v38 }
 0x315   :  { %v354_v55 = vor.u32 1.1754944e-38, %v353_v52  ;;  %vm352_vm3 = vcmp.eq.f32.partialorder %v351_v53, 8.507059e+37 }
 0x319   :  { %v1538_v47 = vpop.eup %1537 }
 0x31a   :  { %v343_v48 = vmul.f32 %v1538_v47, %v341_v38  ;;  %vm348_vm14 = vweird.f32 %v1538_v47 }
 0x31b   :  { %vm349_vm2 = vmor %vm347_vm15, %vm348_vm14 }
 0x31c   :  { %v344_v49 = vsub.f32 1.0, %v343_v48 }
 0x31e   :  { %v345_v50 = vmul.f32 %v1538_v47, %v344_v49 }
 0x320   :  { %v346_v51 = vadd.f32 %v1538_v47, %v345_v50 }
 0x322   :  { %v350_v54 = vsel %vm349_vm2, %v1538_v47, %v346_v51  ;;  %v1467_v51 = vld [vmem:[%s2124_s1 + $0x5] sm:$0x1] }
 0x323   :  { %v355_v57 = vsel %vm352_vm3, %v354_v55, %v350_v54  ;;  %v484_v52 = vunpack.c.l.bf16 %v1467_v51 }
 0x348   :  { %v295_v45 = vpop.permute.xlu1 %294 }
 0x349   :  { %v297_v46 = vmul.f32 %v295_v45, %v291_v44 }
 0x34b   :  { %299 = vrot.lane.b32.xlu0 %v297_v46, %s1619_s30 }
 0x353   :  { %311 = vrot.lane.b32.xlu0 %v255_v12, %s1620_s6 }
 0x360   :  { %v359_v56 = vpop.permute.xlu2 %358 }
 0x361   :  { %v361_v58 = vmul.f32 %v359_v56, %v355_v57 }
 0x363   :  { %363 = vrot.lane.b32.xlu1 %v361_v58, %s1619_s30 }
 0x3bd   :  { %v300_v59 = vpop.permute.xlu0 %299 }
 0x3be   :  { %v302_v60 = vadd.f32 %v300_v59, %v254_v24 }
 0x3c0   :  { %1539 = vtanh.f32 %v302_v60 }
 0x3c5   :  { %v312_v5 = vpop.permute.xlu0 %311 }
 0x3c6   :  { %v1540_v61 = vpop.eup %1539  ;;  %v314_v9 = vmul.f32 %v312_v5, %v291_v44 }
 0x3c7   :  { %306 = vrot.lane.b32.xlu2 %v1540_v61, %s1621_s7 }
 0x3cf   :  { %375 = vrot.lane.b32.xlu2 %v1724_v15, %s1620_s6  ;;  %v368_v15 = vsub.f32 1.0, %v355_v57 }
 0x3d5   :  { %v364_v63 = vpop.permute.xlu1 %363 }
 0x3d6   :  { %v366_v2 = vadd.f32 %v364_v63, %v318_v30  ;;  %v1464_v30 = vld [vmem:[%s2123_s0 + $0x2] sm:$0x1] }
 0x3d7   :  { %v420_v31 = vunpack.c.l.bf16 %v1464_v30 }
 0x3d8   :  { %1541 = vtanh.f32 %v366_v2 }
 0x3de   :  { %v1542_v4 = vpop.eup %1541 }
 0x3df   :  { %370 = vrot.lane.b32.xlu1 %v1542_v4, %s1621_s7 }
 0x421   :  { %v307_v8 = vpop.permute.xlu2 %306 }
 0x422   :  { %v309_v10 = vmul.f32 %v307_v8, %v304_v6 }
 0x424   :  { %v1747_v12 = vadd.f32 %v314_v9, %v309_v10 }
 0x426   :  { %381 = vst [vmem:[#allocation1] ss:$4 sm:$0xff] %v1747_v12 }
 0x429   :  { %v376_v14 = vpop.permute.xlu2 %375 }
 0x42a   :  { %v378_v17 = vmul.f32 %v376_v14, %v355_v57 }
 0x42d   :  { %v382_v13 = vld.sshfl [vmem:[#allocation1] sm:$0xff pattern:$0x73625140] }
 0x42e   :  { %383 = vrot.lane.b32.xlu0 %v382_v13, %s1621_s7 }
 0x451   :  { %v371_v16 = vpop.permute.xlu1 %370 }
 0x452   :  { %v373_v18 = vmul.f32 %v371_v16, %v368_v15 }
 0x454   :  { %v1751_v19 = vadd.f32 %v378_v17, %v373_v18 }
 0x456   :  { %388 = vst [vmem:[#allocation1] ss:$4 sm:$0xff] %v1751_v19 }
 0x45d   :  { %v389_v20 = vld.sshfl [vmem:[#allocation1] sm:$0xff pattern:$0x73625140] }
 0x45e   :  { %390 = vrot.lane.b32.xlu1 %v389_v20, %s1621_s7 }
 0x4a0   :  { %v384_v21 = vpop.permute.xlu0 %383 }
 0x4a1   :  { %386 = vst.msk [vmem:[#allocation2] sm:$0x3] %vm55_vm0, %v384_v21 }
 0x4a8   :  { %v421_v22 = vld [vmem:[#allocation2] sm:$0x3] }
 0x4a9   :  { %v422_v23 = vpack.c.bf16 %v421_v22, %v421_v22 }
 0x4ab   :  { %1465 = vmatmul.msk.bf16.vlgmr.msrb.gmra.mxu0 %vm79_vm1, %v422_v23 }
 0x4ac   :  { %1097 = vmatpush.bf16.msrb.mxu0 %v1655_v0 }
 0x4d0   :  { %v391_v24 = vpop.permute.xlu1 %390 }
 0x4d1   :  { %393 = vst.msk [vmem:[#allocation3] sm:$0x3] %vm55_vm0, %v391_v24 }
 0x4d8   :  { %v1759_v25 = vld [vmem:[#allocation3] sm:$0x3] }
 0x4d9   :  { %v486_v26 = vpack.c.bf16 %v1759_v25, %v1759_v25 }
 0x4db   :  { %1468 = vmatmul.msk.bf16.vlgmr.msrb.gmra.mxu1 %vm79_vm1, %v486_v26 }
 0x4dc   :  { %1161 = vmatpush.bf16.msrb.mxu1 %v1660_v1 }
 0x528   :  { %v435_v27 = vpop.f32.mrf.mxu0 }
 0x529   :  { %v436_v28 = vadd.f32 %v1687_v7, %v435_v27 }
 0x52b   :  { %460 = vrot.lane.b32.xlu2 %v436_v28, %s1618_s23  ;;  %v439_v32 = vadd.f32 %v436_v28, %v420_v31 }
 0x52d   :  { %v1466_v33 = vmul.f32 -1.442695, %v439_v32 }
 0x52f   :  { %1543 = vpow2.f32 %v1466_v33 }
 0x530   :  { %v437_v29 = vpop.f32.mrf.mxu0 }
 0x535   :  { %v1544_v37 = vpop.eup %1543 }
 0x536   :  { %v443_v38 = vadd.f32 1.0, %v1544_v37 }
 0x538   :  { %1545 = vrcp.f32 %v443_v38  ;;  %v455_v44 = vand.u32 2147483648, %v443_v38  ;;  %vm449_vm5 = vweird.f32 %v443_v38  ;;  %v453_v45 = vand.u32 2147483647, %v443_v38 }
 0x53a   :  { %v456_v47 = vor.u32 1.1754944e-38, %v455_v44  ;;  %vm454_vm7 = vcmp.eq.f32.partialorder %v453_v45, 8.507059e+37  ;;  %v1472_v45 = vld [vmem:[%s2123_s0 + $0x3] sm:$0x1] }
 0x53e   :  { %v1546_v39 = vpop.eup %1545 }
 0x53f   :  { %v445_v40 = vmul.f32 %v1546_v39, %v443_v38  ;;  %vm450_vm4 = vweird.f32 %v1546_v39 }
 0x540   :  { %vm451_vm6 = vmor %vm449_vm5, %vm450_vm4 }
 0x541   :  { %v446_v41 = vsub.f32 1.0, %v445_v40 }
 0x543   :  { %v447_v42 = vmul.f32 %v1546_v39, %v446_v41 }
 0x545   :  { %v448_v43 = vadd.f32 %v1546_v39, %v447_v42 }
 0x547   :  { %v452_v46 = vsel %vm451_vm6, %v1546_v39, %v448_v43 }
 0x548   :  { %v457_v49 = vsel %vm454_vm7, %v456_v47, %v452_v46 }
 0x549   :  { %v470_v20 = vsub.f32 1.0, %v457_v49 }
 0x558   :  { %v499_v34 = vpop.f32.mrf.mxu1 }
 0x559   :  { %v500_v35 = vadd.f32 %v1694_v11, %v499_v34 }
 0x55b   :  { %524 = vrot.lane.b32.xlu0 %v500_v35, %s1618_s23  ;;  %v503_v53 = vadd.f32 %v500_v35, %v484_v52 }
 0x55d   :  { %v1469_v54 = vmul.f32 -1.442695, %v503_v53 }
 0x55f   :  { %1547 = vpow2.f32 %v1469_v54 }
 0x560   :  { %v501_v36 = vpop.f32.mrf.mxu1 }
 0x565   :  { %v1548_v55 = vpop.eup %1547 }
 0x566   :  { %v507_v56 = vadd.f32 1.0, %v1548_v55 }
 0x568   :  { %1549 = vrcp.f32 %v507_v56  ;;  %v519_v63 = vand.u32 2147483648, %v507_v56  ;;  %vm513_vm9 = vweird.f32 %v507_v56  ;;  %v517_v2 = vand.u32 2147483647, %v507_v56 }
 0x56a   :  { %v520_v5 = vor.u32 1.1754944e-38, %v519_v63  ;;  %vm518_vm11 = vcmp.eq.f32.partialorder %v517_v2, 8.507059e+37 }
 0x56e   :  { %v1550_v57 = vpop.eup %1549 }
 0x56f   :  { %v509_v58 = vmul.f32 %v1550_v57, %v507_v56  ;;  %vm514_vm8 = vweird.f32 %v1550_v57 }
 0x570   :  { %vm515_vm10 = vmor %vm513_vm9, %vm514_vm8 }
 0x571   :  { %v510_v59 = vsub.f32 1.0, %v509_v58 }
 0x573   :  { %v511_v60 = vmul.f32 %v1550_v57, %v510_v59 }
 0x575   :  { %v512_v61 = vadd.f32 %v1550_v57, %v511_v60 }
 0x577   :  { %v516_v4 = vsel %vm515_vm10, %v1550_v57, %v512_v61 }
 0x578   :  { %v521_v8 = vsel %vm518_vm11, %v520_v5, %v516_v4 }
 0x585   :  { %v461_v48 = vpop.permute.xlu2 %460 }
 0x586   :  { %v463_v50 = vmul.f32 %v461_v48, %v457_v49 }
 0x588   :  { %465 = vrot.lane.b32.xlu1 %v463_v50, %s1619_s30 }
 0x590   :  { %477 = vrot.lane.b32.xlu1 %v421_v22, %s1620_s6 }
 0x5cd   :  { %v525_v6 = vpop.permute.xlu0 %524 }
 0x5ce   :  { %v527_v9 = vmul.f32 %v525_v6, %v521_v8 }
 0x5d0   :  { %529 = vrot.lane.b32.xlu2 %v527_v9, %s1619_s30 }
 0x5fa   :  { %v466_v10 = vpop.permute.xlu1 %465 }
 0x5fb   :  { %v468_v13 = vadd.f32 %v466_v10, %v420_v31 }
 0x5fd   :  { %1551 = vtanh.f32 %v468_v13 }
 0x602   :  { %v478_v18 = vpop.permute.xlu1 %477 }
 0x603   :  { %v1552_v14 = vpop.eup %1551  ;;  %v480_v22 = vmul.f32 %v478_v18, %v457_v49 }
 0x604   :  { %472 = vrot.lane.b32.xlu0 %v1552_v14, %s1621_s7 }
 0x60c   :  { %541 = vrot.lane.b32.xlu0 %v1759_v25, %s1620_s6  ;;  %v534_v25 = vsub.f32 1.0, %v521_v8 }
 0x62a   :  { %v530_v15 = vpop.permute.xlu2 %529 }
 0x62b   :  { %v532_v16 = vadd.f32 %v530_v15, %v484_v52 }
 0x62d   :  { %1553 = vtanh.f32 %v532_v16 }
 0x633   :  { %v1554_v17 = vpop.eup %1553 }
 0x634   :  { %536 = vrot.lane.b32.xlu2 %v1554_v17, %s1621_s7 }
 0x676   :  { %v473_v21 = vpop.permute.xlu0 %472 }
 0x677   :  { %v475_v23 = vmul.f32 %v473_v21, %v470_v20 }
 0x679   :  { %v1782_v24 = vadd.f32 %v480_v22, %v475_v23 }
 0x67b   :  { %547 = vst [vmem:[#allocation1] ss:$4 sm:$0xff] %v1782_v24 }
 0x67e   :  { %v542_v27 = vpop.permute.xlu0 %541 }
 0x67f   :  { %v544_v29 = vmul.f32 %v542_v27, %v521_v8 }
 0x682   :  { %v548_v26 = vld.sshfl [vmem:[#allocation1] sm:$0xff pattern:$0x73625140] }
 0x683   :  { %549 = vrot.lane.b32.xlu1 %v548_v26, %s1621_s7 }
 0x68e   :  { %v537_v28 = vpop.permute.xlu2 %536 }
 0x68f   :  { %v539_v30 = vmul.f32 %v537_v28, %v534_v25 }
 0x691   :  { %v1786_v31 = vadd.f32 %v544_v29, %v539_v30 }
 0x693   :  { %554 = vst [vmem:[#allocation1] ss:$4 sm:$0xff] %v1786_v31 }
 0x69a   :  { %v555_v32 = vld.sshfl [vmem:[#allocation1] sm:$0xff pattern:$0x73625140] }
 0x69b   :  { %556 = vrot.lane.b32.xlu2 %v555_v32, %s1621_s7 }
 0x6f5   :  { %v550_v33 = vpop.permute.xlu1 %549  ;;  %v557_v34 = vpop.permute.xlu2 %556 }
 0x6f6   :  { %552 = vst.msk [vmem:[#allocation2] sm:$0x3] %vm55_vm0, %v550_v33 }
 0x6f7   :  { %559 = vst.msk [vmem:[#allocation3] sm:$0x3] %vm55_vm0, %v557_v34 }
 0x6fd   :  { %v1792_v35 = vld [vmem:[#allocation2] sm:$0x3] }
 0x6fe   :  { %v588_v36 = vpack.c.bf16 %v1792_v35, %v1792_v35  ;;  %v1796_v37 = vld [vmem:[#allocation3] sm:$0x3] }
 0x6ff   :  { %v652_v38 = vpack.c.bf16 %v1796_v37, %v1796_v37 }
 0x700   :  { %1473 = vmatmul.msk.bf16.vlgmr.msrb.gmra.mxu2 %vm79_vm1, %v588_v36 }
 0x701   :  { %1476 = vmatmul.msk.bf16.vlgmr.msrb.gmra.mxu3 %vm79_vm1, %v652_v38  ;;  %1263 = vmatpush.bf16.msrb.mxu2 %v1655_v0  ;;  %v1475_v0 = vld [vmem:[%s2124_s1 + $0x4] sm:$0x1] }
 0x702   :  { %1326 = vmatpush.bf16.msrb.mxu3 %v1660_v1  ;;  %v586_v1 = vunpack.c.l.bf16 %v1472_v45  ;;  %v650_v46 = vunpack.c.l.bf16 %v1475_v0 }
 0x783   :  { %v601_v39 = vpop.f32.mrf.mxu2 }
 0x784   :  { %v602_v40 = vadd.f32 %v1687_v7, %v601_v39  ;;  %v665_v41 = vpop.f32.mrf.mxu3 }
 0x785   :  { %v666_v42 = vadd.f32 %v1694_v11, %v665_v41 }
 0x786   :  { %626 = vrot.lane.b32.xlu0 %v602_v40, %s1618_s23  ;;  %v605_v47 = vadd.f32 %v602_v40, %v586_v1 }
 0x787   :  { %690 = vrot.lane.b32.xlu1 %v666_v42, %s1618_s23  ;;  %v669_v48 = vadd.f32 %v666_v42, %v650_v46 }
 0x788   :  { %v1474_v49 = vmul.f32 -1.442695, %v605_v47 }
 0x789   :  { %v1477_v50 = vmul.f32 -1.442695, %v669_v48 }
 0x78a   :  { %1555 = vpow2.f32 %v1474_v49 }
 0x78b   :  { %v603_v43 = vpop.f32.mrf.mxu2  ;;  %1557 = vpow2.f32 %v1477_v50 }
 0x78c   :  { %v667_v44 = vpop.f32.mrf.mxu3 }
 0x790   :  { %v1556_v51 = vpop.eup %1555 }
 0x791   :  { %v1558_v52 = vpop.eup %1557  ;;  %v609_v53 = vadd.f32 1.0, %v1556_v51 }
 0x792   :  { %v673_v54 = vadd.f32 1.0, %v1558_v52 }
 0x793   :  { %1559 = vrcp.f32 %v609_v53  ;;  %v621_v4 = vand.u32 2147483648, %v609_v53  ;;  %vm615_vm14 = vweird.f32 %v609_v53  ;;  %v619_v6 = vand.u32 2147483647, %v609_v53 }
 0x794   :  { %1561 = vrcp.f32 %v673_v54  ;;  %v685_v8 = vand.u32 2147483648, %v673_v54  ;;  %vm679_vm2 = vweird.f32 %v673_v54  ;;  %v683_v9 = vand.u32 2147483647, %v673_v54 }
 0x795   :  { %v622_v13 = vor.u32 1.1754944e-38, %v621_v4  ;;  %vm620_vm4 = vcmp.eq.f32.partialorder %v619_v6, 8.507059e+37 }
 0x796   :  { %v686_v15 = vor.u32 1.1754944e-38, %v685_v8  ;;  %vm684_vm5 = vcmp.eq.f32.partialorder %v683_v9, 8.507059e+37 }
 0x799   :  { %v1560_v55 = vpop.eup %1559 }
 0x79a   :  { %v1562_v56 = vpop.eup %1561  ;;  %v611_v57 = vmul.f32 %v1560_v55, %v609_v53  ;;  %vm616_vm12 = vweird.f32 %v1560_v55 }
 0x79b   :  { %v675_v58 = vmul.f32 %v1562_v56, %v673_v54  ;;  %vm680_vm13 = vweird.f32 %v1562_v56  ;;  %vm617_vm15 = vmor %vm615_vm14, %vm616_vm12 }
 0x79c   :  { %v612_v59 = vsub.f32 1.0, %v611_v57  ;;  %vm681_vm3 = vmor %vm679_vm2, %vm680_vm13 }
 0x79d   :  { %v676_v60 = vsub.f32 1.0, %v675_v58 }
 0x79e   :  { %v613_v61 = vmul.f32 %v1560_v55, %v612_v59 }
 0x79f   :  { %v677_v63 = vmul.f32 %v1562_v56, %v676_v60 }
 0x7a0   :  { %v614_v2 = vadd.f32 %v1560_v55, %v613_v61  ;;  %v1483_v61 = vld [vmem:[%s2124_s1 + $0x3] sm:$0x1] }
 0x7a1   :  { %v678_v5 = vadd.f32 %v1562_v56, %v677_v63  ;;  %v816_v63 = vunpack.c.l.bf16 %v1483_v61 }
 0x7a2   :  { %v618_v10 = vsel %vm617_vm15, %v1560_v55, %v614_v2  ;;  %v1480_v55 = vld [vmem:[%s2123_s0 + $0x4] sm:$0x1] }
 0x7a3   :  { %v682_v14 = vsel %vm681_vm3, %v1562_v56, %v678_v5  ;;  %v623_v17 = vsel %vm620_vm4, %v622_v13, %v618_v10  ;;  %v752_v56 = vunpack.c.l.bf16 %v1480_v55 }
 0x7a4   :  { %v687_v21 = vsel %vm684_vm5, %v686_v15, %v682_v14  ;;  %v636_v32 = vsub.f32 1.0, %v623_v17 }
 0x7f8   :  { %v627_v16 = vpop.permute.xlu0 %626 }
 0x7f9   :  { %v629_v18 = vmul.f32 %v627_v16, %v623_v17  ;;  %v691_v20 = vpop.permute.xlu1 %690 }
 0x7fa   :  { %v693_v22 = vmul.f32 %v691_v20, %v687_v21 }
 0x7fb   :  { %631 = vrot.lane.b32.xlu2 %v629_v18, %s1619_s30 }
 0x7fc   :  { %695 = vrot.lane.b32.xlu0 %v693_v22, %s1619_s30 }
 0x803   :  { %643 = vrot.lane.b32.xlu2 %v1792_v35, %s1620_s6 }
 0x855   :  { %v632_v23 = vpop.permute.xlu2 %631 }
 0x856   :  { %v634_v26 = vadd.f32 %v632_v23, %v586_v1 }
 0x858   :  { %1563 = vtanh.f32 %v634_v26 }
 0x85d   :  { %v644_v30 = vpop.permute.xlu2 %643 }
 0x85e   :  { %v1564_v27 = vpop.eup %1563  ;;  %v646_v34 = vmul.f32 %v644_v30, %v623_v17 }
 0x85f   :  { %638 = vrot.lane.b32.xlu1 %v1564_v27, %s1621_s7 }
 0x867   :  { %707 = vrot.lane.b32.xlu1 %v1796_v37, %s1620_s6  ;;  %v700_v37 = vsub.f32 1.0, %v687_v21 }
 0x86e   :  { %v696_v25 = vpop.permute.xlu0 %695 }
 0x86f   :  { %v698_v28 = vadd.f32 %v696_v25, %v650_v46 }
 0x871   :  { %1565 = vtanh.f32 %v698_v28 }
 0x877   :  { %v1566_v29 = vpop.eup %1565 }
 0x878   :  { %702 = vrot.lane.b32.xlu0 %v1566_v29, %s1621_s7 }
 0x8d1   :  { %v639_v33 = vpop.permute.xlu1 %638 }
 0x8d2   :  { %v641_v35 = vmul.f32 %v639_v33, %v636_v32 }
 0x8d4   :  { %v1822_v36 = vadd.f32 %v646_v34, %v641_v35 }
 0x8d6   :  { %713 = vst [vmem:[#allocation1] ss:$4 sm:$0xff] %v1822_v36 }
 0x8d9   :  { %v708_v39 = vpop.permute.xlu1 %707 }
 0x8da   :  { %v710_v41 = vmul.f32 %v708_v39, %v687_v21 }
 0x8dd   :  { %v714_v38 = vld.sshfl [vmem:[#allocation1] sm:$0xff pattern:$0x73625140] }
 0x8de   :  { %715 = vrot.lane.b32.xlu2 %v714_v38, %s1621_s7 }
 0x8ea   :  { %v703_v40 = vpop.permute.xlu0 %702 }
 0x8eb   :  { %v705_v42 = vmul.f32 %v703_v40, %v700_v37 }
 0x8ed   :  { %v1826_v43 = vadd.f32 %v710_v41, %v705_v42 }
 0x8ef   :  { %720 = vst [vmem:[#allocation1] ss:$4 sm:$0xff] %v1826_v43 }
 0x8f6   :  { %v721_v44 = vld.sshfl [vmem:[#allocation1] sm:$0xff pattern:$0x73625140] }
 0x8f7   :  { %722 = vrot.lane.b32.xlu0 %v721_v44, %s1621_s7 }
 0x938   :  { %v716_v45 = vpop.permute.xlu2 %715 }
 0x939   :  { %718 = vst.msk [vmem:[#allocation2] sm:$0x3] %vm55_vm0, %v716_v45 }
 0x940   :  { %v753_v0 = vld [vmem:[#allocation2] sm:$0x3] }
 0x941   :  { %v754_v1 = vpack.c.bf16 %v753_v0, %v753_v0 }
 0x943   :  { %1481 = vmatmul.msk.bf16.vlgmr.msra.gmra.mxu0 %vm79_vm1, %v754_v1 }
 0x969   :  { %v723_v46 = vpop.permute.xlu0 %722 }
 0x96a   :  { %725 = vst.msk [vmem:[#allocation3] sm:$0x3] %vm55_vm0, %v723_v46 }
 0x971   :  { %v1833_v47 = vld [vmem:[#allocation3] sm:$0x3] }
 0x972   :  { %v818_v48 = vpack.c.bf16 %v1833_v47, %v1833_v47 }
 0x974   :  { %1484 = vmatmul.msk.bf16.vlgmr.msra.gmra.mxu1 %vm79_vm1, %v818_v48 }
 0x9c0   :  { %v767_v49 = vpop.f32.mrf.mxu0 }
 0x9c1   :  { %v768_v50 = vadd.f32 %v1687_v7, %v767_v49 }
 0x9c3   :  { %792 = vrot.lane.b32.xlu1 %v768_v50, %s1618_s23  ;;  %v771_v57 = vadd.f32 %v768_v50, %v752_v56 }
 0x9c5   :  { %v1482_v58 = vmul.f32 -1.442695, %v771_v57 }
 0x9c7   :  { %1567 = vpow2.f32 %v1482_v58 }
 0x9c8   :  { %v769_v51 = vpop.f32.mrf.mxu0 }
 0x9cd   :  { %v1568_v59 = vpop.eup %1567 }
 0x9ce   :  { %v775_v60 = vadd.f32 1.0, %v1568_v59 }
 0x9d0   :  { %1569 = vrcp.f32 %v775_v60  ;;  %v787_v15 = vand.u32 2147483648, %v775_v60  ;;  %vm781_vm7 = vweird.f32 %v775_v60  ;;  %v785_v16 = vand.u32 2147483647, %v775_v60 }
 0x9d2   :  { %v788_v18 = vor.u32 1.1754944e-38, %v787_v15  ;;  %vm786_vm9 = vcmp.eq.f32.partialorder %v785_v16, 8.507059e+37 }
 0x9d6   :  { %v1570_v4 = vpop.eup %1569 }
 0x9d7   :  { %v777_v6 = vmul.f32 %v1570_v4, %v775_v60  ;;  %vm782_vm6 = vweird.f32 %v1570_v4 }
 0x9d8   :  { %vm783_vm8 = vmor %vm781_vm7, %vm782_vm6 }
 0x9d9   :  { %v778_v8 = vsub.f32 1.0, %v777_v6  ;;  %v1488_v6 = vld [vmem:[%s2123_s0 + $0x5] sm:$0x1] }
 0x9db   :  { %v779_v9 = vmul.f32 %v1570_v4, %v778_v8  ;;  %v918_v8 = vunpack.c.l.bf16 %v1488_v6 }
 0x9dd   :  { %v780_v14 = vadd.f32 %v1570_v4, %v779_v9 }
 0x9df   :  { %v784_v17 = vsel %vm783_vm8, %v1570_v4, %v780_v14 }
 0x9e0   :  { %v789_v21 = vsel %vm786_vm9, %v788_v18, %v784_v17 }
 0x9f1   :  { %v831_v52 = vpop.f32.mrf.mxu1 }
 0x9f2   :  { %v832_v53 = vadd.f32 %v1694_v11, %v831_v52 }
 0x9f4   :  { %856 = vrot.lane.b32.xlu2 %v832_v53, %s1618_s23  ;;  %v835_v2 = vadd.f32 %v832_v53, %v816_v63 }
 0x9f6   :  { %v1485_v5 = vmul.f32 -1.442695, %v835_v2 }
 0x9f8   :  { %1571 = vpow2.f32 %v1485_v5 }
 0x9f9   :  { %v833_v54 = vpop.f32.mrf.mxu1 }
 0x9fe   :  { %v1572_v10 = vpop.eup %1571 }
 0x9ff   :  { %v839_v13 = vadd.f32 1.0, %v1572_v10 }
 0xa01   :  { %1573 = vrcp.f32 %v839_v13  ;;  %v851_v29 = vand.u32 2147483648, %v839_v13  ;;  %vm845_vm11 = vweird.f32 %v839_v13  ;;  %v849_v30 = vand.u32 2147483647, %v839_v13 }
 0xa03   :  { %v852_v33 = vor.u32 1.1754944e-38, %v851_v29  ;;  %vm850_vm13 = vcmp.eq.f32.partialorder %v849_v30, 8.507059e+37  ;;  %v1491_v30 = vld [vmem:[%s2124_s1 + $0x2] sm:$0x1] }
 0xa07   :  { %v1574_v23 = vpop.eup %1573 }
 0xa08   :  { %v841_v26 = vmul.f32 %v1574_v23, %v839_v13  ;;  %vm846_vm10 = vweird.f32 %v1574_v23 }
 0xa09   :  { %vm847_vm12 = vmor %vm845_vm11, %vm846_vm10 }
 0xa0a   :  { %v842_v27 = vsub.f32 1.0, %v841_v26 }
 0xa0c   :  { %v843_v25 = vmul.f32 %v1574_v23, %v842_v27 }
 0xa0e   :  { %v844_v28 = vadd.f32 %v1574_v23, %v843_v25 }
 0xa10   :  { %v848_v32 = vsel %vm847_vm12, %v1574_v23, %v844_v28 }
 0xa11   :  { %v853_v35 = vsel %vm850_vm13, %v852_v33, %v848_v32  ;;  %v982_v32 = vunpack.c.l.bf16 %v1491_v30 }
 0xa35   :  { %v793_v20 = vpop.permute.xlu1 %792 }
 0xa36   :  { %v795_v22 = vmul.f32 %v793_v20, %v789_v21 }
 0xa38   :  { %797 = vrot.lane.b32.xlu0 %v795_v22, %s1619_s30 }
 0xa40   :  { %809 = vrot.lane.b32.xlu0 %v753_v0, %s1620_s6  ;;  %v802_v0 = vsub.f32 1.0, %v789_v21 }
 0xa4e   :  { %v857_v34 = vpop.permute.xlu2 %856 }
 0xa4f   :  { %v859_v38 = vmul.f32 %v857_v34, %v853_v35 }
 0xa51   :  { %861 = vrot.lane.b32.xlu1 %v859_v38, %s1619_s30 }
 0xaaa   :  { %v798_v39 = vpop.permute.xlu0 %797 }
 0xaab   :  { %v800_v37 = vadd.f32 %v798_v39, %v752_v56 }
 0xaad   :  { %1575 = vtanh.f32 %v800_v37 }
 0xab2   :  { %v810_v45 = vpop.permute.xlu0 %809 }
 0xab3   :  { %v1576_v40 = vpop.eup %1575  ;;  %v812_v46 = vmul.f32 %v810_v45, %v789_v21 }
 0xab4   :  { %804 = vrot.lane.b32.xlu2 %v1576_v40, %s1621_s7 }
 0xabc   :  { %873 = vrot.lane.b32.xlu2 %v1833_v47, %s1620_s6  ;;  %v866_v47 = vsub.f32 1.0, %v853_v35 }
 0xac3   :  { %v862_v41 = vpop.permute.xlu1 %861 }
 0xac4   :  { %v864_v42 = vadd.f32 %v862_v41, %v816_v63 }
 0xac6   :  { %1577 = vtanh.f32 %v864_v42 }
 0xacc   :  { %v1578_v44 = vpop.eup %1577 }
 0xacd   :  { %868 = vrot.lane.b32.xlu1 %v1578_v44, %s1621_s7 }
 0xb0e   :  { %v805_v1 = vpop.permute.xlu2 %804 }
 0xb0f   :  { %v807_v48 = vmul.f32 %v805_v1, %v802_v0 }
 0xb11   :  { %v1855_v49 = vadd.f32 %v812_v46, %v807_v48 }
 0xb13   :  { %879 = vst [vmem:[#allocation1] ss:$4 sm:$0xff] %v1855_v49 }
 0xb16   :  { %v874_v51 = vpop.permute.xlu2 %873 }
 0xb17   :  { %v876_v53 = vmul.f32 %v874_v51, %v853_v35 }
 0xb1a   :  { %v880_v50 = vld.sshfl [vmem:[#allocation1] sm:$0xff pattern:$0x73625140] }
 0xb1b   :  { %881 = vrot.lane.b32.xlu0 %v880_v50, %s1621_s7 }
 0xb3f   :  { %v869_v52 = vpop.permute.xlu1 %868 }
 0xb40   :  { %v871_v54 = vmul.f32 %v869_v52, %v866_v47 }
 0xb42   :  { %v1859_v55 = vadd.f32 %v876_v53, %v871_v54 }
 0xb44   :  { %886 = vst [vmem:[#allocation1] ss:$4 sm:$0xff] %v1859_v55 }
 0xb4b   :  { %v887_v56 = vld.sshfl [vmem:[#allocation1] sm:$0xff pattern:$0x73625140] }
 0xb4c   :  { %888 = vrot.lane.b32.xlu1 %v887_v56, %s1621_s7 }
 0xb8d   :  { %v882_v57 = vpop.permute.xlu0 %881 }
 0xb8e   :  { %884 = vst.msk [vmem:[#allocation2] sm:$0x3] %vm55_vm0, %v882_v57 }
 0xb95   :  { %v919_v58 = vld [vmem:[#allocation2] sm:$0x3] }
 0xb96   :  { %v920_v59 = vpack.c.bf16 %v919_v58, %v919_v58 }
 0xb98   :  { %1489 = vmatmul.msk.bf16.vlgmr.msra.gmra.mxu2 %vm79_vm1, %v920_v59 }
 0xbbe   :  { %v889_v60 = vpop.permute.xlu1 %888 }
 0xbbf   :  { %891 = vst.msk [vmem:[#allocation3] sm:$0x3] %vm55_vm0, %v889_v60 }
 0xbc6   :  { %v1866_v61 = vld [vmem:[#allocation3] sm:$0x3] }
 0xbc7   :  { %v984_v63 = vpack.c.bf16 %v1866_v61, %v1866_v61 }
 0xbc9   :  { %1492 = vmatmul.msk.bf16.vlgmr.msra.gmra.mxu3 %vm79_vm1, %v984_v63 }
 0xc1b   :  { %v933_v2 = vpop.f32.mrf.mxu2 }
 0xc1c   :  { %v934_v4 = vadd.f32 %v1687_v7, %v933_v2 }
 0xc1e   :  { %958 = vrot.lane.b32.xlu2 %v934_v4, %s1618_s23  ;;  %v937_v9 = vadd.f32 %v934_v4, %v918_v8 }
 0xc20   :  { %v1490_v10 = vmul.f32 -1.442695, %v937_v9 }
 0xc22   :  { %1579 = vpow2.f32 %v1490_v10 }
 0xc23   :  { %v935_v5 = vpop.f32.mrf.mxu2 }
 0xc28   :  { %v1580_v16 = vpop.eup %1579 }
 0xc29   :  { %v941_v17 = vadd.f32 1.0, %v1580_v16 }
 0xc2b   :  { %1581 = vrcp.f32 %v941_v17  ;;  %v953_v23 = vand.u32 2147483648, %v941_v17  ;;  %vm947_vm15 = vweird.f32 %v941_v17  ;;  %v951_v26 = vand.u32 2147483647, %v941_v17 }
 0xc2d   :  { %v954_v25 = vor.u32 1.1754944e-38, %v953_v23  ;;  %vm952_vm3 = vcmp.eq.f32.partialorder %v951_v26, 8.507059e+37  ;;  %v1917_v26 = vld [vmem:[%s2122_s3 + $0x1] ss:$0 sm:$0xff] }
 0xc31   :  { %v1582_v7 = vpop.eup %1581 }
 0xc32   :  { %v943_v18 = vmul.f32 %v1582_v7, %v941_v17  ;;  %vm948_vm14 = vweird.f32 %v1582_v7 }
 0xc33   :  { %vm949_vm2 = vmor %vm947_vm15, %vm948_vm14 }
 0xc34   :  { %v944_v20 = vsub.f32 1.0, %v943_v18 }
 0xc36   :  { %v945_v21 = vmul.f32 %v1582_v7, %v944_v20 }
 0xc38   :  { %v946_v22 = vadd.f32 %v1582_v7, %v945_v21  ;;  %v1911_v21 = vld [vmem:[%s2122_s3] ss:$0 sm:$0xff] }
 0xc3a   :  { %v950_v27 = vsel %vm949_vm2, %v1582_v7, %v946_v22 }
 0xc3b   :  { %v955_v28 = vsel %vm952_vm3, %v954_v25, %v950_v27 }
 0xc4c   :  { %v997_v13 = vpop.f32.mrf.mxu3 }
 0xc4d   :  { %v998_v14 = vadd.f32 %v1694_v11, %v997_v13 }
 0xc4f   :  { %1022 = vrot.lane.b32.xlu0 %v998_v14, %s1618_s23  ;;  %v1001_v33 = vadd.f32 %v998_v14, %v982_v32 }
 0xc51   :  { %v1493_v34 = vmul.f32 -1.442695, %v1001_v33 }
 0xc53   :  { %1583 = vpow2.f32 %v1493_v34 }
 0xc54   :  { %v999_v15 = vpop.f32.mrf.mxu3 }
 0xc59   :  { %v1584_v35 = vpop.eup %1583 }
 0xc5a   :  { %v1005_v38 = vadd.f32 1.0, %v1584_v35 }
 0xc5c   :  { %1585 = vrcp.f32 %v1005_v38  ;;  %v1017_v44 = vand.u32 2147483648, %v1005_v38  ;;  %vm1011_vm5 = vweird.f32 %v1005_v38  ;;  %v1015_v45 = vand.u32 2147483647, %v1005_v38 }
 0xc5e   :  { %v1018_v1 = vor.u32 1.1754944e-38, %v1017_v44  ;;  %vm1016_vm7 = vcmp.eq.f32.partialorder %v1015_v45, 8.507059e+37 }
 0xc62   :  { %v1586_v39 = vpop.eup %1585 }
 0xc63   :  { %v1007_v37 = vmul.f32 %v1586_v39, %v1005_v38  ;;  %vm1012_vm4 = vweird.f32 %v1586_v39 }
 0xc64   :  { %vm1013_vm6 = vmor %vm1011_vm5, %vm1012_vm4  ;;  %vm230_vm5 = vcmask 1040384  }
 0xc65   :  { %v1008_v40 = vsub.f32 1.0, %v1007_v37 }
 0xc67   :  { %v1009_v41 = vmul.f32 %v1586_v39, %v1008_v40 }
 0xc69   :  { %v1010_v42 = vadd.f32 %v1586_v39, %v1009_v41 }
 0xc6b   :  { %v1014_v0 = vsel %vm1013_vm6, %v1586_v39, %v1010_v42 }
 0xc6c   :  { %v1019_v48 = vsel %vm1016_vm7, %v1018_v1, %v1014_v0 }
 0xc78   :  { %v959_v11 = vpop.permute.xlu2 %958 }
 0xc79   :  { %v961_v29 = vmul.f32 %v959_v11, %v955_v28 }
 0xc7b   :  { %963 = vrot.lane.b32.xlu1 %v961_v29, %s1619_s30  ;;  %v1499_v29 = vld [vmem:[%s2124_s1 + $0x1] sm:$0x1] }
 0xc83   :  { %975 = vrot.lane.b32.xlu1 %v919_v58, %s1620_s6  ;;  %v968_v58 = vsub.f32 1.0, %v955_v28 }
 0xcc1   :  { %v1023_v46 = vpop.permute.xlu0 %1022 }
 0xcc2   :  { %v1025_v50 = vmul.f32 %v1023_v46, %v1019_v48 }
 0xcc4   :  { %1027 = vrot.lane.b32.xlu2 %v1025_v50, %s1619_s30 }
 0xced   :  { %v964_v51 = vpop.permute.xlu1 %963 }
 0xcee   :  { %v966_v47 = vadd.f32 %v964_v51, %v918_v8 }
 0xcf0   :  { %1587 = vtanh.f32 %v966_v47 }
 0xcf5   :  { %v976_v57 = vpop.permute.xlu1 %975 }
 0xcf6   :  { %v1588_v52 = vpop.eup %1587  ;;  %v978_v60 = vmul.f32 %v976_v57, %v955_v28  ;;  %v1496_v28 = vld [vmem:[%s2123_s0 + $0x6] sm:$0x1] }
 0xcf7   :  { %970 = vrot.lane.b32.xlu0 %v1588_v52, %s1621_s7  ;;  %v1084_v30 = vunpack.c.l.bf16 %v1496_v28 }
 0xcff   :  { %1039 = vrot.lane.b32.xlu0 %v1866_v61, %s1620_s6  ;;  %v1032_v61 = vsub.f32 1.0, %v1019_v48 }
 0xd1e   :  { %v1028_v53 = vpop.permute.xlu2 %1027 }
 0xd1f   :  { %v1030_v54 = vadd.f32 %v1028_v53, %v982_v32  ;;  %v1148_v32 = vunpack.c.l.bf16 %v1499_v29 }
 0xd21   :  { %1589 = vtanh.f32 %v1030_v54 }
 0xd27   :  { %v1590_v56 = vpop.eup %1589 }
 0xd28   :  { %1034 = vrot.lane.b32.xlu2 %v1590_v56, %s1621_s7 }
 0xd69   :  { %v971_v59 = vpop.permute.xlu0 %970 }
 0xd6a   :  { %v973_v63 = vmul.f32 %v971_v59, %v968_v58 }
 0xd6c   :  { %v1888_v2 = vadd.f32 %v978_v60, %v973_v63 }
 0xd6e   :  { %1045 = vst [vmem:[#allocation1] ss:$4 sm:$0xff] %v1888_v2 }
 0xd71   :  { %v1040_v5 = vpop.permute.xlu0 %1039 }
 0xd72   :  { %v1042_v8 = vmul.f32 %v1040_v5, %v1019_v48 }
 0xd75   :  { %v1046_v4 = vld.sshfl [vmem:[#allocation1] sm:$0xff pattern:$0x73625140] }
 0xd76   :  { %1047 = vrot.lane.b32.xlu1 %v1046_v4, %s1621_s7 }
 0xd82   :  { %v1035_v6 = vpop.permute.xlu2 %1034 }
 0xd83   :  { %v1037_v9 = vmul.f32 %v1035_v6, %v1032_v61 }
 0xd85   :  { %v1892_v10 = vadd.f32 %v1042_v8, %v1037_v9 }
 0xd87   :  { %1052 = vst [vmem:[#allocation1] ss:$4 sm:$0xff] %v1892_v10 }
 0xd8e   :  { %v1053_v13 = vld.sshfl [vmem:[#allocation1] sm:$0xff pattern:$0x73625140] }
 0xd8f   :  { %1054 = vrot.lane.b32.xlu2 %v1053_v13, %s1621_s7 }
 0xde8   :  { %v1048_v14 = vpop.permute.xlu1 %1047 }
 0xde9   :  { %1050 = vst.msk [vmem:[#allocation2] sm:$0x3] %vm55_vm0, %v1048_v14  ;;  %v1055_v15 = vpop.permute.xlu2 %1054 }
 0xdea   :  { %1057 = vst.msk [vmem:[#allocation3] sm:$0x3] %vm55_vm0, %v1055_v15 }
 0xdf0   :  { %v1898_v16 = vld [vmem:[#allocation2] sm:$0x3] }
 0xdf1   :  { %v1086_v17 = vpack.c.bf16 %v1898_v16, %v1898_v16  ;;  %v1902_v7 = vld [vmem:[#allocation3] sm:$0x3] }
 0xdf2   :  { %v1150_v18 = vpack.c.bf16 %v1902_v7, %v1902_v7 }
 0xdf3   :  { %1497 = vmatmul.msk.bf16.vlgmr.msrb.gmra.mxu0 %vm79_vm1, %v1086_v17 }
 0xdf4   :  { %1500 = vmatmul.msk.bf16.vlgmr.msrb.gmra.mxu1 %vm79_vm1, %v1150_v18 }
 0xe70   :  { %v1099_v20 = vpop.f32.mrf.mxu0 }
 0xe71   :  { %v1100_v22 = vadd.f32 %v1911_v21, %v1099_v20  ;;  %v1163_v23 = vpop.f32.mrf.mxu1 }
 0xe72   :  { %v1164_v27 = vadd.f32 %v1917_v26, %v1163_v23 }
 0xe73   :  { %1124 = vrot.lane.b32.xlu0 %v1100_v22, %s1618_s23  ;;  %v1103_v33 = vadd.f32 %v1100_v22, %v1084_v30 }
 0xe74   :  { %1188 = vrot.lane.b32.xlu1 %v1164_v27, %s1618_s23  ;;  %v1167_v34 = vadd.f32 %v1164_v27, %v1148_v32 }
 0xe75   :  { %v1498_v35 = vmul.f32 -1.442695, %v1103_v33 }
 0xe76   :  { %v1501_v38 = vmul.f32 -1.442695, %v1167_v34 }
 0xe77   :  { %1591 = vpow2.f32 %v1498_v35 }
 0xe78   :  { %v1101_v25 = vpop.f32.mrf.mxu0  ;;  %1593 = vpow2.f32 %v1501_v38 }
 0xe79   :  { %v1165_v11 = vpop.f32.mrf.mxu1 }
 0xe7d   :  { %v1592_v39 = vpop.eup %1591 }
 0xe7e   :  { %v1594_v37 = vpop.eup %1593  ;;  %v1107_v40 = vadd.f32 1.0, %v1592_v39 }
 0xe7f   :  { %v1171_v41 = vadd.f32 1.0, %v1594_v37 }
 0xe80   :  { %1595 = vrcp.f32 %v1107_v40  ;;  %v1119_v47 = vand.u32 2147483648, %v1107_v40  ;;  %vm1113_vm10 = vweird.f32 %v1107_v40  ;;  %v1117_v53 = vand.u32 2147483647, %v1107_v40 }
 0xe81   :  { %1597 = vrcp.f32 %v1171_v41  ;;  %v1183_v54 = vand.u32 2147483648, %v1171_v41  ;;  %vm1177_vm12 = vweird.f32 %v1171_v41  ;;  %v1181_v56 = vand.u32 2147483647, %v1171_v41 }
 0xe82   :  { %v1120_v58 = vor.u32 1.1754944e-38, %v1119_v47  ;;  %vm1118_vm14 = vcmp.eq.f32.partialorder %v1117_v53, 8.507059e+37 }
 0xe83   :  { %v1184_v60 = vor.u32 1.1754944e-38, %v1183_v54  ;;  %vm1182_vm15 = vcmp.eq.f32.partialorder %v1181_v56, 8.507059e+37 }
 0xe86   :  { %v1596_v42 = vpop.eup %1595 }
 0xe87   :  { %v1598_v44 = vpop.eup %1597  ;;  %v1109_v45 = vmul.f32 %v1596_v42, %v1107_v40  ;;  %vm1114_vm8 = vweird.f32 %v1596_v42 }
 0xe88   :  { %v1173_v0 = vmul.f32 %v1598_v44, %v1171_v41  ;;  %vm1178_vm9 = vweird.f32 %v1598_v44  ;;  %vm1115_vm11 = vmor %vm1113_vm10, %vm1114_vm8  ;;  %vm238_vm10 = vcmask 122880  }
 0xe89   :  { %v1110_v1 = vsub.f32 1.0, %v1109_v45  ;;  %vm1179_vm13 = vmor %vm1177_vm12, %vm1178_vm9 }
 0xe8a   :  { %v1174_v46 = vsub.f32 1.0, %v1173_v0 }
 0xe8b   :  { %v1111_v48 = vmul.f32 %v1596_v42, %v1110_v1 }
 0xe8c   :  { %v1175_v50 = vmul.f32 %v1598_v44, %v1174_v46 }
 0xe8d   :  { %v1112_v51 = vadd.f32 %v1596_v42, %v1111_v48  ;;  %v1959_v48 = vld [vmem:[%s2123_s0 + $0x7] sm:$0x1] }
 0xe8e   :  { %v1176_v52 = vadd.f32 %v1598_v44, %v1175_v50  ;;  %v1250_v50 = vunpack.c.l.bf16 %v1959_v48 }
 0xe8f   :  { %v1116_v57 = vsel %vm1115_vm11, %v1596_v42, %v1112_v51 }
 0xe90   :  { %v1180_v59 = vsel %vm1179_vm13, %v1598_v44, %v1176_v52  ;;  %v1121_v4 = vsel %vm1118_vm14, %v1120_v58, %v1116_v57 }
 0xe91   :  { %v1185_v6 = vsel %vm1182_vm15, %v1184_v60, %v1180_v59  ;;  %v1134_v22 = vsub.f32 1.0, %v1121_v4 }
 0xee5   :  { %v1125_v63 = vpop.permute.xlu0 %1124 }
 0xee6   :  { %v1127_v5 = vmul.f32 %v1125_v63, %v1121_v4  ;;  %v1189_v61 = vpop.permute.xlu1 %1188 }
 0xee7   :  { %v1191_v8 = vmul.f32 %v1189_v61, %v1185_v6 }
 0xee8   :  { %1129 = vrot.lane.b32.xlu2 %v1127_v5, %s1619_s30 }
 0xee9   :  { %1193 = vrot.lane.b32.xlu0 %v1191_v8, %s1619_s30 }
 0xef0   :  { %1141 = vrot.lane.b32.xlu2 %v1898_v16, %s1620_s6 }
 0xf42   :  { %v1130_v9 = vpop.permute.xlu2 %1129 }
 0xf43   :  { %v1132_v13 = vadd.f32 %v1130_v9, %v1084_v30 }
 0xf45   :  { %1599 = vtanh.f32 %v1132_v13 }
 0xf4a   :  { %v1142_v20 = vpop.permute.xlu2 %1141 }
 0xf4b   :  { %v1600_v14 = vpop.eup %1599  ;;  %v1144_v27 = vmul.f32 %v1142_v20, %v1121_v4  ;;  %v227_v20 = vpack.c.bf16 %v1712_v62, %v1712_v62 }
 0xf4c   :  { %1136 = vrot.lane.b32.xlu1 %v1600_v14, %s1621_s7 }
 0xf54   :  { %1205 = vrot.lane.b32.xlu1 %v1902_v7, %s1620_s6  ;;  %v1198_v7 = vsub.f32 1.0, %v1185_v6 }
 0xf5b   :  { %v1194_v15 = vpop.permute.xlu0 %1193 }
 0xf5c   :  { %v1196_v17 = vadd.f32 %v1194_v15, %v1148_v32 }
 0xf5e   :  { %1601 = vtanh.f32 %v1196_v17 }
 0xf64   :  { %v1602_v18 = vpop.eup %1601 }
 0xf65   :  { %1200 = vrot.lane.b32.xlu0 %v1602_v18, %s1621_s7 }
 0xfbe   :  { %v1137_v23 = vpop.permute.xlu1 %1136 }
 0xfbf   :  { %v1139_v16 = vmul.f32 %v1137_v23, %v1134_v22  ;;  %v229_v23 = vrot.slane %v227_v20, 3 }
 0xfc1   :  { %v1936_v25 = vadd.f32 %v1144_v27, %v1139_v16  ;;  %v406_v16 = vpack.c.bf16 %v1751_v19, %v1751_v19  ;;  %v726_v19 = vpack.c.bf16 %v1822_v36, %v1822_v36 }
 0xfc3   :  { %1211 = vst [vmem:[#allocation1] ss:$4 sm:$0xff] %v1936_v25  ;;  %v1224_v36 = vpack.c.bf16 %v1936_v25, %v1936_v25 }
 0xfc6   :  { %v1206_v28 = vpop.permute.xlu1 %1205 }
 0xfc7   :  { %v1208_v30 = vmul.f32 %v1206_v28, %v1185_v6 }
 0xfca   :  { %v1212_v11 = vld.sshfl [vmem:[#allocation1] sm:$0xff pattern:$0x73625140] }
 0xfcb   :  { %1213 = vrot.lane.b32.xlu2 %v1212_v11, %s1621_s7  ;;  %v233_v11 = vsel %vm230_vm5, %v227_v20, %v229_v23 }
 0xfd7   :  { %v1201_v29 = vpop.permute.xlu0 %1200 }
 0xfd8   :  { %v1203_v32 = vmul.f32 %v1201_v29, %v1198_v7 }
 0xfda   :  { %v1940_v33 = vadd.f32 %v1208_v30, %v1203_v32  ;;  %v408_v30 = vrot.slane %v406_v16, 3 }
 0xfdc   :  { %1218 = vst [vmem:[#allocation1] ss:$4 sm:$0xff] %v1940_v33  ;;  %v1236_v20 = vpack.c.bf16 %v1940_v33, %v1940_v33 }
 0xfe3   :  { %v1219_v34 = vld.sshfl [vmem:[#allocation1] sm:$0xff pattern:$0x73625140] }
 0xfe4   :  { %1220 = vrot.lane.b32.xlu0 %v1219_v34, %s1621_s7 }
0x1025   :  { %v1214_v35 = vpop.permute.xlu2 %1213 }
0x1026   :  { %1216 = vst.msk [vmem:[#allocation2] sm:$0x3] %vm55_vm0, %v1214_v35 }
0x102d   :  { %v1251_v38 = vld [vmem:[#allocation2] sm:$0x3] }
0x102e   :  { %v1252_v39 = vpack.c.bf16 %v1251_v38, %v1251_v38 }
0x1030   :  { %1505 = vmatmul.msk.bf16.vlgmr.msrb.gmra.mxu2 %vm79_vm1, %v1252_v39  ;;  %v411_v39 = vsel %vm230_vm5, %v406_v16, %v408_v30 }
0x1056   :  { %v1221_v37 = vpop.permute.xlu0 %1220 }
0x1057   :  { %1223 = vst.msk [vmem:[#allocation3] sm:$0x3] %vm55_vm0, %v1221_v37  ;;  %v728_v37 = vrot.slane %v726_v19, 3 }
0x105e   :  { %v1947_v40 = vld [vmem:[#allocation3] sm:$0x3] }
0x105f   :  { %v1315_v41 = vpack.c.bf16 %v1947_v40, %v1947_v40 }
0x1061   :  { %1507 = vmatmul.msk.bf16.vlgmr.msrb.gmra.mxu3 %vm79_vm1, %v1315_v41  ;;  %v904_v41 = vpack.c.bf16 %v1859_v55, %v1859_v55 }
0x10b3   :  { %v1265_v42 = vpop.f32.mrf.mxu2 }
0x10b4   :  { %v1266_v44 = vadd.f32 %v1911_v21, %v1265_v42  ;;  %v731_v42 = vsel %vm230_vm5, %v726_v19, %v728_v37 }
0x10b6   :  { %1290 = vrot.lane.b32.xlu1 %v1266_v44, %s1618_s23  ;;  %v1269_v51 = vadd.f32 %v1266_v44, %v1250_v50  ;;  %v906_v44 = vrot.slane %v904_v41, 3 }
0x10b8   :  { %v1506_v21 = vmul.f32 -1.442695, %v1269_v51 }
0x10ba   :  { %1603 = vpow2.f32 %v1506_v21 }
0x10bb   :  { %v1267_v45 = vpop.f32.mrf.mxu2 }
0x10bc   :  { %v909_v45 = vsel %vm230_vm5, %v904_v41, %v906_v44 }
0x10c0   :  { %v1604_v47 = vpop.eup %1603 }
0x10c1   :  { %v1273_v52 = vadd.f32 1.0, %v1604_v47  ;;  %v394_v47 = vpack.c.bf16 %v1747_v12, %v1747_v12 }
0x10c3   :  { %1605 = vrcp.f32 %v1273_v52  ;;  %v1285_v61 = vand.u32 2147483648, %v1273_v52  ;;  %vm1279_vm2 = vweird.f32 %v1273_v52  ;;  %v1283_v6 = vand.u32 2147483647, %v1273_v52 }
0x10c4   :  { %v396_v48 = vrot.slane %v394_v47, 3 }
0x10c5   :  { %v1286_v9 = vor.u32 1.1754944e-38, %v1285_v61  ;;  %vm1284_vm4 = vcmp.eq.f32.partialorder %v1283_v6, 8.507059e+37 }
0x10c6   :  { %v399_v12 = vsel %vm230_vm5, %v394_v47, %v396_v48 }
0x10c9   :  { %v1606_v56 = vpop.eup %1605 }
0x10ca   :  { %v1275_v58 = vmul.f32 %v1606_v56, %v1273_v52  ;;  %vm1280_vm1 = vweird.f32 %v1606_v56  ;;  %v572_v52 = vpack.c.bf16 %v1786_v31, %v1786_v31 }
0x10cb   :  { %vm1281_vm3 = vmor %vm1279_vm2, %vm1280_vm1 }
0x10cc   :  { %v1276_v59 = vsub.f32 1.0, %v1275_v58  ;;  %v892_v58 = vpack.c.bf16 %v1855_v49, %v1855_v49  ;;  %v1070_v49 = vpack.c.bf16 %v1892_v10, %v1892_v10 }
0x10ce   :  { %v1277_v60 = vmul.f32 %v1606_v56, %v1276_v59  ;;  %v1072_v61 = vrot.slane %v1070_v49, 3 }
0x10d0   :  { %v1278_v5 = vadd.f32 %v1606_v56, %v1277_v60  ;;  %v1075_v10 = vsel %vm230_vm5, %v1070_v49, %v1072_v61 }
0x10d2   :  { %v1282_v8 = vsel %vm1281_vm3, %v1606_v56, %v1278_v5 }
0x10d3   :  { %v1972_v14 = vsel %vm1284_vm4, %v1286_v9, %v1282_v8  ;;  %v738_v9 = vpack.c.bf16 %v1826_v43, %v1826_v43 }
0x10e4   :  { %v1328_v0 = vpop.f32.mrf.mxu3 }
0x10e5   :  { %v1329_v1 = vadd.f32 %v1917_v26, %v1328_v0  ;;  %v1967_v26 = vld [vmem:[%s2124_s1] sm:$0x1]  ;;  %v1226_v0 = vrot.slane %v1224_v36, 3 }
0x10e6   :  { %v1313_v53 = vunpack.c.l.bf16 %v1967_v26  ;;  %v240_v26 = vpack.c.bf16 %v1716_v3, %v1716_v3  ;;  %v560_v3 = vpack.c.bf16 %v1782_v24, %v1782_v24 }
0x10e7   :  { %1353 = vrot.lane.b32.xlu2 %v1329_v1, %s1618_s23 }
0x10e8   :  { %v1332_v54 = vadd.f32 %v1329_v1, %v1313_v53  ;;  %v1229_v1 = vsel %vm230_vm5, %v1224_v36, %v1226_v0  ;;  %v242_v60 = vrot.slane %v240_v26, 3  ;;  %v562_v6 = vrot.slane %v560_v3, 3 }
0x10ea   :  { %v1508_v57 = vmul.f32 -1.442695, %v1332_v54  ;;  %v245_v5 = vsel %vm230_vm5, %v240_v26, %v242_v60  ;;  %v565_v24 = vsel %vm230_vm5, %v560_v3, %v562_v6 }
0x10ec   :  { %v1330_v46 = vpop.f32.mrf.mxu3  ;;  %1607 = vpow2.f32 %v1508_v57 }
0x10f2   :  { %v1608_v63 = vpop.eup %1607 }
0x10f3   :  { %v1336_v4 = vadd.f32 1.0, %v1608_v63 }
0x10f5   :  { %1609 = vrcp.f32 %v1336_v4  ;;  %v1348_v7 = vand.u32 2147483648, %v1336_v4  ;;  %vm1342_vm7 = vweird.f32 %v1336_v4  ;;  %v1346_v29 = vand.u32 2147483647, %v1336_v4 }
0x10f7   :  { %v1349_v32 = vor.u32 1.1754944e-38, %v1348_v7  ;;  %vm1347_vm9 = vcmp.eq.f32.partialorder %v1346_v29, 8.507059e+37 }
0x10fb   :  { %v1610_v17 = vpop.eup %1609 }
0x10fc   :  { %v1338_v18 = vmul.f32 %v1610_v17, %v1336_v4  ;;  %vm1343_vm6 = vweird.f32 %v1610_v17 }
0x10fd   :  { %vm1344_vm8 = vmor %vm1342_vm7, %vm1343_vm6 }
0x10fe   :  { %v1339_v22 = vsub.f32 1.0, %v1338_v18 }
0x1100   :  { %v1340_v27 = vmul.f32 %v1610_v17, %v1339_v22  ;;  %v1238_v22 = vrot.slane %v1236_v20, 3 }
0x1102   :  { %v1341_v28 = vadd.f32 %v1610_v17, %v1340_v27  ;;  %v1241_v23 = vsel %vm230_vm5, %v1236_v20, %v1238_v22  ;;  %v1300_v27 = vsub.f32 1.0, %v1972_v14 }
0x1104   :  { %v1345_v62 = vsel %vm1344_vm8, %v1610_v17, %v1341_v28 }
0x1105   :  { %v1983_v35 = vsel %vm1347_vm9, %v1349_v32, %v1345_v62 }
0x1128   :  { %v1291_v13 = vpop.permute.xlu1 %1290 }
0x1129   :  { %v1293_v15 = vmul.f32 %v1291_v13, %v1972_v14  ;;  %v740_v13 = vrot.slane %v738_v9, 3 }
0x112b   :  { %1295 = vrot.lane.b32.xlu0 %v1293_v15, %s1619_s30  ;;  %v1058_v15 = vpack.c.bf16 %v1888_v2, %v1888_v2  ;;  %v743_v17 = vsel %vm230_vm5, %v738_v9, %v740_v13 }
0x112d   :  { %v1060_v18 = vrot.slane %v1058_v15, 3 }
0x112f   :  { %v1063_v43 = vsel %vm230_vm5, %v1058_v15, %v1060_v18 }
0x1133   :  { %1307 = vrot.lane.b32.xlu0 %v1251_v38, %s1620_s6 }
0x113b   :  { %235 = vrot.lane.b32.xlu0 %v233_v11, %s1621_s7 }
0x1141   :  { %v1354_v34 = vpop.permute.xlu2 %1353 }
0x1142   :  { %v1356_v38 = vmul.f32 %v1354_v34, %v1983_v35 }
0x1143   :  { %413 = vrot.lane.b32.xlu0 %v411_v39, %s1621_s7 }
0x1144   :  { %1358 = vrot.lane.b32.xlu1 %v1356_v38, %s1619_s30  ;;  %v1363_v38 = vsub.f32 1.0, %v1983_v35 }
0x114b   :  { %733 = vrot.lane.b32.xlu0 %v731_v42, %s1621_s7 }
0x1153   :  { %911 = vrot.lane.b32.xlu0 %v909_v45, %s1621_s7 }
0x115b   :  { %1231 = vrot.lane.b32.xlu0 %v1229_v1, %s1621_s7 }
0x119d   :  { %v1296_v46 = vpop.permute.xlu0 %1295 }
0x119e   :  { %v1298_v55 = vadd.f32 %v1296_v46, %v1250_v50 }
0x11a0   :  { %1611 = vtanh.f32 %v1298_v55 }
0x11a5   :  { %v1308_v51 = vpop.permute.xlu0 %1307 }
0x11a6   :  { %v1612_v21 = vpop.eup %1611  ;;  %v1310_v16 = vmul.f32 %v1308_v51, %v1972_v14 }
0x11a7   :  { %1302 = vrot.lane.b32.xlu2 %v1612_v21, %s1621_s7 }
0x11ad   :  { %v236_v25 = vpop.permute.xlu0 %235 }
0x11ae   :  { %239 = vst.msk [vmem:[%s2125_s4] sm:$0x1] %vm238_vm10, %v236_v25 }
0x11af   :  { %1370 = vrot.lane.b32.xlu2 %v1947_v40, %s1620_s6  ;;  %v574_v40 = vrot.slane %v572_v52, 3 }
0x11b1   :  { %v577_v31 = vsel %vm230_vm5, %v572_v52, %v574_v40 }
0x11b5   :  { %v414_v50 = vpop.permute.xlu0 %413 }
0x11b6   :  { %v1359_v54 = vpop.permute.xlu1 %1358  ;;  %1463 = vst.msk [vmem:[%s2126_s5 + $0x6] sm:$0x1] %vm238_vm10, %v414_v50 }
0x11b7   :  { %v1361_v56 = vadd.f32 %v1359_v54, %v1313_v53  ;;  %401 = vrot.lane.b32.xlu2 %v399_v12, %s1621_s7  ;;  %v894_v53 = vrot.slane %v892_v58, 3 }
0x11b9   :  { %1613 = vtanh.f32 %v1361_v56  ;;  %v897_v4 = vsel %vm230_vm5, %v892_v58, %v894_v53 }
0x11bd   :  { %v734_v57 = vpop.permute.xlu0 %733 }
0x11be   :  { %1478 = vst.msk [vmem:[%s2125_s4 + $0x3] sm:$0x1] %vm238_vm10, %v734_v57 }
0x11bf   :  { %v1614_v59 = vpop.eup %1613  ;;  %579 = vrot.lane.b32.xlu2 %v577_v31, %s1621_s7 }
0x11c0   :  { %1365 = vrot.lane.b32.xlu1 %v1614_v59, %s1621_s7 }
0x11c5   :  { %v912_v63 = vpop.permute.xlu0 %911 }
0x11c6   :  { %1487 = vst.msk [vmem:[%s2126_s5 + $0x3] sm:$0x1] %vm238_vm10, %v912_v63 }
0x11c7   :  { %899 = vrot.lane.b32.xlu2 %v897_v4, %s1621_s7 }
0x11c8   :  { %247 = vrot.lane.b32.xlu1 %v245_v5, %s1621_s7 }
0x11cd   :  { %v1232_v8 = vpop.permute.xlu0 %1231 }
0x11ce   :  { %1502 = vst.msk [vmem:[%s2125_s4 + $0x6] sm:$0x1] %vm238_vm10, %v1232_v8 }
0x11cf   :  { %1077 = vrot.lane.b32.xlu2 %v1075_v10, %s1621_s7 }
0x11d0   :  { %567 = vrot.lane.b32.xlu1 %v565_v24, %s1621_s7 }
0x11d8   :  { %745 = vrot.lane.b32.xlu1 %v743_v17, %s1621_s7 }
0x11e0   :  { %1065 = vrot.lane.b32.xlu1 %v1063_v43, %s1621_s7 }
0x11e8   :  { %1243 = vrot.lane.b32.xlu1 %v1241_v23, %s1621_s7 }
0x1201   :  { %v1303_v2 = vpop.permute.xlu2 %1302 }
0x1202   :  { %v1305_v11 = vmul.f32 %v1303_v2, %v1300_v27 }
0x1204   :  { %v1311_v28 = vadd.f32 %v1310_v16, %v1305_v11 }
0x1206   :  { %v1389_v7 = vpack.c.bf16 %v1311_v28, %v1311_v28  ;;  %1376 = vst [vmem:[#allocation1] ss:$4 sm:$0xff] %v1311_v28 }
0x1208   :  { %v1391_v29 = vrot.slane %v1389_v7, 3 }
0x1209   :  { %v1371_v33 = vpop.permute.xlu2 %1370 }
0x120a   :  { %v1394_v62 = vsel %vm230_vm5, %v1389_v7, %v1391_v29  ;;  %v1373_v37 = vmul.f32 %v1371_v33, %v1983_v35 }
0x120b   :  { %1396 = vrot.lane.b32.xlu1 %v1394_v62, %s1621_s7 }
0x120d   :  { %v1377_v30 = vld.sshfl [vmem:[#allocation1] sm:$0xff pattern:$0x73625140] }
0x120e   :  { %1378 = vrot.lane.b32.xlu2 %v1377_v30, %s1621_s7 }
0x1211   :  { %v402_v32 = vpop.permute.xlu2 %401 }
0x1212   :  { %1462 = vst.msk [vmem:[%s2125_s4 + $0x1] sm:$0x1] %vm238_vm10, %v402_v32 }
0x1219   :  { %v580_v14 = vpop.permute.xlu2 %579 }
0x121a   :  { %1471 = vst.msk [vmem:[%s2126_s5 + $0x5] sm:$0x1] %vm238_vm10, %v580_v14 }
0x1221   :  { %v900_v34 = vpop.permute.xlu2 %899 }
0x1222   :  { %1486 = vst.msk [vmem:[%s2125_s4 + $0x4] sm:$0x1] %vm238_vm10, %v900_v34 }
0x1229   :  { %v1078_v19 = vpop.permute.xlu2 %1077 }
0x122a   :  { %1495 = vst.msk [vmem:[%s2126_s5 + $0x2] sm:$0x1] %vm238_vm10, %v1078_v19 }
0x1232   :  { %v1366_v39 = vpop.permute.xlu1 %1365 }
0x1233   :  { %v1368_v41 = vmul.f32 %v1366_v39, %v1363_v38 }
0x1235   :  { %v1374_v42 = vadd.f32 %v1373_v37, %v1368_v41 }
0x1237   :  { %v1401_v44 = vpack.c.bf16 %v1374_v42, %v1374_v42  ;;  %1383 = vst [vmem:[#allocation1] ss:$4 sm:$0xff] %v1374_v42 }
0x1239   :  { %v1403_v36 = vrot.slane %v1401_v44, 3 }
0x123a   :  { %v248_v45 = vpop.permute.xlu1 %247 }
0x123b   :  { %1455 = vst.msk [vmem:[%s2126_s5 + $0x7] sm:$0x1] %vm238_vm10, %v248_v45  ;;  %v1406_v0 = vsel %vm230_vm5, %v1401_v44, %v1403_v36 }
0x123c   :  { %1408 = vrot.lane.b32.xlu2 %v1406_v0, %s1621_s7 }
0x123e   :  { %v1384_v1 = vld.sshfl [vmem:[#allocation1] sm:$0xff pattern:$0x73625140] }
0x123f   :  { %1385 = vrot.lane.b32.xlu0 %v1384_v1, %s1621_s7 }
0x1242   :  { %v568_v46 = vpop.permute.xlu1 %567 }
0x1243   :  { %1470 = vst.msk [vmem:[%s2125_s4 + $0x2] sm:$0x1] %vm238_vm10, %v568_v46 }
0x124a   :  { %v746_v35 = vpop.permute.xlu1 %745 }
0x124b   :  { %1479 = vst.msk [vmem:[%s2126_s5 + $0x4] sm:$0x1] %vm238_vm10, %v746_v35 }
0x1252   :  { %v1066_v55 = vpop.permute.xlu1 %1065 }
0x1253   :  { %1494 = vst.msk [vmem:[%s2125_s4 + $0x5] sm:$0x1] %vm238_vm10, %v1066_v55 }
0x125a   :  { %v1244_v51 = vpop.permute.xlu1 %1243 }
0x125b   :  { %1503 = vst.msk [vmem:[%s2126_s5 + $0x1] sm:$0x1] %vm238_vm10, %v1244_v51 }
0x1268   :  { %v1379_v21 = vpop.permute.xlu2 %1378 }
0x1269   :  { %1381 = vst.msk [vmem:[#allocation2] sm:$0x3] %vm55_vm0, %v1379_v21 }
0x127d   :  { %v1397_v25 = vpop.permute.xlu1 %1396 }
0x127e   :  { %1509 = vst.msk [vmem:[%s2125_s4 + $0x7] sm:$0x1] %vm238_vm10, %v1397_v25 }
0x1296   :  { %v1409_v47 = vpop.permute.xlu2 %1408 }
0x1297   :  { %1411 = vst.msk [vmem:[%s2126_s5] sm:$0x1] %vm238_vm10, %v1409_v47 }
0x12b1   :  { %v1386_v48 = vpop.permute.xlu0 %1385 }
0x12b2   :  { %1388 = vst.msk [vmem:[#allocation3] sm:$0x3] %vm55_vm0, %v1386_v48 }

</bundles_post_ra>
